<compile_context>
chip_gen: v7x
topology: tpu7x:2x2x1
jax: 0.10.0
libtpu: 0.0.40
codegen_flags: <defaults>
</compile_context>

<pallas_src>
import functools

import jax
import jax.numpy as jnp
from jax.experimental import pallas as pl
from jax.experimental.pallas import tpu as pltpu

BN_EPS = 1e-5


# --------------------------------------------------------------------------- kernel
def _ghost_kernel(x_ref, row_ref, col_ref,
                  w1_ref, b1_ref, wd1_ref, bd1_ref,
                  w2a_ref, w2b_ref, b2_ref, wd2_ref, bd2_ref,
                  o_ref, *, H, W):
    """Fully fused GhostBottleneck (s == 1) for one batch element.

    x_ref   : (C,  P)    input image, P = H*W flattened on lanes (lane-dense)
    row_ref : (1,  P)    per-lane spatial row index   (int32)
    col_ref : (1,  P)    per-lane spatial column index (int32)
    w1_ref  : (C4, C)    BN-folded 1x1 conv weight,   b1_ref  : (C4, 1)
    wd1_ref : (25, C4,1) BN-folded DW 5x5 taps,       bd1_ref : (C4, 1)
    w2a/w2b : (C2, C4)   second 1x1 conv, split over the implicit concat, b2: (C2, 1)
    wd2_ref : (25, C2,1)                              bd2_ref : (C2, 1)
    o_ref   : (C,  P)    output block (= cat([z1, z2]) + x)
    """
    P = x_ref.shape[-1]
    C2 = w2a_ref.shape[0]

    x = x_ref[...]
    row = row_ref[...]
    col = col_ref[...]

    # Border-validity masks for the depthwise taps (hoisted once; they replace any
    # zero-padded copy of the activation).  None == "always valid".
    def _off_mask(idx, d, n):
        if d < 0:
            return idx >= -d
        if d > 0:
            return idx < (n - d)
        return None

    row_ok = [_off_mask(row, d, H) for d in range(-2, 3)]
    col_ok = [_off_mask(col, d, W) for d in range(-2, 3)]

    def _combine(a, b):
        if a is None:
            return b
        if b is None:
            return a
        return a & b

    def dw5x5(v, taps_ref, bias_ref):
        # v: (Cv, P).  Per tap: 1 lane roll (XLU) + masked multiply-accumulate (VPU).
        acc = jnp.zeros(v.shape, jnp.float32)
        for ih in range(5):                      # dh = ih - 2
            for iw in range(5):                  # dw = iw - 2
                d = (ih - 2) * W + (iw - 2)      # flattened spatial shift
                shifted = v if d == 0 else pltpu.roll(v, shift=(-d) % P, axis=1)
                mask = _combine(row_ok[ih], col_ok[iw])
                contrib = shifted if mask is None else jnp.where(mask, shifted, 0.0)
                acc = acc + contrib * taps_ref[ih * 5 + iw]     # (Cv,1) lane splat
        return acc + bias_ref[...]

    # GhostConv1.cv1 : 1x1 conv C -> C/4, BN, SiLU                      (MXU matmul)
    y1 = jnp.dot(w1_ref[...], x, preferred_element_type=jnp.float32) + b1_ref[...]
    y1 = y1 * jax.nn.sigmoid(y1)

    # GhostConv1.cv2 : depthwise 5x5 on C/4 channels, BN, SiLU          (VPU + XLU)
    y2 = dw5x5(y1, wd1_ref, bd1_ref)
    y2 = y2 * jax.nn.sigmoid(y2)

    # GhostConv2.cv1 : 1x1 conv of cat([y1, y2]) -> C/2, BN, no act
    #   concat folded into a split matmul; the cat tensor is never materialized.
    z1 = (jnp.dot(w2a_ref[...], y1, preferred_element_type=jnp.float32)
          + jnp.dot(w2b_ref[...], y2, preferred_element_type=jnp.float32)
          + b2_ref[...])

    # GhostConv2.cv2 : depthwise 5x5 on C/2 channels, BN, no act
    z2 = dw5x5(z1, wd2_ref, bd2_ref)

    # cat([z1, z2], channel) + identity shortcut, written straight to the output.
    o_ref[:C2, :] = z1 + x[:C2, :]
    o_ref[C2:, :] = z2 + x[C2:, :]


# ------------------------------------------------------------------ BN folding helpers
def _fold_bn_pw(w, bn):
    # w: (Cout, Cin, 1, 1); bn = (gamma, beta, mean, var). Returns (Cout, Cin), (Cout,)
    gamma, beta, mean, var = bn
    scale = gamma / jnp.sqrt(var + BN_EPS)
    w_eff = (w[:, :, 0, 0] * scale[:, None]).astype(jnp.float32)
    b_eff = (beta - mean * scale).astype(jnp.float32)
    return w_eff, b_eff


def _fold_bn_dw(w, bn):
    # w: (C, 1, 5, 5) depthwise; returns tap-major (25, C, 1) and bias (C,)
    gamma, beta, mean, var = bn
    C = w.shape[0]
    scale = gamma / jnp.sqrt(var + BN_EPS)
    w_eff = w[:, 0] * scale[:, None, None]                              # (C, 5, 5)
    w25 = jnp.transpose(w_eff.reshape(C, 25), (1, 0))[:, :, None]       # (25, C, 1)
    b_eff = beta - mean * scale
    return w25.astype(jnp.float32), b_eff.astype(jnp.float32)


# --------------------------------------------------------------------------- forward
def ghost_bottleneck(x, p):
    """GhostBottleneck forward for s == 1 (c1 == c2).  x: (N, C, H, W) float32."""
    N, C, H, W = x.shape
    P = H * W                      # lane-dense for the demo (multiple of 128)
    x = x.astype(jnp.float32)
    x_flat = x.reshape(N, C, P)

    C4 = p["g1_cv1_w"].shape[0]    # C // 4
    C2 = p["g2_cv1_w"].shape[0]    # C // 2

    w1, b1 = _fold_bn_pw(p["g1_cv1_w"], p["g1_cv1_bn"])
    wd1, bd1 = _fold_bn_dw(p["g1_cv2_w"], p["g1_cv2_bn"])
    w2, b2 = _fold_bn_pw(p["g2_cv1_w"], p["g2_cv1_bn"])
    wd2, bd2 = _fold_bn_dw(p["g2_cv2_w"], p["g2_cv2_bn"])

    # Per-lane spatial row / column indices for the depthwise border masks.
    lane = jnp.arange(P, dtype=jnp.int32)[None, :]
    row_ids = lane // W
    col_ids = lane % W

    out = pl.pallas_call(
        functools.partial(_ghost_kernel, H=H, W=W),
        out_shape=jax.ShapeDtypeStruct((N, C, P), jnp.float32),
        grid=(N,),
        in_specs=[
            pl.BlockSpec((None, C, P), lambda n: (n, 0, 0)),      # x (one image)
            pl.BlockSpec((1, P), lambda n: (0, 0)),               # row ids
            pl.BlockSpec((1, P), lambda n: (0, 0)),               # col ids
            pl.BlockSpec((C4, C), lambda n: (0, 0)),              # w1
            pl.BlockSpec((C4, 1), lambda n: (0, 0)),              # b1
            pl.BlockSpec((25, C4, 1), lambda n: (0, 0, 0)),       # wd1 taps
            pl.BlockSpec((C4, 1), lambda n: (0, 0)),              # bd1
            pl.BlockSpec((C2, C4), lambda n: (0, 0)),             # w2 (first half)
            pl.BlockSpec((C2, C4), lambda n: (0, 0)),             # w2 (second half)
            pl.BlockSpec((C2, 1), lambda n: (0, 0)),              # b2
            pl.BlockSpec((25, C2, 1), lambda n: (0, 0, 0)),       # wd2 taps
            pl.BlockSpec((C2, 1), lambda n: (0, 0)),              # bd2
        ],
        out_specs=pl.BlockSpec((None, C, P), lambda n: (n, 0, 0)),
        compiler_params=pltpu.CompilerParams(dimension_semantics=("parallel",)),
    )(x_flat, row_ids, col_ids,
      w1, b1.reshape(C4, 1), wd1, bd1.reshape(C4, 1),
      w2[:, :C4], w2[:, C4:], b2.reshape(C2, 1), wd2, bd2.reshape(C2, 1))

    return out.reshape(N, C, H, W)


# --------------------------------------------------------------------------- reference
def _reference(x, p):
    def conv_bn(h, w, bn, act, groups=1, pad=0):
        gamma, beta, mean, var = bn
        y = jax.lax.conv_general_dilated(
            h, w, window_strides=(1, 1), padding=((pad, pad), (pad, pad)),
            dimension_numbers=("NCHW", "OIHW", "NCHW"),
            feature_group_count=groups, precision=jax.lax.Precision.HIGHEST)
        y = ((y - mean[None, :, None, None])
             * (gamma / jnp.sqrt(var + BN_EPS))[None, :, None, None]
             + beta[None, :, None, None])
        return y * jax.nn.sigmoid(y) if act else y

    C4 = p["g1_cv1_w"].shape[0]
    C2 = p["g2_cv1_w"].shape[0]
    # GhostConv1 (act=True)
    y1 = conv_bn(x, p["g1_cv1_w"], p["g1_cv1_bn"], act=True)
    y2 = conv_bn(y1, p["g1_cv2_w"], p["g1_cv2_bn"], act=True, groups=C4, pad=2)
    y = jnp.concatenate([y1, y2], axis=1)
    # GhostConv2 (act=False)
    z1 = conv_bn(y, p["g2_cv1_w"], p["g2_cv1_bn"], act=False)
    z2 = conv_bn(z1, p["g2_cv2_w"], p["g2_cv2_bn"], act=False, groups=C2, pad=2)
    return jnp.concatenate([z1, z2], axis=1) + x


# --------------------------------------------------------------------------- demo
if __name__ == "__main__":
    N, C, H, W = 2, 16, 16, 16          # c1 == c2 (required by the identity shortcut, s=1)
    C4, C2 = C // 4, C // 2             # GhostConv hidden widths

    key = jax.random.PRNGKey(0)
    keys = jax.random.split(key, 9)

    def bn_params(k, c):
        k1, k2, k3, k4 = jax.random.split(k, 4)
        gamma = 1.0 + 0.1 * jax.random.normal(k1, (c,), jnp.float32)
        beta = 0.1 * jax.random.normal(k2, (c,), jnp.float32)
        mean = 0.1 * jax.random.normal(k3, (c,), jnp.float32)
        var = jax.nn.softplus(jax.random.normal(k4, (c,), jnp.float32)) + 0.5
        return (gamma, beta, mean, var)

    x = jax.random.normal(keys[0], (N, C, H, W), dtype=jnp.float32)
    params = {
        # GhostConv1: cv1 = Conv(C, C//4, 1, 1, act=SiLU); cv2 = Conv(C//4, C//4, 5, g=C//4, act=SiLU)
        "g1_cv1_w": jax.random.normal(keys[1], (C4, C, 1, 1), jnp.float32) / jnp.sqrt(C),
        "g1_cv1_bn": bn_params(keys[2], C4),
        "g1_cv2_w": jax.random.normal(keys[3], (C4, 1, 5, 5), jnp.float32) / 5.0,
        "g1_cv2_bn": bn_params(keys[4], C4),
        # GhostConv2: cv1 = Conv(C//2, C//2, 1, 1, act=Id); cv2 = Conv(C//2, C//2, 5, g=C//2, act=Id)
        "g2_cv1_w": jax.random.normal(keys[5], (C2, C2, 1, 1), jnp.float32) / jnp.sqrt(C2),
        "g2_cv1_bn": bn_params(keys[6], C2),
        "g2_cv2_w": jax.random.normal(keys[7], (C2, 1, 5, 5), jnp.float32) / 5.0,
        "g2_cv2_bn": bn_params(keys[8], C2),
    }

    out = ghost_bottleneck(x, params)
    out = jax.block_until_ready(out)

    ref = _reference(x, params)
    assert out.shape == (N, C, H, W)
    max_err = jnp.max(jnp.abs(out - ref))
    assert jnp.allclose(out, ref, atol=2e-3, rtol=2e-3), f"mismatch vs reference (max abs err={max_err})"
    print("KERNEL_OK")
</pallas_src>

<mosaic_0001>
module attributes {stable_mosaic.version = 11 : i64} {
  func.func @_ghost_kernel(%arg0: i32, %arg1: memref<1x16x256xf32, #tpu.memory_space<vmem>>, %arg2: memref<1x256xi32, #tpu.memory_space<vmem>>, %arg3: memref<1x256xi32, #tpu.memory_space<vmem>>, %arg4: memref<4x16xf32, #tpu.memory_space<vmem>>, %arg5: memref<4x1xf32, #tpu.memory_space<vmem>>, %arg6: memref<25x4x1xf32, #tpu.memory_space<vmem>>, %arg7: memref<4x1xf32, #tpu.memory_space<vmem>>, %arg8: memref<8x4xf32, #tpu.memory_space<vmem>>, %arg9: memref<8x4xf32, #tpu.memory_space<vmem>>, %arg10: memref<8x1xf32, #tpu.memory_space<vmem>>, %arg11: memref<25x8x1xf32, #tpu.memory_space<vmem>>, %arg12: memref<8x1xf32, #tpu.memory_space<vmem>>, %arg13: memref<1x16x256xf32, #tpu.memory_space<vmem>>) attributes {dimension_semantics = [#tpu.dimension_semantics<parallel>], iteration_bounds = array<i64: 2>, scalar_prefetch = 0 : i64, scratch_operands = 0 : i64, tpu.core_type = #tpu.core_type<tc>, window_params = [{transform_indices = @transform_0, window_bounds = array<i64: 1, 16, 256>}, {pipeline_mode = #tpu.pipeline_mode<synchronous>, transform_indices = @transform_1, window_bounds = array<i64: 1, 256>}, {pipeline_mode = #tpu.pipeline_mode<synchronous>, transform_indices = @transform_2, window_bounds = array<i64: 1, 256>}, {pipeline_mode = #tpu.pipeline_mode<synchronous>, transform_indices = @transform_3, window_bounds = array<i64: 4, 16>}, {pipeline_mode = #tpu.pipeline_mode<synchronous>, transform_indices = @transform_4, window_bounds = array<i64: 4, 1>}, {pipeline_mode = #tpu.pipeline_mode<synchronous>, transform_indices = @transform_5, window_bounds = array<i64: 25, 4, 1>}, {pipeline_mode = #tpu.pipeline_mode<synchronous>, transform_indices = @transform_6, window_bounds = array<i64: 4, 1>}, {pipeline_mode = #tpu.pipeline_mode<synchronous>, transform_indices = @transform_7, window_bounds = array<i64: 8, 4>}, {pipeline_mode = #tpu.pipeline_mode<synchronous>, transform_indices = @transform_8, window_bounds = array<i64: 8, 4>}, {pipeline_mode = #tpu.pipeline_mode<synchronous>, transform_indices = @transform_9, window_bounds = array<i64: 8, 1>}, {pipeline_mode = #tpu.pipeline_mode<synchronous>, transform_indices = @transform_10, window_bounds = array<i64: 25, 8, 1>}, {pipeline_mode = #tpu.pipeline_mode<synchronous>, transform_indices = @transform_11, window_bounds = array<i64: 8, 1>}, {transform_indices = @transform_12, window_bounds = array<i64: 1, 16, 256>}]} {
    %c0 = arith.constant 0 : index
    %c0_0 = arith.constant 0 : index
    %c0_1 = arith.constant 0 : index
    %0 = vector.load %arg1[%c0, %c0_0, %c0_1] : memref<1x16x256xf32, #tpu.memory_space<vmem>>, vector<1x16x256xf32>
    %1 = vector.shape_cast %0 : vector<1x16x256xf32> to vector<16x256xf32>
    %c0_2 = arith.constant 0 : index
    %c0_3 = arith.constant 0 : index
    %2 = vector.load %arg2[%c0_2, %c0_3] : memref<1x256xi32, #tpu.memory_space<vmem>>, vector<1x256xi32>
    %c0_4 = arith.constant 0 : index
    %c0_5 = arith.constant 0 : index
    %3 = vector.load %arg3[%c0_4, %c0_5] : memref<1x256xi32, #tpu.memory_space<vmem>>, vector<1x256xi32>
    %c2_i32 = arith.constant 2 : i32
    %4 = vector.broadcast %c2_i32 : i32 to vector<1x256xi32>
    %5 = arith.cmpi sge, %2, %4 : vector<1x256xi32>
    %c1_i32 = arith.constant 1 : i32
    %6 = vector.broadcast %c1_i32 : i32 to vector<1x256xi32>
    %7 = arith.cmpi sge, %2, %6 : vector<1x256xi32>
    %c15_i32 = arith.constant 15 : i32
    %8 = vector.broadcast %c15_i32 : i32 to vector<1x256xi32>
    %9 = arith.cmpi slt, %2, %8 : vector<1x256xi32>
    %c14_i32 = arith.constant 14 : i32
    %10 = vector.broadcast %c14_i32 : i32 to vector<1x256xi32>
    %11 = arith.cmpi slt, %2, %10 : vector<1x256xi32>
    %c2_i32_6 = arith.constant 2 : i32
    %12 = vector.broadcast %c2_i32_6 : i32 to vector<1x256xi32>
    %13 = arith.cmpi sge, %3, %12 : vector<1x256xi32>
    %c1_i32_7 = arith.constant 1 : i32
    %14 = vector.broadcast %c1_i32_7 : i32 to vector<1x256xi32>
    %15 = arith.cmpi sge, %3, %14 : vector<1x256xi32>
    %c15_i32_8 = arith.constant 15 : i32
    %16 = vector.broadcast %c15_i32_8 : i32 to vector<1x256xi32>
    %17 = arith.cmpi slt, %3, %16 : vector<1x256xi32>
    %c14_i32_9 = arith.constant 14 : i32
    %18 = vector.broadcast %c14_i32_9 : i32 to vector<1x256xi32>
    %19 = arith.cmpi slt, %3, %18 : vector<1x256xi32>
    %c0_10 = arith.constant 0 : index
    %c0_11 = arith.constant 0 : index
    %20 = vector.load %arg4[%c0_10, %c0_11] : memref<4x16xf32, #tpu.memory_space<vmem>>, vector<4x16xf32>
    %cst = arith.constant dense<0.000000e+00> : vector<4x256xf32>
    %21 = tpu.matmul %20, %1, %cst {dimension_numbers = #tpu.dot_dimension_numbers<[1], [0], [0], [1], [0, 0, 1, 1], [], []>} : vector<4x16xf32>, vector<16x256xf32>, vector<4x256xf32> -> vector<4x256xf32>
    %c0_12 = arith.constant 0 : index
    %c0_13 = arith.constant 0 : index
    %22 = vector.load %arg5[%c0_12, %c0_13] : memref<4x1xf32, #tpu.memory_space<vmem>>, vector<4x1xf32>
    %23 = vector.broadcast %22 : vector<4x1xf32> to vector<4x256xf32>
    %24 = arith.addf %21, %23 : vector<4x256xf32>
    %25 = arith.negf %24 : vector<4x256xf32>
    %26 = math.exp %25 : vector<4x256xf32>
    %cst_14 = arith.constant 1.000000e+00 : f32
    %27 = vector.broadcast %cst_14 : f32 to vector<4x256xf32>
    %28 = arith.addf %27, %26 : vector<4x256xf32>
    %29 = arith.divf %27, %28 : vector<4x256xf32>
    %30 = arith.mulf %24, %29 : vector<4x256xf32>
    %cst_15 = arith.constant 0.000000e+00 : f32
    %31 = vector.broadcast %cst_15 : f32 to vector<4x256xf32>
    %c34_i32 = arith.constant 34 : i32
    %32 = tpu.dynamic_rotate %30 by %c34_i32 dim 1 : vector<4x256xf32>, i32 -> vector<4x256xf32>
    %33 = arith.andi %5, %13 : vector<1x256xi1>
    %cst_16 = arith.constant 0.000000e+00 : f32
    %34 = vector.shape_cast %33 : vector<1x256xi1> to vector<1x256xi1>
    %35 = vector.broadcast %34 : vector<1x256xi1> to vector<4x256xi1>
    %36 = vector.broadcast %cst_16 : f32 to vector<4x256xf32>
    %37 = arith.select %35, %32, %36 : vector<4x256xi1>, vector<4x256xf32>
    %c0_17 = arith.constant 0 : index
    %c0_18 = arith.constant 0 : index
    %c0_19 = arith.constant 0 : index
    %38 = vector.load %arg6[%c0_17, %c0_18, %c0_19] : memref<25x4x1xf32, #tpu.memory_space<vmem>>, vector<1x4x1xf32>
    %39 = vector.shape_cast %38 : vector<1x4x1xf32> to vector<4x1xf32>
    %40 = vector.broadcast %39 : vector<4x1xf32> to vector<4x256xf32>
    %41 = arith.mulf %37, %40 : vector<4x256xf32>
    %42 = arith.addf %31, %41 : vector<4x256xf32>
    %c33_i32 = arith.constant 33 : i32
    %43 = tpu.dynamic_rotate %30 by %c33_i32 dim 1 : vector<4x256xf32>, i32 -> vector<4x256xf32>
    %44 = arith.andi %5, %15 : vector<1x256xi1>
    %cst_20 = arith.constant 0.000000e+00 : f32
    %45 = vector.shape_cast %44 : vector<1x256xi1> to vector<1x256xi1>
    %46 = vector.broadcast %45 : vector<1x256xi1> to vector<4x256xi1>
    %47 = vector.broadcast %cst_20 : f32 to vector<4x256xf32>
    %48 = arith.select %46, %43, %47 : vector<4x256xi1>, vector<4x256xf32>
    %c1 = arith.constant 1 : index
    %c0_21 = arith.constant 0 : index
    %c0_22 = arith.constant 0 : index
    %49 = vector.load %arg6[%c1, %c0_21, %c0_22] : memref<25x4x1xf32, #tpu.memory_space<vmem>>, vector<1x4x1xf32>
    %50 = vector.shape_cast %49 : vector<1x4x1xf32> to vector<4x1xf32>
    %51 = vector.broadcast %50 : vector<4x1xf32> to vector<4x256xf32>
    %52 = arith.mulf %48, %51 : vector<4x256xf32>
    %53 = arith.addf %42, %52 : vector<4x256xf32>
    %c32_i32 = arith.constant 32 : i32
    %54 = tpu.dynamic_rotate %30 by %c32_i32 dim 1 : vector<4x256xf32>, i32 -> vector<4x256xf32>
    %cst_23 = arith.constant 0.000000e+00 : f32
    %55 = vector.shape_cast %5 : vector<1x256xi1> to vector<1x256xi1>
    %56 = vector.broadcast %55 : vector<1x256xi1> to vector<4x256xi1>
    %57 = vector.broadcast %cst_23 : f32 to vector<4x256xf32>
    %58 = arith.select %56, %54, %57 : vector<4x256xi1>, vector<4x256xf32>
    %c2 = arith.constant 2 : index
    %c0_24 = arith.constant 0 : index
    %c0_25 = arith.constant 0 : index
    %59 = vector.load %arg6[%c2, %c0_24, %c0_25] : memref<25x4x1xf32, #tpu.memory_space<vmem>>, vector<1x4x1xf32>
    %60 = vector.shape_cast %59 : vector<1x4x1xf32> to vector<4x1xf32>
    %61 = vector.broadcast %60 : vector<4x1xf32> to vector<4x256xf32>
    %62 = arith.mulf %58, %61 : vector<4x256xf32>
    %63 = arith.addf %53, %62 : vector<4x256xf32>
    %c31_i32 = arith.constant 31 : i32
    %64 = tpu.dynamic_rotate %30 by %c31_i32 dim 1 : vector<4x256xf32>, i32 -> vector<4x256xf32>
    %65 = arith.andi %5, %17 : vector<1x256xi1>
    %cst_26 = arith.constant 0.000000e+00 : f32
    %66 = vector.shape_cast %65 : vector<1x256xi1> to vector<1x256xi1>
    %67 = vector.broadcast %66 : vector<1x256xi1> to vector<4x256xi1>
    %68 = vector.broadcast %cst_26 : f32 to vector<4x256xf32>
    %69 = arith.select %67, %64, %68 : vector<4x256xi1>, vector<4x256xf32>
    %c3 = arith.constant 3 : index
    %c0_27 = arith.constant 0 : index
    %c0_28 = arith.constant 0 : index
    %70 = vector.load %arg6[%c3, %c0_27, %c0_28] : memref<25x4x1xf32, #tpu.memory_space<vmem>>, vector<1x4x1xf32>
    %71 = vector.shape_cast %70 : vector<1x4x1xf32> to vector<4x1xf32>
    %72 = vector.broadcast %71 : vector<4x1xf32> to vector<4x256xf32>
    %73 = arith.mulf %69, %72 : vector<4x256xf32>
    %74 = arith.addf %63, %73 : vector<4x256xf32>
    %c30_i32 = arith.constant 30 : i32
    %75 = tpu.dynamic_rotate %30 by %c30_i32 dim 1 : vector<4x256xf32>, i32 -> vector<4x256xf32>
    %76 = arith.andi %5, %19 : vector<1x256xi1>
    %cst_29 = arith.constant 0.000000e+00 : f32
    %77 = vector.shape_cast %76 : vector<1x256xi1> to vector<1x256xi1>
    %78 = vector.broadcast %77 : vector<1x256xi1> to vector<4x256xi1>
    %79 = vector.broadcast %cst_29 : f32 to vector<4x256xf32>
    %80 = arith.select %78, %75, %79 : vector<4x256xi1>, vector<4x256xf32>
    %c4 = arith.constant 4 : index
    %c0_30 = arith.constant 0 : index
    %c0_31 = arith.constant 0 : index
    %81 = vector.load %arg6[%c4, %c0_30, %c0_31] : memref<25x4x1xf32, #tpu.memory_space<vmem>>, vector<1x4x1xf32>
    %82 = vector.shape_cast %81 : vector<1x4x1xf32> to vector<4x1xf32>
    %83 = vector.broadcast %82 : vector<4x1xf32> to vector<4x256xf32>
    %84 = arith.mulf %80, %83 : vector<4x256xf32>
    %85 = arith.addf %74, %84 : vector<4x256xf32>
    %c18_i32 = arith.constant 18 : i32
    %86 = tpu.dynamic_rotate %30 by %c18_i32 dim 1 : vector<4x256xf32>, i32 -> vector<4x256xf32>
    %87 = arith.andi %7, %13 : vector<1x256xi1>
    %cst_32 = arith.constant 0.000000e+00 : f32
    %88 = vector.shape_cast %87 : vector<1x256xi1> to vector<1x256xi1>
    %89 = vector.broadcast %88 : vector<1x256xi1> to vector<4x256xi1>
    %90 = vector.broadcast %cst_32 : f32 to vector<4x256xf32>
    %91 = arith.select %89, %86, %90 : vector<4x256xi1>, vector<4x256xf32>
    %c5 = arith.constant 5 : index
    %c0_33 = arith.constant 0 : index
    %c0_34 = arith.constant 0 : index
    %92 = vector.load %arg6[%c5, %c0_33, %c0_34] : memref<25x4x1xf32, #tpu.memory_space<vmem>>, vector<1x4x1xf32>
    %93 = vector.shape_cast %92 : vector<1x4x1xf32> to vector<4x1xf32>
    %94 = vector.broadcast %93 : vector<4x1xf32> to vector<4x256xf32>
    %95 = arith.mulf %91, %94 : vector<4x256xf32>
    %96 = arith.addf %85, %95 : vector<4x256xf32>
    %c17_i32 = arith.constant 17 : i32
    %97 = tpu.dynamic_rotate %30 by %c17_i32 dim 1 : vector<4x256xf32>, i32 -> vector<4x256xf32>
    %98 = arith.andi %7, %15 : vector<1x256xi1>
    %cst_35 = arith.constant 0.000000e+00 : f32
    %99 = vector.shape_cast %98 : vector<1x256xi1> to vector<1x256xi1>
    %100 = vector.broadcast %99 : vector<1x256xi1> to vector<4x256xi1>
    %101 = vector.broadcast %cst_35 : f32 to vector<4x256xf32>
    %102 = arith.select %100, %97, %101 : vector<4x256xi1>, vector<4x256xf32>
    %c6 = arith.constant 6 : index
    %c0_36 = arith.constant 0 : index
    %c0_37 = arith.constant 0 : index
    %103 = vector.load %arg6[%c6, %c0_36, %c0_37] : memref<25x4x1xf32, #tpu.memory_space<vmem>>, vector<1x4x1xf32>
    %104 = vector.shape_cast %103 : vector<1x4x1xf32> to vector<4x1xf32>
    %105 = vector.broadcast %104 : vector<4x1xf32> to vector<4x256xf32>
    %106 = arith.mulf %102, %105 : vector<4x256xf32>
    %107 = arith.addf %96, %106 : vector<4x256xf32>
    %c16_i32 = arith.constant 16 : i32
    %108 = tpu.dynamic_rotate %30 by %c16_i32 dim 1 : vector<4x256xf32>, i32 -> vector<4x256xf32>
    %cst_38 = arith.constant 0.000000e+00 : f32
    %109 = vector.shape_cast %7 : vector<1x256xi1> to vector<1x256xi1>
    %110 = vector.broadcast %109 : vector<1x256xi1> to vector<4x256xi1>
    %111 = vector.broadcast %cst_38 : f32 to vector<4x256xf32>
    %112 = arith.select %110, %108, %111 : vector<4x256xi1>, vector<4x256xf32>
    %c7 = arith.constant 7 : index
    %c0_39 = arith.constant 0 : index
    %c0_40 = arith.constant 0 : index
    %113 = vector.load %arg6[%c7, %c0_39, %c0_40] : memref<25x4x1xf32, #tpu.memory_space<vmem>>, vector<1x4x1xf32>
    %114 = vector.shape_cast %113 : vector<1x4x1xf32> to vector<4x1xf32>
    %115 = vector.broadcast %114 : vector<4x1xf32> to vector<4x256xf32>
    %116 = arith.mulf %112, %115 : vector<4x256xf32>
    %117 = arith.addf %107, %116 : vector<4x256xf32>
    %c15_i32_41 = arith.constant 15 : i32
    %118 = tpu.dynamic_rotate %30 by %c15_i32_41 dim 1 : vector<4x256xf32>, i32 -> vector<4x256xf32>
    %119 = arith.andi %7, %17 : vector<1x256xi1>
    %cst_42 = arith.constant 0.000000e+00 : f32
    %120 = vector.shape_cast %119 : vector<1x256xi1> to vector<1x256xi1>
    %121 = vector.broadcast %120 : vector<1x256xi1> to vector<4x256xi1>
    %122 = vector.broadcast %cst_42 : f32 to vector<4x256xf32>
    %123 = arith.select %121, %118, %122 : vector<4x256xi1>, vector<4x256xf32>
    %c8 = arith.constant 8 : index
    %c0_43 = arith.constant 0 : index
    %c0_44 = arith.constant 0 : index
    %124 = vector.load %arg6[%c8, %c0_43, %c0_44] : memref<25x4x1xf32, #tpu.memory_space<vmem>>, vector<1x4x1xf32>
    %125 = vector.shape_cast %124 : vector<1x4x1xf32> to vector<4x1xf32>
    %126 = vector.broadcast %125 : vector<4x1xf32> to vector<4x256xf32>
    %127 = arith.mulf %123, %126 : vector<4x256xf32>
    %128 = arith.addf %117, %127 : vector<4x256xf32>
    %c14_i32_45 = arith.constant 14 : i32
    %129 = tpu.dynamic_rotate %30 by %c14_i32_45 dim 1 : vector<4x256xf32>, i32 -> vector<4x256xf32>
    %130 = arith.andi %7, %19 : vector<1x256xi1>
    %cst_46 = arith.constant 0.000000e+00 : f32
    %131 = vector.shape_cast %130 : vector<1x256xi1> to vector<1x256xi1>
    %132 = vector.broadcast %131 : vector<1x256xi1> to vector<4x256xi1>
    %133 = vector.broadcast %cst_46 : f32 to vector<4x256xf32>
    %134 = arith.select %132, %129, %133 : vector<4x256xi1>, vector<4x256xf32>
    %c9 = arith.constant 9 : index
    %c0_47 = arith.constant 0 : index
    %c0_48 = arith.constant 0 : index
    %135 = vector.load %arg6[%c9, %c0_47, %c0_48] : memref<25x4x1xf32, #tpu.memory_space<vmem>>, vector<1x4x1xf32>
    %136 = vector.shape_cast %135 : vector<1x4x1xf32> to vector<4x1xf32>
    %137 = vector.broadcast %136 : vector<4x1xf32> to vector<4x256xf32>
    %138 = arith.mulf %134, %137 : vector<4x256xf32>
    %139 = arith.addf %128, %138 : vector<4x256xf32>
    %c2_i32_49 = arith.constant 2 : i32
    %140 = tpu.dynamic_rotate %30 by %c2_i32_49 dim 1 : vector<4x256xf32>, i32 -> vector<4x256xf32>
    %cst_50 = arith.constant 0.000000e+00 : f32
    %141 = vector.shape_cast %13 : vector<1x256xi1> to vector<1x256xi1>
    %142 = vector.broadcast %141 : vector<1x256xi1> to vector<4x256xi1>
    %143 = vector.broadcast %cst_50 : f32 to vector<4x256xf32>
    %144 = arith.select %142, %140, %143 : vector<4x256xi1>, vector<4x256xf32>
    %c10 = arith.constant 10 : index
    %c0_51 = arith.constant 0 : index
    %c0_52 = arith.constant 0 : index
    %145 = vector.load %arg6[%c10, %c0_51, %c0_52] : memref<25x4x1xf32, #tpu.memory_space<vmem>>, vector<1x4x1xf32>
    %146 = vector.shape_cast %145 : vector<1x4x1xf32> to vector<4x1xf32>
    %147 = vector.broadcast %146 : vector<4x1xf32> to vector<4x256xf32>
    %148 = arith.mulf %144, %147 : vector<4x256xf32>
    %149 = arith.addf %139, %148 : vector<4x256xf32>
    %c1_i32_53 = arith.constant 1 : i32
    %150 = tpu.dynamic_rotate %30 by %c1_i32_53 dim 1 : vector<4x256xf32>, i32 -> vector<4x256xf32>
    %cst_54 = arith.constant 0.000000e+00 : f32
    %151 = vector.shape_cast %15 : vector<1x256xi1> to vector<1x256xi1>
    %152 = vector.broadcast %151 : vector<1x256xi1> to vector<4x256xi1>
    %153 = vector.broadcast %cst_54 : f32 to vector<4x256xf32>
    %154 = arith.select %152, %150, %153 : vector<4x256xi1>, vector<4x256xf32>
    %c11 = arith.constant 11 : index
    %c0_55 = arith.constant 0 : index
    %c0_56 = arith.constant 0 : index
    %155 = vector.load %arg6[%c11, %c0_55, %c0_56] : memref<25x4x1xf32, #tpu.memory_space<vmem>>, vector<1x4x1xf32>
    %156 = vector.shape_cast %155 : vector<1x4x1xf32> to vector<4x1xf32>
    %157 = vector.broadcast %156 : vector<4x1xf32> to vector<4x256xf32>
    %158 = arith.mulf %154, %157 : vector<4x256xf32>
    %159 = arith.addf %149, %158 : vector<4x256xf32>
    %c12 = arith.constant 12 : index
    %c0_57 = arith.constant 0 : index
    %c0_58 = arith.constant 0 : index
    %160 = vector.load %arg6[%c12, %c0_57, %c0_58] : memref<25x4x1xf32, #tpu.memory_space<vmem>>, vector<1x4x1xf32>
    %161 = vector.shape_cast %160 : vector<1x4x1xf32> to vector<4x1xf32>
    %162 = vector.broadcast %161 : vector<4x1xf32> to vector<4x256xf32>
    %163 = arith.mulf %30, %162 : vector<4x256xf32>
    %164 = arith.addf %159, %163 : vector<4x256xf32>
    %c255_i32 = arith.constant 255 : i32
    %165 = tpu.dynamic_rotate %30 by %c255_i32 dim 1 : vector<4x256xf32>, i32 -> vector<4x256xf32>
    %cst_59 = arith.constant 0.000000e+00 : f32
    %166 = vector.shape_cast %17 : vector<1x256xi1> to vector<1x256xi1>
    %167 = vector.broadcast %166 : vector<1x256xi1> to vector<4x256xi1>
    %168 = vector.broadcast %cst_59 : f32 to vector<4x256xf32>
    %169 = arith.select %167, %165, %168 : vector<4x256xi1>, vector<4x256xf32>
    %c13 = arith.constant 13 : index
    %c0_60 = arith.constant 0 : index
    %c0_61 = arith.constant 0 : index
    %170 = vector.load %arg6[%c13, %c0_60, %c0_61] : memref<25x4x1xf32, #tpu.memory_space<vmem>>, vector<1x4x1xf32>
    %171 = vector.shape_cast %170 : vector<1x4x1xf32> to vector<4x1xf32>
    %172 = vector.broadcast %171 : vector<4x1xf32> to vector<4x256xf32>
    %173 = arith.mulf %169, %172 : vector<4x256xf32>
    %174 = arith.addf %164, %173 : vector<4x256xf32>
    %c254_i32 = arith.constant 254 : i32
    %175 = tpu.dynamic_rotate %30 by %c254_i32 dim 1 : vector<4x256xf32>, i32 -> vector<4x256xf32>
    %cst_62 = arith.constant 0.000000e+00 : f32
    %176 = vector.shape_cast %19 : vector<1x256xi1> to vector<1x256xi1>
    %177 = vector.broadcast %176 : vector<1x256xi1> to vector<4x256xi1>
    %178 = vector.broadcast %cst_62 : f32 to vector<4x256xf32>
    %179 = arith.select %177, %175, %178 : vector<4x256xi1>, vector<4x256xf32>
    %c14 = arith.constant 14 : index
    %c0_63 = arith.constant 0 : index
    %c0_64 = arith.constant 0 : index
    %180 = vector.load %arg6[%c14, %c0_63, %c0_64] : memref<25x4x1xf32, #tpu.memory_space<vmem>>, vector<1x4x1xf32>
    %181 = vector.shape_cast %180 : vector<1x4x1xf32> to vector<4x1xf32>
    %182 = vector.broadcast %181 : vector<4x1xf32> to vector<4x256xf32>
    %183 = arith.mulf %179, %182 : vector<4x256xf32>
    %184 = arith.addf %174, %183 : vector<4x256xf32>
    %c242_i32 = arith.constant 242 : i32
    %185 = tpu.dynamic_rotate %30 by %c242_i32 dim 1 : vector<4x256xf32>, i32 -> vector<4x256xf32>
    %186 = arith.andi %9, %13 : vector<1x256xi1>
    %cst_65 = arith.constant 0.000000e+00 : f32
    %187 = vector.shape_cast %186 : vector<1x256xi1> to vector<1x256xi1>
    %188 = vector.broadcast %187 : vector<1x256xi1> to vector<4x256xi1>
    %189 = vector.broadcast %cst_65 : f32 to vector<4x256xf32>
    %190 = arith.select %188, %185, %189 : vector<4x256xi1>, vector<4x256xf32>
    %c15 = arith.constant 15 : index
    %c0_66 = arith.constant 0 : index
    %c0_67 = arith.constant 0 : index
    %191 = vector.load %arg6[%c15, %c0_66, %c0_67] : memref<25x4x1xf32, #tpu.memory_space<vmem>>, vector<1x4x1xf32>
    %192 = vector.shape_cast %191 : vector<1x4x1xf32> to vector<4x1xf32>
    %193 = vector.broadcast %192 : vector<4x1xf32> to vector<4x256xf32>
    %194 = arith.mulf %190, %193 : vector<4x256xf32>
    %195 = arith.addf %184, %194 : vector<4x256xf32>
    %c241_i32 = arith.constant 241 : i32
    %196 = tpu.dynamic_rotate %30 by %c241_i32 dim 1 : vector<4x256xf32>, i32 -> vector<4x256xf32>
    %197 = arith.andi %9, %15 : vector<1x256xi1>
    %cst_68 = arith.constant 0.000000e+00 : f32
    %198 = vector.shape_cast %197 : vector<1x256xi1> to vector<1x256xi1>
    %199 = vector.broadcast %198 : vector<1x256xi1> to vector<4x256xi1>
    %200 = vector.broadcast %cst_68 : f32 to vector<4x256xf32>
    %201 = arith.select %199, %196, %200 : vector<4x256xi1>, vector<4x256xf32>
    %c16 = arith.constant 16 : index
    %c0_69 = arith.constant 0 : index
    %c0_70 = arith.constant 0 : index
    %202 = vector.load %arg6[%c16, %c0_69, %c0_70] : memref<25x4x1xf32, #tpu.memory_space<vmem>>, vector<1x4x1xf32>
    %203 = vector.shape_cast %202 : vector<1x4x1xf32> to vector<4x1xf32>
    %204 = vector.broadcast %203 : vector<4x1xf32> to vector<4x256xf32>
    %205 = arith.mulf %201, %204 : vector<4x256xf32>
    %206 = arith.addf %195, %205 : vector<4x256xf32>
    %c240_i32 = arith.constant 240 : i32
    %207 = tpu.dynamic_rotate %30 by %c240_i32 dim 1 : vector<4x256xf32>, i32 -> vector<4x256xf32>
    %cst_71 = arith.constant 0.000000e+00 : f32
    %208 = vector.shape_cast %9 : vector<1x256xi1> to vector<1x256xi1>
    %209 = vector.broadcast %208 : vector<1x256xi1> to vector<4x256xi1>
    %210 = vector.broadcast %cst_71 : f32 to vector<4x256xf32>
    %211 = arith.select %209, %207, %210 : vector<4x256xi1>, vector<4x256xf32>
    %c17 = arith.constant 17 : index
    %c0_72 = arith.constant 0 : index
    %c0_73 = arith.constant 0 : index
    %212 = vector.load %arg6[%c17, %c0_72, %c0_73] : memref<25x4x1xf32, #tpu.memory_space<vmem>>, vector<1x4x1xf32>
    %213 = vector.shape_cast %212 : vector<1x4x1xf32> to vector<4x1xf32>
    %214 = vector.broadcast %213 : vector<4x1xf32> to vector<4x256xf32>
    %215 = arith.mulf %211, %214 : vector<4x256xf32>
    %216 = arith.addf %206, %215 : vector<4x256xf32>
    %c239_i32 = arith.constant 239 : i32
    %217 = tpu.dynamic_rotate %30 by %c239_i32 dim 1 : vector<4x256xf32>, i32 -> vector<4x256xf32>
    %218 = arith.andi %9, %17 : vector<1x256xi1>
    %cst_74 = arith.constant 0.000000e+00 : f32
    %219 = vector.shape_cast %218 : vector<1x256xi1> to vector<1x256xi1>
    %220 = vector.broadcast %219 : vector<1x256xi1> to vector<4x256xi1>
    %221 = vector.broadcast %cst_74 : f32 to vector<4x256xf32>
    %222 = arith.select %220, %217, %221 : vector<4x256xi1>, vector<4x256xf32>
    %c18 = arith.constant 18 : index
    %c0_75 = arith.constant 0 : index
    %c0_76 = arith.constant 0 : index
    %223 = vector.load %arg6[%c18, %c0_75, %c0_76] : memref<25x4x1xf32, #tpu.memory_space<vmem>>, vector<1x4x1xf32>
    %224 = vector.shape_cast %223 : vector<1x4x1xf32> to vector<4x1xf32>
    %225 = vector.broadcast %224 : vector<4x1xf32> to vector<4x256xf32>
    %226 = arith.mulf %222, %225 : vector<4x256xf32>
    %227 = arith.addf %216, %226 : vector<4x256xf32>
    %c238_i32 = arith.constant 238 : i32
    %228 = tpu.dynamic_rotate %30 by %c238_i32 dim 1 : vector<4x256xf32>, i32 -> vector<4x256xf32>
    %229 = arith.andi %9, %19 : vector<1x256xi1>
    %cst_77 = arith.constant 0.000000e+00 : f32
    %230 = vector.shape_cast %229 : vector<1x256xi1> to vector<1x256xi1>
    %231 = vector.broadcast %230 : vector<1x256xi1> to vector<4x256xi1>
    %232 = vector.broadcast %cst_77 : f32 to vector<4x256xf32>
    %233 = arith.select %231, %228, %232 : vector<4x256xi1>, vector<4x256xf32>
    %c19 = arith.constant 19 : index
    %c0_78 = arith.constant 0 : index
    %c0_79 = arith.constant 0 : index
    %234 = vector.load %arg6[%c19, %c0_78, %c0_79] : memref<25x4x1xf32, #tpu.memory_space<vmem>>, vector<1x4x1xf32>
    %235 = vector.shape_cast %234 : vector<1x4x1xf32> to vector<4x1xf32>
    %236 = vector.broadcast %235 : vector<4x1xf32> to vector<4x256xf32>
    %237 = arith.mulf %233, %236 : vector<4x256xf32>
    %238 = arith.addf %227, %237 : vector<4x256xf32>
    %c226_i32 = arith.constant 226 : i32
    %239 = tpu.dynamic_rotate %30 by %c226_i32 dim 1 : vector<4x256xf32>, i32 -> vector<4x256xf32>
    %240 = arith.andi %11, %13 : vector<1x256xi1>
    %cst_80 = arith.constant 0.000000e+00 : f32
    %241 = vector.shape_cast %240 : vector<1x256xi1> to vector<1x256xi1>
    %242 = vector.broadcast %241 : vector<1x256xi1> to vector<4x256xi1>
    %243 = vector.broadcast %cst_80 : f32 to vector<4x256xf32>
    %244 = arith.select %242, %239, %243 : vector<4x256xi1>, vector<4x256xf32>
    %c20 = arith.constant 20 : index
    %c0_81 = arith.constant 0 : index
    %c0_82 = arith.constant 0 : index
    %245 = vector.load %arg6[%c20, %c0_81, %c0_82] : memref<25x4x1xf32, #tpu.memory_space<vmem>>, vector<1x4x1xf32>
    %246 = vector.shape_cast %245 : vector<1x4x1xf32> to vector<4x1xf32>
    %247 = vector.broadcast %246 : vector<4x1xf32> to vector<4x256xf32>
    %248 = arith.mulf %244, %247 : vector<4x256xf32>
    %249 = arith.addf %238, %248 : vector<4x256xf32>
    %c225_i32 = arith.constant 225 : i32
    %250 = tpu.dynamic_rotate %30 by %c225_i32 dim 1 : vector<4x256xf32>, i32 -> vector<4x256xf32>
    %251 = arith.andi %11, %15 : vector<1x256xi1>
    %cst_83 = arith.constant 0.000000e+00 : f32
    %252 = vector.shape_cast %251 : vector<1x256xi1> to vector<1x256xi1>
    %253 = vector.broadcast %252 : vector<1x256xi1> to vector<4x256xi1>
    %254 = vector.broadcast %cst_83 : f32 to vector<4x256xf32>
    %255 = arith.select %253, %250, %254 : vector<4x256xi1>, vector<4x256xf32>
    %c21 = arith.constant 21 : index
    %c0_84 = arith.constant 0 : index
    %c0_85 = arith.constant 0 : index
    %256 = vector.load %arg6[%c21, %c0_84, %c0_85] : memref<25x4x1xf32, #tpu.memory_space<vmem>>, vector<1x4x1xf32>
    %257 = vector.shape_cast %256 : vector<1x4x1xf32> to vector<4x1xf32>
    %258 = vector.broadcast %257 : vector<4x1xf32> to vector<4x256xf32>
    %259 = arith.mulf %255, %258 : vector<4x256xf32>
    %260 = arith.addf %249, %259 : vector<4x256xf32>
    %c224_i32 = arith.constant 224 : i32
    %261 = tpu.dynamic_rotate %30 by %c224_i32 dim 1 : vector<4x256xf32>, i32 -> vector<4x256xf32>
    %cst_86 = arith.constant 0.000000e+00 : f32
    %262 = vector.shape_cast %11 : vector<1x256xi1> to vector<1x256xi1>
    %263 = vector.broadcast %262 : vector<1x256xi1> to vector<4x256xi1>
    %264 = vector.broadcast %cst_86 : f32 to vector<4x256xf32>
    %265 = arith.select %263, %261, %264 : vector<4x256xi1>, vector<4x256xf32>
    %c22 = arith.constant 22 : index
    %c0_87 = arith.constant 0 : index
    %c0_88 = arith.constant 0 : index
    %266 = vector.load %arg6[%c22, %c0_87, %c0_88] : memref<25x4x1xf32, #tpu.memory_space<vmem>>, vector<1x4x1xf32>
    %267 = vector.shape_cast %266 : vector<1x4x1xf32> to vector<4x1xf32>
    %268 = vector.broadcast %267 : vector<4x1xf32> to vector<4x256xf32>
    %269 = arith.mulf %265, %268 : vector<4x256xf32>
    %270 = arith.addf %260, %269 : vector<4x256xf32>
    %c223_i32 = arith.constant 223 : i32
    %271 = tpu.dynamic_rotate %30 by %c223_i32 dim 1 : vector<4x256xf32>, i32 -> vector<4x256xf32>
    %272 = arith.andi %11, %17 : vector<1x256xi1>
    %cst_89 = arith.constant 0.000000e+00 : f32
    %273 = vector.shape_cast %272 : vector<1x256xi1> to vector<1x256xi1>
    %274 = vector.broadcast %273 : vector<1x256xi1> to vector<4x256xi1>
    %275 = vector.broadcast %cst_89 : f32 to vector<4x256xf32>
    %276 = arith.select %274, %271, %275 : vector<4x256xi1>, vector<4x256xf32>
    %c23 = arith.constant 23 : index
    %c0_90 = arith.constant 0 : index
    %c0_91 = arith.constant 0 : index
    %277 = vector.load %arg6[%c23, %c0_90, %c0_91] : memref<25x4x1xf32, #tpu.memory_space<vmem>>, vector<1x4x1xf32>
    %278 = vector.shape_cast %277 : vector<1x4x1xf32> to vector<4x1xf32>
    %279 = vector.broadcast %278 : vector<4x1xf32> to vector<4x256xf32>
    %280 = arith.mulf %276, %279 : vector<4x256xf32>
    %281 = arith.addf %270, %280 : vector<4x256xf32>
    %c222_i32 = arith.constant 222 : i32
    %282 = tpu.dynamic_rotate %30 by %c222_i32 dim 1 : vector<4x256xf32>, i32 -> vector<4x256xf32>
    %283 = arith.andi %11, %19 : vector<1x256xi1>
    %cst_92 = arith.constant 0.000000e+00 : f32
    %284 = vector.shape_cast %283 : vector<1x256xi1> to vector<1x256xi1>
    %285 = vector.broadcast %284 : vector<1x256xi1> to vector<4x256xi1>
    %286 = vector.broadcast %cst_92 : f32 to vector<4x256xf32>
    %287 = arith.select %285, %282, %286 : vector<4x256xi1>, vector<4x256xf32>
    %c24 = arith.constant 24 : index
    %c0_93 = arith.constant 0 : index
    %c0_94 = arith.constant 0 : index
    %288 = vector.load %arg6[%c24, %c0_93, %c0_94] : memref<25x4x1xf32, #tpu.memory_space<vmem>>, vector<1x4x1xf32>
    %289 = vector.shape_cast %288 : vector<1x4x1xf32> to vector<4x1xf32>
    %290 = vector.broadcast %289 : vector<4x1xf32> to vector<4x256xf32>
    %291 = arith.mulf %287, %290 : vector<4x256xf32>
    %292 = arith.addf %281, %291 : vector<4x256xf32>
    %c0_95 = arith.constant 0 : index
    %c0_96 = arith.constant 0 : index
    %293 = vector.load %arg7[%c0_95, %c0_96] : memref<4x1xf32, #tpu.memory_space<vmem>>, vector<4x1xf32>
    %294 = vector.broadcast %293 : vector<4x1xf32> to vector<4x256xf32>
    %295 = arith.addf %292, %294 : vector<4x256xf32>
    %296 = arith.negf %295 : vector<4x256xf32>
    %297 = math.exp %296 : vector<4x256xf32>
    %cst_97 = arith.constant 1.000000e+00 : f32
    %298 = vector.broadcast %cst_97 : f32 to vector<4x256xf32>
    %299 = arith.addf %298, %297 : vector<4x256xf32>
    %300 = arith.divf %298, %299 : vector<4x256xf32>
    %301 = arith.mulf %295, %300 : vector<4x256xf32>
    %c0_98 = arith.constant 0 : index
    %c0_99 = arith.constant 0 : index
    %302 = vector.load %arg8[%c0_98, %c0_99] : memref<8x4xf32, #tpu.memory_space<vmem>>, vector<8x4xf32>
    %cst_100 = arith.constant dense<0.000000e+00> : vector<8x256xf32>
    %303 = tpu.matmul %302, %30, %cst_100 {dimension_numbers = #tpu.dot_dimension_numbers<[1], [0], [0], [1], [0, 0, 1, 1], [], []>} : vector<8x4xf32>, vector<4x256xf32>, vector<8x256xf32> -> vector<8x256xf32>
    %c0_101 = arith.constant 0 : index
    %c0_102 = arith.constant 0 : index
    %304 = vector.load %arg9[%c0_101, %c0_102] : memref<8x4xf32, #tpu.memory_space<vmem>>, vector<8x4xf32>
    %cst_103 = arith.constant dense<0.000000e+00> : vector<8x256xf32>
    %305 = tpu.matmul %304, %301, %cst_103 {dimension_numbers = #tpu.dot_dimension_numbers<[1], [0], [0], [1], [0, 0, 1, 1], [], []>} : vector<8x4xf32>, vector<4x256xf32>, vector<8x256xf32> -> vector<8x256xf32>
    %306 = arith.addf %303, %305 : vector<8x256xf32>
    %c0_104 = arith.constant 0 : index
    %c0_105 = arith.constant 0 : index
    %307 = vector.load %arg10[%c0_104, %c0_105] : memref<8x1xf32, #tpu.memory_space<vmem>>, vector<8x1xf32>
    %308 = vector.broadcast %307 : vector<8x1xf32> to vector<8x256xf32>
    %309 = arith.addf %306, %308 : vector<8x256xf32>
    %cst_106 = arith.constant 0.000000e+00 : f32
    %310 = vector.broadcast %cst_106 : f32 to vector<8x256xf32>
    %c34_i32_107 = arith.constant 34 : i32
    %311 = tpu.dynamic_rotate %309 by %c34_i32_107 dim 1 : vector<8x256xf32>, i32 -> vector<8x256xf32>
    %312 = arith.andi %5, %13 : vector<1x256xi1>
    %cst_108 = arith.constant 0.000000e+00 : f32
    %313 = vector.shape_cast %312 : vector<1x256xi1> to vector<1x256xi1>
    %314 = vector.broadcast %313 : vector<1x256xi1> to vector<8x256xi1>
    %315 = vector.broadcast %cst_108 : f32 to vector<8x256xf32>
    %316 = arith.select %314, %311, %315 : vector<8x256xi1>, vector<8x256xf32>
    %c0_109 = arith.constant 0 : index
    %c0_110 = arith.constant 0 : index
    %c0_111 = arith.constant 0 : index
    %317 = vector.load %arg11[%c0_109, %c0_110, %c0_111] : memref<25x8x1xf32, #tpu.memory_space<vmem>>, vector<1x8x1xf32>
    %318 = vector.shape_cast %317 : vector<1x8x1xf32> to vector<8x1xf32>
    %319 = vector.broadcast %318 : vector<8x1xf32> to vector<8x256xf32>
    %320 = arith.mulf %316, %319 : vector<8x256xf32>
    %321 = arith.addf %310, %320 : vector<8x256xf32>
    %c33_i32_112 = arith.constant 33 : i32
    %322 = tpu.dynamic_rotate %309 by %c33_i32_112 dim 1 : vector<8x256xf32>, i32 -> vector<8x256xf32>
    %323 = arith.andi %5, %15 : vector<1x256xi1>
    %cst_113 = arith.constant 0.000000e+00 : f32
    %324 = vector.shape_cast %323 : vector<1x256xi1> to vector<1x256xi1>
    %325 = vector.broadcast %324 : vector<1x256xi1> to vector<8x256xi1>
    %326 = vector.broadcast %cst_113 : f32 to vector<8x256xf32>
    %327 = arith.select %325, %322, %326 : vector<8x256xi1>, vector<8x256xf32>
    %c1_114 = arith.constant 1 : index
    %c0_115 = arith.constant 0 : index
    %c0_116 = arith.constant 0 : index
    %328 = vector.load %arg11[%c1_114, %c0_115, %c0_116] : memref<25x8x1xf32, #tpu.memory_space<vmem>>, vector<1x8x1xf32>
    %329 = vector.shape_cast %328 : vector<1x8x1xf32> to vector<8x1xf32>
    %330 = vector.broadcast %329 : vector<8x1xf32> to vector<8x256xf32>
    %331 = arith.mulf %327, %330 : vector<8x256xf32>
    %332 = arith.addf %321, %331 : vector<8x256xf32>
    %c32_i32_117 = arith.constant 32 : i32
    %333 = tpu.dynamic_rotate %309 by %c32_i32_117 dim 1 : vector<8x256xf32>, i32 -> vector<8x256xf32>
    %cst_118 = arith.constant 0.000000e+00 : f32
    %334 = vector.shape_cast %5 : vector<1x256xi1> to vector<1x256xi1>
    %335 = vector.broadcast %334 : vector<1x256xi1> to vector<8x256xi1>
    %336 = vector.broadcast %cst_118 : f32 to vector<8x256xf32>
    %337 = arith.select %335, %333, %336 : vector<8x256xi1>, vector<8x256xf32>
    %c2_119 = arith.constant 2 : index
    %c0_120 = arith.constant 0 : index
    %c0_121 = arith.constant 0 : index
    %338 = vector.load %arg11[%c2_119, %c0_120, %c0_121] : memref<25x8x1xf32, #tpu.memory_space<vmem>>, vector<1x8x1xf32>
    %339 = vector.shape_cast %338 : vector<1x8x1xf32> to vector<8x1xf32>
    %340 = vector.broadcast %339 : vector<8x1xf32> to vector<8x256xf32>
    %341 = arith.mulf %337, %340 : vector<8x256xf32>
    %342 = arith.addf %332, %341 : vector<8x256xf32>
    %c31_i32_122 = arith.constant 31 : i32
    %343 = tpu.dynamic_rotate %309 by %c31_i32_122 dim 1 : vector<8x256xf32>, i32 -> vector<8x256xf32>
    %344 = arith.andi %5, %17 : vector<1x256xi1>
    %cst_123 = arith.constant 0.000000e+00 : f32
    %345 = vector.shape_cast %344 : vector<1x256xi1> to vector<1x256xi1>
    %346 = vector.broadcast %345 : vector<1x256xi1> to vector<8x256xi1>
    %347 = vector.broadcast %cst_123 : f32 to vector<8x256xf32>
    %348 = arith.select %346, %343, %347 : vector<8x256xi1>, vector<8x256xf32>
    %c3_124 = arith.constant 3 : index
    %c0_125 = arith.constant 0 : index
    %c0_126 = arith.constant 0 : index
    %349 = vector.load %arg11[%c3_124, %c0_125, %c0_126] : memref<25x8x1xf32, #tpu.memory_space<vmem>>, vector<1x8x1xf32>
    %350 = vector.shape_cast %349 : vector<1x8x1xf32> to vector<8x1xf32>
    %351 = vector.broadcast %350 : vector<8x1xf32> to vector<8x256xf32>
    %352 = arith.mulf %348, %351 : vector<8x256xf32>
    %353 = arith.addf %342, %352 : vector<8x256xf32>
    %c30_i32_127 = arith.constant 30 : i32
    %354 = tpu.dynamic_rotate %309 by %c30_i32_127 dim 1 : vector<8x256xf32>, i32 -> vector<8x256xf32>
    %355 = arith.andi %5, %19 : vector<1x256xi1>
    %cst_128 = arith.constant 0.000000e+00 : f32
    %356 = vector.shape_cast %355 : vector<1x256xi1> to vector<1x256xi1>
    %357 = vector.broadcast %356 : vector<1x256xi1> to vector<8x256xi1>
    %358 = vector.broadcast %cst_128 : f32 to vector<8x256xf32>
    %359 = arith.select %357, %354, %358 : vector<8x256xi1>, vector<8x256xf32>
    %c4_129 = arith.constant 4 : index
    %c0_130 = arith.constant 0 : index
    %c0_131 = arith.constant 0 : index
    %360 = vector.load %arg11[%c4_129, %c0_130, %c0_131] : memref<25x8x1xf32, #tpu.memory_space<vmem>>, vector<1x8x1xf32>
    %361 = vector.shape_cast %360 : vector<1x8x1xf32> to vector<8x1xf32>
    %362 = vector.broadcast %361 : vector<8x1xf32> to vector<8x256xf32>
    %363 = arith.mulf %359, %362 : vector<8x256xf32>
    %364 = arith.addf %353, %363 : vector<8x256xf32>
    %c18_i32_132 = arith.constant 18 : i32
    %365 = tpu.dynamic_rotate %309 by %c18_i32_132 dim 1 : vector<8x256xf32>, i32 -> vector<8x256xf32>
    %366 = arith.andi %7, %13 : vector<1x256xi1>
    %cst_133 = arith.constant 0.000000e+00 : f32
    %367 = vector.shape_cast %366 : vector<1x256xi1> to vector<1x256xi1>
    %368 = vector.broadcast %367 : vector<1x256xi1> to vector<8x256xi1>
    %369 = vector.broadcast %cst_133 : f32 to vector<8x256xf32>
    %370 = arith.select %368, %365, %369 : vector<8x256xi1>, vector<8x256xf32>
    %c5_134 = arith.constant 5 : index
    %c0_135 = arith.constant 0 : index
    %c0_136 = arith.constant 0 : index
    %371 = vector.load %arg11[%c5_134, %c0_135, %c0_136] : memref<25x8x1xf32, #tpu.memory_space<vmem>>, vector<1x8x1xf32>
    %372 = vector.shape_cast %371 : vector<1x8x1xf32> to vector<8x1xf32>
    %373 = vector.broadcast %372 : vector<8x1xf32> to vector<8x256xf32>
    %374 = arith.mulf %370, %373 : vector<8x256xf32>
    %375 = arith.addf %364, %374 : vector<8x256xf32>
    %c17_i32_137 = arith.constant 17 : i32
    %376 = tpu.dynamic_rotate %309 by %c17_i32_137 dim 1 : vector<8x256xf32>, i32 -> vector<8x256xf32>
    %377 = arith.andi %7, %15 : vector<1x256xi1>
    %cst_138 = arith.constant 0.000000e+00 : f32
    %378 = vector.shape_cast %377 : vector<1x256xi1> to vector<1x256xi1>
    %379 = vector.broadcast %378 : vector<1x256xi1> to vector<8x256xi1>
    %380 = vector.broadcast %cst_138 : f32 to vector<8x256xf32>
    %381 = arith.select %379, %376, %380 : vector<8x256xi1>, vector<8x256xf32>
    %c6_139 = arith.constant 6 : index
    %c0_140 = arith.constant 0 : index
    %c0_141 = arith.constant 0 : index
    %382 = vector.load %arg11[%c6_139, %c0_140, %c0_141] : memref<25x8x1xf32, #tpu.memory_space<vmem>>, vector<1x8x1xf32>
    %383 = vector.shape_cast %382 : vector<1x8x1xf32> to vector<8x1xf32>
    %384 = vector.broadcast %383 : vector<8x1xf32> to vector<8x256xf32>
    %385 = arith.mulf %381, %384 : vector<8x256xf32>
    %386 = arith.addf %375, %385 : vector<8x256xf32>
    %c16_i32_142 = arith.constant 16 : i32
    %387 = tpu.dynamic_rotate %309 by %c16_i32_142 dim 1 : vector<8x256xf32>, i32 -> vector<8x256xf32>
    %cst_143 = arith.constant 0.000000e+00 : f32
    %388 = vector.shape_cast %7 : vector<1x256xi1> to vector<1x256xi1>
    %389 = vector.broadcast %388 : vector<1x256xi1> to vector<8x256xi1>
    %390 = vector.broadcast %cst_143 : f32 to vector<8x256xf32>
    %391 = arith.select %389, %387, %390 : vector<8x256xi1>, vector<8x256xf32>
    %c7_144 = arith.constant 7 : index
    %c0_145 = arith.constant 0 : index
    %c0_146 = arith.constant 0 : index
    %392 = vector.load %arg11[%c7_144, %c0_145, %c0_146] : memref<25x8x1xf32, #tpu.memory_space<vmem>>, vector<1x8x1xf32>
    %393 = vector.shape_cast %392 : vector<1x8x1xf32> to vector<8x1xf32>
    %394 = vector.broadcast %393 : vector<8x1xf32> to vector<8x256xf32>
    %395 = arith.mulf %391, %394 : vector<8x256xf32>
    %396 = arith.addf %386, %395 : vector<8x256xf32>
    %c15_i32_147 = arith.constant 15 : i32
    %397 = tpu.dynamic_rotate %309 by %c15_i32_147 dim 1 : vector<8x256xf32>, i32 -> vector<8x256xf32>
    %398 = arith.andi %7, %17 : vector<1x256xi1>
    %cst_148 = arith.constant 0.000000e+00 : f32
    %399 = vector.shape_cast %398 : vector<1x256xi1> to vector<1x256xi1>
    %400 = vector.broadcast %399 : vector<1x256xi1> to vector<8x256xi1>
    %401 = vector.broadcast %cst_148 : f32 to vector<8x256xf32>
    %402 = arith.select %400, %397, %401 : vector<8x256xi1>, vector<8x256xf32>
    %c8_149 = arith.constant 8 : index
    %c0_150 = arith.constant 0 : index
    %c0_151 = arith.constant 0 : index
    %403 = vector.load %arg11[%c8_149, %c0_150, %c0_151] : memref<25x8x1xf32, #tpu.memory_space<vmem>>, vector<1x8x1xf32>
    %404 = vector.shape_cast %403 : vector<1x8x1xf32> to vector<8x1xf32>
    %405 = vector.broadcast %404 : vector<8x1xf32> to vector<8x256xf32>
    %406 = arith.mulf %402, %405 : vector<8x256xf32>
    %407 = arith.addf %396, %406 : vector<8x256xf32>
    %c14_i32_152 = arith.constant 14 : i32
    %408 = tpu.dynamic_rotate %309 by %c14_i32_152 dim 1 : vector<8x256xf32>, i32 -> vector<8x256xf32>
    %409 = arith.andi %7, %19 : vector<1x256xi1>
    %cst_153 = arith.constant 0.000000e+00 : f32
    %410 = vector.shape_cast %409 : vector<1x256xi1> to vector<1x256xi1>
    %411 = vector.broadcast %410 : vector<1x256xi1> to vector<8x256xi1>
    %412 = vector.broadcast %cst_153 : f32 to vector<8x256xf32>
    %413 = arith.select %411, %408, %412 : vector<8x256xi1>, vector<8x256xf32>
    %c9_154 = arith.constant 9 : index
    %c0_155 = arith.constant 0 : index
    %c0_156 = arith.constant 0 : index
    %414 = vector.load %arg11[%c9_154, %c0_155, %c0_156] : memref<25x8x1xf32, #tpu.memory_space<vmem>>, vector<1x8x1xf32>
    %415 = vector.shape_cast %414 : vector<1x8x1xf32> to vector<8x1xf32>
    %416 = vector.broadcast %415 : vector<8x1xf32> to vector<8x256xf32>
    %417 = arith.mulf %413, %416 : vector<8x256xf32>
    %418 = arith.addf %407, %417 : vector<8x256xf32>
    %c2_i32_157 = arith.constant 2 : i32
    %419 = tpu.dynamic_rotate %309 by %c2_i32_157 dim 1 : vector<8x256xf32>, i32 -> vector<8x256xf32>
    %cst_158 = arith.constant 0.000000e+00 : f32
    %420 = vector.shape_cast %13 : vector<1x256xi1> to vector<1x256xi1>
    %421 = vector.broadcast %420 : vector<1x256xi1> to vector<8x256xi1>
    %422 = vector.broadcast %cst_158 : f32 to vector<8x256xf32>
    %423 = arith.select %421, %419, %422 : vector<8x256xi1>, vector<8x256xf32>
    %c10_159 = arith.constant 10 : index
    %c0_160 = arith.constant 0 : index
    %c0_161 = arith.constant 0 : index
    %424 = vector.load %arg11[%c10_159, %c0_160, %c0_161] : memref<25x8x1xf32, #tpu.memory_space<vmem>>, vector<1x8x1xf32>
    %425 = vector.shape_cast %424 : vector<1x8x1xf32> to vector<8x1xf32>
    %426 = vector.broadcast %425 : vector<8x1xf32> to vector<8x256xf32>
    %427 = arith.mulf %423, %426 : vector<8x256xf32>
    %428 = arith.addf %418, %427 : vector<8x256xf32>
    %c1_i32_162 = arith.constant 1 : i32
    %429 = tpu.dynamic_rotate %309 by %c1_i32_162 dim 1 : vector<8x256xf32>, i32 -> vector<8x256xf32>
    %cst_163 = arith.constant 0.000000e+00 : f32
    %430 = vector.shape_cast %15 : vector<1x256xi1> to vector<1x256xi1>
    %431 = vector.broadcast %430 : vector<1x256xi1> to vector<8x256xi1>
    %432 = vector.broadcast %cst_163 : f32 to vector<8x256xf32>
    %433 = arith.select %431, %429, %432 : vector<8x256xi1>, vector<8x256xf32>
    %c11_164 = arith.constant 11 : index
    %c0_165 = arith.constant 0 : index
    %c0_166 = arith.constant 0 : index
    %434 = vector.load %arg11[%c11_164, %c0_165, %c0_166] : memref<25x8x1xf32, #tpu.memory_space<vmem>>, vector<1x8x1xf32>
    %435 = vector.shape_cast %434 : vector<1x8x1xf32> to vector<8x1xf32>
    %436 = vector.broadcast %435 : vector<8x1xf32> to vector<8x256xf32>
    %437 = arith.mulf %433, %436 : vector<8x256xf32>
    %438 = arith.addf %428, %437 : vector<8x256xf32>
    %c12_167 = arith.constant 12 : index
    %c0_168 = arith.constant 0 : index
    %c0_169 = arith.constant 0 : index
    %439 = vector.load %arg11[%c12_167, %c0_168, %c0_169] : memref<25x8x1xf32, #tpu.memory_space<vmem>>, vector<1x8x1xf32>
    %440 = vector.shape_cast %439 : vector<1x8x1xf32> to vector<8x1xf32>
    %441 = vector.broadcast %440 : vector<8x1xf32> to vector<8x256xf32>
    %442 = arith.mulf %309, %441 : vector<8x256xf32>
    %443 = arith.addf %438, %442 : vector<8x256xf32>
    %c255_i32_170 = arith.constant 255 : i32
    %444 = tpu.dynamic_rotate %309 by %c255_i32_170 dim 1 : vector<8x256xf32>, i32 -> vector<8x256xf32>
    %cst_171 = arith.constant 0.000000e+00 : f32
    %445 = vector.shape_cast %17 : vector<1x256xi1> to vector<1x256xi1>
    %446 = vector.broadcast %445 : vector<1x256xi1> to vector<8x256xi1>
    %447 = vector.broadcast %cst_171 : f32 to vector<8x256xf32>
    %448 = arith.select %446, %444, %447 : vector<8x256xi1>, vector<8x256xf32>
    %c13_172 = arith.constant 13 : index
    %c0_173 = arith.constant 0 : index
    %c0_174 = arith.constant 0 : index
    %449 = vector.load %arg11[%c13_172, %c0_173, %c0_174] : memref<25x8x1xf32, #tpu.memory_space<vmem>>, vector<1x8x1xf32>
    %450 = vector.shape_cast %449 : vector<1x8x1xf32> to vector<8x1xf32>
    %451 = vector.broadcast %450 : vector<8x1xf32> to vector<8x256xf32>
    %452 = arith.mulf %448, %451 : vector<8x256xf32>
    %453 = arith.addf %443, %452 : vector<8x256xf32>
    %c254_i32_175 = arith.constant 254 : i32
    %454 = tpu.dynamic_rotate %309 by %c254_i32_175 dim 1 : vector<8x256xf32>, i32 -> vector<8x256xf32>
    %cst_176 = arith.constant 0.000000e+00 : f32
    %455 = vector.shape_cast %19 : vector<1x256xi1> to vector<1x256xi1>
    %456 = vector.broadcast %455 : vector<1x256xi1> to vector<8x256xi1>
    %457 = vector.broadcast %cst_176 : f32 to vector<8x256xf32>
    %458 = arith.select %456, %454, %457 : vector<8x256xi1>, vector<8x256xf32>
    %c14_177 = arith.constant 14 : index
    %c0_178 = arith.constant 0 : index
    %c0_179 = arith.constant 0 : index
    %459 = vector.load %arg11[%c14_177, %c0_178, %c0_179] : memref<25x8x1xf32, #tpu.memory_space<vmem>>, vector<1x8x1xf32>
    %460 = vector.shape_cast %459 : vector<1x8x1xf32> to vector<8x1xf32>
    %461 = vector.broadcast %460 : vector<8x1xf32> to vector<8x256xf32>
    %462 = arith.mulf %458, %461 : vector<8x256xf32>
    %463 = arith.addf %453, %462 : vector<8x256xf32>
    %c242_i32_180 = arith.constant 242 : i32
    %464 = tpu.dynamic_rotate %309 by %c242_i32_180 dim 1 : vector<8x256xf32>, i32 -> vector<8x256xf32>
    %465 = arith.andi %9, %13 : vector<1x256xi1>
    %cst_181 = arith.constant 0.000000e+00 : f32
    %466 = vector.shape_cast %465 : vector<1x256xi1> to vector<1x256xi1>
    %467 = vector.broadcast %466 : vector<1x256xi1> to vector<8x256xi1>
    %468 = vector.broadcast %cst_181 : f32 to vector<8x256xf32>
    %469 = arith.select %467, %464, %468 : vector<8x256xi1>, vector<8x256xf32>
    %c15_182 = arith.constant 15 : index
    %c0_183 = arith.constant 0 : index
    %c0_184 = arith.constant 0 : index
    %470 = vector.load %arg11[%c15_182, %c0_183, %c0_184] : memref<25x8x1xf32, #tpu.memory_space<vmem>>, vector<1x8x1xf32>
    %471 = vector.shape_cast %470 : vector<1x8x1xf32> to vector<8x1xf32>
    %472 = vector.broadcast %471 : vector<8x1xf32> to vector<8x256xf32>
    %473 = arith.mulf %469, %472 : vector<8x256xf32>
    %474 = arith.addf %463, %473 : vector<8x256xf32>
    %c241_i32_185 = arith.constant 241 : i32
    %475 = tpu.dynamic_rotate %309 by %c241_i32_185 dim 1 : vector<8x256xf32>, i32 -> vector<8x256xf32>
    %476 = arith.andi %9, %15 : vector<1x256xi1>
    %cst_186 = arith.constant 0.000000e+00 : f32
    %477 = vector.shape_cast %476 : vector<1x256xi1> to vector<1x256xi1>
    %478 = vector.broadcast %477 : vector<1x256xi1> to vector<8x256xi1>
    %479 = vector.broadcast %cst_186 : f32 to vector<8x256xf32>
    %480 = arith.select %478, %475, %479 : vector<8x256xi1>, vector<8x256xf32>
    %c16_187 = arith.constant 16 : index
    %c0_188 = arith.constant 0 : index
    %c0_189 = arith.constant 0 : index
    %481 = vector.load %arg11[%c16_187, %c0_188, %c0_189] : memref<25x8x1xf32, #tpu.memory_space<vmem>>, vector<1x8x1xf32>
    %482 = vector.shape_cast %481 : vector<1x8x1xf32> to vector<8x1xf32>
    %483 = vector.broadcast %482 : vector<8x1xf32> to vector<8x256xf32>
    %484 = arith.mulf %480, %483 : vector<8x256xf32>
    %485 = arith.addf %474, %484 : vector<8x256xf32>
    %c240_i32_190 = arith.constant 240 : i32
    %486 = tpu.dynamic_rotate %309 by %c240_i32_190 dim 1 : vector<8x256xf32>, i32 -> vector<8x256xf32>
    %cst_191 = arith.constant 0.000000e+00 : f32
    %487 = vector.shape_cast %9 : vector<1x256xi1> to vector<1x256xi1>
    %488 = vector.broadcast %487 : vector<1x256xi1> to vector<8x256xi1>
    %489 = vector.broadcast %cst_191 : f32 to vector<8x256xf32>
    %490 = arith.select %488, %486, %489 : vector<8x256xi1>, vector<8x256xf32>
    %c17_192 = arith.constant 17 : index
    %c0_193 = arith.constant 0 : index
    %c0_194 = arith.constant 0 : index
    %491 = vector.load %arg11[%c17_192, %c0_193, %c0_194] : memref<25x8x1xf32, #tpu.memory_space<vmem>>, vector<1x8x1xf32>
    %492 = vector.shape_cast %491 : vector<1x8x1xf32> to vector<8x1xf32>
    %493 = vector.broadcast %492 : vector<8x1xf32> to vector<8x256xf32>
    %494 = arith.mulf %490, %493 : vector<8x256xf32>
    %495 = arith.addf %485, %494 : vector<8x256xf32>
    %c239_i32_195 = arith.constant 239 : i32
    %496 = tpu.dynamic_rotate %309 by %c239_i32_195 dim 1 : vector<8x256xf32>, i32 -> vector<8x256xf32>
    %497 = arith.andi %9, %17 : vector<1x256xi1>
    %cst_196 = arith.constant 0.000000e+00 : f32
    %498 = vector.shape_cast %497 : vector<1x256xi1> to vector<1x256xi1>
    %499 = vector.broadcast %498 : vector<1x256xi1> to vector<8x256xi1>
    %500 = vector.broadcast %cst_196 : f32 to vector<8x256xf32>
    %501 = arith.select %499, %496, %500 : vector<8x256xi1>, vector<8x256xf32>
    %c18_197 = arith.constant 18 : index
    %c0_198 = arith.constant 0 : index
    %c0_199 = arith.constant 0 : index
    %502 = vector.load %arg11[%c18_197, %c0_198, %c0_199] : memref<25x8x1xf32, #tpu.memory_space<vmem>>, vector<1x8x1xf32>
    %503 = vector.shape_cast %502 : vector<1x8x1xf32> to vector<8x1xf32>
    %504 = vector.broadcast %503 : vector<8x1xf32> to vector<8x256xf32>
    %505 = arith.mulf %501, %504 : vector<8x256xf32>
    %506 = arith.addf %495, %505 : vector<8x256xf32>
    %c238_i32_200 = arith.constant 238 : i32
    %507 = tpu.dynamic_rotate %309 by %c238_i32_200 dim 1 : vector<8x256xf32>, i32 -> vector<8x256xf32>
    %508 = arith.andi %9, %19 : vector<1x256xi1>
    %cst_201 = arith.constant 0.000000e+00 : f32
    %509 = vector.shape_cast %508 : vector<1x256xi1> to vector<1x256xi1>
    %510 = vector.broadcast %509 : vector<1x256xi1> to vector<8x256xi1>
    %511 = vector.broadcast %cst_201 : f32 to vector<8x256xf32>
    %512 = arith.select %510, %507, %511 : vector<8x256xi1>, vector<8x256xf32>
    %c19_202 = arith.constant 19 : index
    %c0_203 = arith.constant 0 : index
    %c0_204 = arith.constant 0 : index
    %513 = vector.load %arg11[%c19_202, %c0_203, %c0_204] : memref<25x8x1xf32, #tpu.memory_space<vmem>>, vector<1x8x1xf32>
    %514 = vector.shape_cast %513 : vector<1x8x1xf32> to vector<8x1xf32>
    %515 = vector.broadcast %514 : vector<8x1xf32> to vector<8x256xf32>
    %516 = arith.mulf %512, %515 : vector<8x256xf32>
    %517 = arith.addf %506, %516 : vector<8x256xf32>
    %c226_i32_205 = arith.constant 226 : i32
    %518 = tpu.dynamic_rotate %309 by %c226_i32_205 dim 1 : vector<8x256xf32>, i32 -> vector<8x256xf32>
    %519 = arith.andi %11, %13 : vector<1x256xi1>
    %cst_206 = arith.constant 0.000000e+00 : f32
    %520 = vector.shape_cast %519 : vector<1x256xi1> to vector<1x256xi1>
    %521 = vector.broadcast %520 : vector<1x256xi1> to vector<8x256xi1>
    %522 = vector.broadcast %cst_206 : f32 to vector<8x256xf32>
    %523 = arith.select %521, %518, %522 : vector<8x256xi1>, vector<8x256xf32>
    %c20_207 = arith.constant 20 : index
    %c0_208 = arith.constant 0 : index
    %c0_209 = arith.constant 0 : index
    %524 = vector.load %arg11[%c20_207, %c0_208, %c0_209] : memref<25x8x1xf32, #tpu.memory_space<vmem>>, vector<1x8x1xf32>
    %525 = vector.shape_cast %524 : vector<1x8x1xf32> to vector<8x1xf32>
    %526 = vector.broadcast %525 : vector<8x1xf32> to vector<8x256xf32>
    %527 = arith.mulf %523, %526 : vector<8x256xf32>
    %528 = arith.addf %517, %527 : vector<8x256xf32>
    %c225_i32_210 = arith.constant 225 : i32
    %529 = tpu.dynamic_rotate %309 by %c225_i32_210 dim 1 : vector<8x256xf32>, i32 -> vector<8x256xf32>
    %530 = arith.andi %11, %15 : vector<1x256xi1>
    %cst_211 = arith.constant 0.000000e+00 : f32
    %531 = vector.shape_cast %530 : vector<1x256xi1> to vector<1x256xi1>
    %532 = vector.broadcast %531 : vector<1x256xi1> to vector<8x256xi1>
    %533 = vector.broadcast %cst_211 : f32 to vector<8x256xf32>
    %534 = arith.select %532, %529, %533 : vector<8x256xi1>, vector<8x256xf32>
    %c21_212 = arith.constant 21 : index
    %c0_213 = arith.constant 0 : index
    %c0_214 = arith.constant 0 : index
    %535 = vector.load %arg11[%c21_212, %c0_213, %c0_214] : memref<25x8x1xf32, #tpu.memory_space<vmem>>, vector<1x8x1xf32>
    %536 = vector.shape_cast %535 : vector<1x8x1xf32> to vector<8x1xf32>
    %537 = vector.broadcast %536 : vector<8x1xf32> to vector<8x256xf32>
    %538 = arith.mulf %534, %537 : vector<8x256xf32>
    %539 = arith.addf %528, %538 : vector<8x256xf32>
    %c224_i32_215 = arith.constant 224 : i32
    %540 = tpu.dynamic_rotate %309 by %c224_i32_215 dim 1 : vector<8x256xf32>, i32 -> vector<8x256xf32>
    %cst_216 = arith.constant 0.000000e+00 : f32
    %541 = vector.shape_cast %11 : vector<1x256xi1> to vector<1x256xi1>
    %542 = vector.broadcast %541 : vector<1x256xi1> to vector<8x256xi1>
    %543 = vector.broadcast %cst_216 : f32 to vector<8x256xf32>
    %544 = arith.select %542, %540, %543 : vector<8x256xi1>, vector<8x256xf32>
    %c22_217 = arith.constant 22 : index
    %c0_218 = arith.constant 0 : index
    %c0_219 = arith.constant 0 : index
    %545 = vector.load %arg11[%c22_217, %c0_218, %c0_219] : memref<25x8x1xf32, #tpu.memory_space<vmem>>, vector<1x8x1xf32>
    %546 = vector.shape_cast %545 : vector<1x8x1xf32> to vector<8x1xf32>
    %547 = vector.broadcast %546 : vector<8x1xf32> to vector<8x256xf32>
    %548 = arith.mulf %544, %547 : vector<8x256xf32>
    %549 = arith.addf %539, %548 : vector<8x256xf32>
    %c223_i32_220 = arith.constant 223 : i32
    %550 = tpu.dynamic_rotate %309 by %c223_i32_220 dim 1 : vector<8x256xf32>, i32 -> vector<8x256xf32>
    %551 = arith.andi %11, %17 : vector<1x256xi1>
    %cst_221 = arith.constant 0.000000e+00 : f32
    %552 = vector.shape_cast %551 : vector<1x256xi1> to vector<1x256xi1>
    %553 = vector.broadcast %552 : vector<1x256xi1> to vector<8x256xi1>
    %554 = vector.broadcast %cst_221 : f32 to vector<8x256xf32>
    %555 = arith.select %553, %550, %554 : vector<8x256xi1>, vector<8x256xf32>
    %c23_222 = arith.constant 23 : index
    %c0_223 = arith.constant 0 : index
    %c0_224 = arith.constant 0 : index
    %556 = vector.load %arg11[%c23_222, %c0_223, %c0_224] : memref<25x8x1xf32, #tpu.memory_space<vmem>>, vector<1x8x1xf32>
    %557 = vector.shape_cast %556 : vector<1x8x1xf32> to vector<8x1xf32>
    %558 = vector.broadcast %557 : vector<8x1xf32> to vector<8x256xf32>
    %559 = arith.mulf %555, %558 : vector<8x256xf32>
    %560 = arith.addf %549, %559 : vector<8x256xf32>
    %c222_i32_225 = arith.constant 222 : i32
    %561 = tpu.dynamic_rotate %309 by %c222_i32_225 dim 1 : vector<8x256xf32>, i32 -> vector<8x256xf32>
    %562 = arith.andi %11, %19 : vector<1x256xi1>
    %cst_226 = arith.constant 0.000000e+00 : f32
    %563 = vector.shape_cast %562 : vector<1x256xi1> to vector<1x256xi1>
    %564 = vector.broadcast %563 : vector<1x256xi1> to vector<8x256xi1>
    %565 = vector.broadcast %cst_226 : f32 to vector<8x256xf32>
    %566 = arith.select %564, %561, %565 : vector<8x256xi1>, vector<8x256xf32>
    %c24_227 = arith.constant 24 : index
    %c0_228 = arith.constant 0 : index
    %c0_229 = arith.constant 0 : index
    %567 = vector.load %arg11[%c24_227, %c0_228, %c0_229] : memref<25x8x1xf32, #tpu.memory_space<vmem>>, vector<1x8x1xf32>
    %568 = vector.shape_cast %567 : vector<1x8x1xf32> to vector<8x1xf32>
    %569 = vector.broadcast %568 : vector<8x1xf32> to vector<8x256xf32>
    %570 = arith.mulf %566, %569 : vector<8x256xf32>
    %571 = arith.addf %560, %570 : vector<8x256xf32>
    %c0_230 = arith.constant 0 : index
    %c0_231 = arith.constant 0 : index
    %572 = vector.load %arg12[%c0_230, %c0_231] : memref<8x1xf32, #tpu.memory_space<vmem>>, vector<8x1xf32>
    %573 = vector.broadcast %572 : vector<8x1xf32> to vector<8x256xf32>
    %574 = arith.addf %571, %573 : vector<8x256xf32>
    %575 = vector.extract_strided_slice %1 {offsets = [0, 0], sizes = [8, 256], strides = [1, 1]} : vector<16x256xf32> to vector<8x256xf32>
    %576 = arith.addf %309, %575 : vector<8x256xf32>
    %c0_232 = arith.constant 0 : index
    %c0_233 = arith.constant 0 : index
    %c0_234 = arith.constant 0 : index
    %577 = vector.load %arg13[%c0_232, %c0_233, %c0_234] : memref<1x16x256xf32, #tpu.memory_space<vmem>>, vector<1x8x256xf32>
    %578 = vector.shape_cast %577 : vector<1x8x256xf32> to vector<8x256xf32>
    %579 = vector.shape_cast %576 : vector<8x256xf32> to vector<1x8x256xf32>
    tpu.vector_store %arg13[%c0_232, %c0_233, %c0_234], %579 {strides = array<i32>} : memref<1x16x256xf32, #tpu.memory_space<vmem>>, vector<1x8x256xf32>,
    %580 = vector.extract_strided_slice %1 {offsets = [8, 0], sizes = [8, 256], strides = [1, 1]} : vector<16x256xf32> to vector<8x256xf32>
    %581 = arith.addf %574, %580 : vector<8x256xf32>
    %c0_235 = arith.constant 0 : index
    %c8_236 = arith.constant 8 : index
    %c0_237 = arith.constant 0 : index
    %582 = vector.load %arg13[%c0_235, %c8_236, %c0_237] : memref<1x16x256xf32, #tpu.memory_space<vmem>>, vector<1x8x256xf32>
    %583 = vector.shape_cast %582 : vector<1x8x256xf32> to vector<8x256xf32>
    %584 = vector.shape_cast %581 : vector<8x256xf32> to vector<1x8x256xf32>
    tpu.vector_store %arg13[%c0_235, %c8_236, %c0_237], %584 {strides = array<i32>} : memref<1x16x256xf32, #tpu.memory_space<vmem>>, vector<1x8x256xf32>,
    return
  }
  func.func @transform_0(%arg0: i32) -> (i32, i32, i32) {
    %c0_i32 = arith.constant 0 : i32
    %c0_i32_0 = arith.constant 0 : i32
    %c0_i32_1 = arith.constant 0 : i32
    return %arg0, %c0_i32, %c0_i32_0 : i32, i32, i32
  }
  func.func @transform_1(%arg0: i32) -> (i32, i32) {
    %c0_i32 = arith.constant 0 : i32
    %c0_i32_0 = arith.constant 0 : i32
    %c0_i32_1 = arith.constant 0 : i32
    return %c0_i32, %c0_i32_0 : i32, i32
  }
  func.func @transform_2(%arg0: i32) -> (i32, i32) {
    %c0_i32 = arith.constant 0 : i32
    %c0_i32_0 = arith.constant 0 : i32
    %c0_i32_1 = arith.constant 0 : i32
    return %c0_i32, %c0_i32_0 : i32, i32
  }
  func.func @transform_3(%arg0: i32) -> (i32, i32) {
    %c0_i32 = arith.constant 0 : i32
    %c0_i32_0 = arith.constant 0 : i32
    %c0_i32_1 = arith.constant 0 : i32
    return %c0_i32, %c0_i32_0 : i32, i32
  }
  func.func @transform_4(%arg0: i32) -> (i32, i32) {
    %c0_i32 = arith.constant 0 : i32
    %c0_i32_0 = arith.constant 0 : i32
    %c0_i32_1 = arith.constant 0 : i32
    return %c0_i32, %c0_i32_0 : i32, i32
  }
  func.func @transform_5(%arg0: i32) -> (i32, i32, i32) {
    %c0_i32 = arith.constant 0 : i32
    %c0_i32_0 = arith.constant 0 : i32
    %c0_i32_1 = arith.constant 0 : i32
    %c0_i32_2 = arith.constant 0 : i32
    return %c0_i32, %c0_i32_0, %c0_i32_1 : i32, i32, i32
  }
  func.func @transform_6(%arg0: i32) -> (i32, i32) {
    %c0_i32 = arith.constant 0 : i32
    %c0_i32_0 = arith.constant 0 : i32
    %c0_i32_1 = arith.constant 0 : i32
    return %c0_i32, %c0_i32_0 : i32, i32
  }
  func.func @transform_7(%arg0: i32) -> (i32, i32) {
    %c0_i32 = arith.constant 0 : i32
    %c0_i32_0 = arith.constant 0 : i32
    %c0_i32_1 = arith.constant 0 : i32
    return %c0_i32, %c0_i32_0 : i32, i32
  }
  func.func @transform_8(%arg0: i32) -> (i32, i32) {
    %c0_i32 = arith.constant 0 : i32
    %c0_i32_0 = arith.constant 0 : i32
    %c0_i32_1 = arith.constant 0 : i32
    return %c0_i32, %c0_i32_0 : i32, i32
  }
  func.func @transform_9(%arg0: i32) -> (i32, i32) {
    %c0_i32 = arith.constant 0 : i32
    %c0_i32_0 = arith.constant 0 : i32
    %c0_i32_1 = arith.constant 0 : i32
    return %c0_i32, %c0_i32_0 : i32, i32
  }
  func.func @transform_10(%arg0: i32) -> (i32, i32, i32) {
    %c0_i32 = arith.constant 0 : i32
    %c0_i32_0 = arith.constant 0 : i32
    %c0_i32_1 = arith.constant 0 : i32
    %c0_i32_2 = arith.constant 0 : i32
    return %c0_i32, %c0_i32_0, %c0_i32_1 : i32, i32, i32
  }
  func.func @transform_11(%arg0: i32) -> (i32, i32) {
    %c0_i32 = arith.constant 0 : i32
    %c0_i32_0 = arith.constant 0 : i32
    %c0_i32_1 = arith.constant 0 : i32
    return %c0_i32, %c0_i32_0 : i32, i32
  }
  func.func @transform_12(%arg0: i32) -> (i32, i32, i32) {
    %c0_i32 = arith.constant 0 : i32
    %c0_i32_0 = arith.constant 0 : i32
    %c0_i32_1 = arith.constant 0 : i32
    return %arg0, %c0_i32, %c0_i32_0 : i32, i32, i32
  }
}

</mosaic_0001>

<bundles_post_ra>
// kernel: tpu_custom_call.1
= control target key start
LH: loop header
LB: loop body
LE: loop exit
PB: predicated region body
PF: predicated region fallthrough
CT: control target
= control target key end

     0   :  { %s4193_s0 = inlined_call_operand.vmem [shape: f32[2,16,256], index: 0, kind: input, shape index: {}]   ;;  %s4194_s1 = inlined_call_operand.vmem [shape: s32[1,256], index: 1, kind: input, shape index: {}]   ;;  %s4195_s2 = inlined_call_operand.vmem [shape: s32[1,256], index: 2, kind: input, shape index: {}]   ;;  %s4196_s3 = inlined_call_operand.vmem [shape: f32[4,16], index: 3, kind: input, shape index: {}]   ;;  %s4197_s4 = inlined_call_operand.vmem [shape: f32[4,1], index: 4, kind: input, shape index: {}]   ;;  %s4198_s5 = inlined_call_operand.vmem [shape: f32[25,4,1], index: 5, kind: input, shape index: {}]   ;;  %s4199_s6 = inlined_call_operand.vmem [shape: f32[4,1], index: 6, kind: input, shape index: {}]   ;;  %s4200_s7 = inlined_call_operand.vmem [shape: f32[8,4], index: 7, kind: input, shape index: {}]   ;;  %s4201_s8 = inlined_call_operand.vmem [shape: f32[8,4], index: 8, kind: input, shape index: {}]   ;;  %s4202_s9 = inlined_call_operand.vmem [shape: f32[8,1], index: 9, kind: input, shape index: {}]   ;;  %s4203_s10 = inlined_call_operand.vmem [shape: f32[25,8,1], index: 10, kind: input, shape index: {}]   ;;  %s4204_s11 = inlined_call_operand.vmem [shape: f32[8,1], index: 11, kind: input, shape index: {}]   ;;  %s4205_s12 = inlined_call_operand.hbm [shape: f32[2,16,256], index: 12, kind: output, shape index: {}]  }
   0x1   :  { %4393 = sst [smem:[#allocation61_spill]] %s4193_s0 }
   0x2   :  { %4394 = sst [smem:[#allocation62_spill]] %s4196_s3 }
   0x3   :  { %4395 = sst [smem:[#allocation63_spill]] %s4197_s4 }
   0x4   :  { %4396 = sst [smem:[#allocation64_spill]] %s4198_s5 }
   0x5   :  { %4397 = sst [smem:[#allocation65_spill]] %s4199_s6 }
   0x6   :  { %4398 = sst [smem:[#allocation66_spill]] %s4202_s9 }
   0x7   :  { %4399 = sst [smem:[#allocation67_spill]] %s4204_s11 }
   0x8   :  { %4400 = sst [smem:[#allocation68_spill]] %s4205_s12 }
   0x9   :  { %17 = vsyncpa [#allocation3], 0 }
   0xa   :  { %19 = vsyncpa [#allocation3 + $0x1], 0  ;;  %s2370_s21 = smov 0   ;;  %s2372_s22 = smov 0  }
   0xb   :  { %s2374_s23 = smov 0   ;;  %s2376_s24 = smov 0  }
   0xc LB: > { %4401 = sst [smem:[#allocation5_spill]] %s2263_s21  ;;  %s2391_s25 = sadd.s32 4294967295, %s2275_s24   ;;  %s2275_s24 = sphi %s2376_s24, %s4870_s24   ;;  %s2271_s23 = sphi %s2374_s23, %s4872_s23   ;;  %s2267_s22 = sphi %s2372_s22, %s4874_s22   ;;  %s2263_s21 = sphi %s2370_s21, %s4873_s21  }
   0xd   : > { %4402 = sst [smem:[#allocation6_spill]] %s2271_s23  ;;  %s2046_s26 = sadd.s32 4294967294, %s2275_s24  }
   0xe   : > { %4403 = sst [smem:[#allocation7_spill]] %s2275_s24  ;;  %s2395_s27 = sadd.s32 1, %s2275_s24  }
   0xf   : > { %4404 = sst [smem:[#allocation8_spill]] %s2391_s25  ;;  %s289_s28 = sadd.s32 1, %s2271_s23 }
  0x10   : > { %4405 = sst [smem:[#allocation9_spill]] %s2395_s27  ;;  %s286_s29 = ssub.s32 %s2275_s24, %s2395_s27 }
  0x11   : > { %p299_p0 = scmp.ne.s32.totalorder %s2271_s23, %s2267_s22  ;;  %p287_p1 = scmp.eq.s32.totalorder %s286_s29, 0 }
  0x12   : > { %p300_p2 = scmp.eq.s32.totalorder %s2391_s25, 1  ;;  %p305_p3 = scmp.ne.s32.totalorder %s2267_s22, %s2263_s21 }
  0x13   : > { %p306_p4 = scmp.eq.s32.totalorder %s2046_s26, 1  ;;  %p2049_p7 = scmp.ge.s32.totalorder %s2275_s24, 1 }
  0x14   : > { %s2406_s30 = scalar_select %p287_p1, %s2271_s23, %s289_s28  }
  0x15   : > { %p2408_p5 = por %p300_p2, %p299_p0  ;;  %p2412_p6 = por %p306_p4, %p305_p3 }
  0x16   : > { %4406 = sst [smem:[#allocation10_spill]] %s2406_s30  ;;  %p365_p8 = scmp.lt.s32.totalorder %s2275_s24, 3 }
  0x17   : > { %s4407_s13 = scalar_select %p2408_p5, 1, 0 }
  0x18   : > { %s4409_s14 = scalar_select %p2412_p6, 1, 0 }
  0x19   : > { %4408 = sst [smem:[#allocation11_spill]] %s4407_s13  ;;  %p366_p9 = pnand %p2049_p7, %p365_p8 }
  0x1a   : > { %4410 = sst [smem:[#allocation12_spill]] %s4409_s14 }
  0x1b   : > { %369 = sbr.rel (%p366_p9) target bundleno = 1048 (0x418), region = 68 }
  0x22   : > { %p407_p10 = scmp.lt.s32.totalorder %s2391_s25, 1  ;;  %v4264_v0 = vmov 0.0   ;;  %v4265_v1 = vmov 0   ;;  %s4411_s4 = sld [smem:[#allocation63_spill]]  ;;  %vm433_vm0 = vcmask 130048  }
  0x23   : > { %501 = vmatprep.mubr.f32.mxu0 %v4264_v0  ;;  %2191 = vset.pattern.permute.xlu0 %v4265_v1  ;;  %s4412_s5 = sld [smem:[#allocation64_spill]]  ;;  %s4413_s0 = sld [smem:[#allocation61_spill]] }
  0x24   : > { %s408_s17 = scalar_select %p407_p10, %s2391_s25, 1  ;;  %2192 = vset.pattern.permute.xlu1 %v4265_v1  ;;  %1393 = vmatprep.mubr.f32.mxu1 %v4264_v0 }
  0x25   : > { %s4414_s3 = sld [smem:[#allocation62_spill]]  ;;  %s4232_s18 = smov 34  }
  0x26   : > { %s2117_s20 = sshll.u32 %s408_s17, 5  ;;  %s4238_s17 = smov 32  }
  0x27   : > { %s4208_s19 = smov 30   ;;  %s4206_s26 = smov 17  }
  0x28   : > { %v427_v2 = vld [vmem:[%s4411_s4] sm:$0xf]  ;;  %s4242_s28 = smov 31   ;;  %s4212_s15 = smov 18  }
  0x29   : > { %430 = vperm.xlu0 %2191, %v427_v2   ;;  %v545_v3 = vld [vmem:[%s4412_s5] sm:$0xf]  ;;  %s2433_s29 = scalar_lea.vmem %s4413_s0, %s2117_s20  ;;  %v2058_v9 = vld [vmem:[%s4412_s5 + $0xc] sm:$0xf]  ;;  %v2056_v10 = vld [vmem:[%s4412_s5 + $0x4] sm:$0xf] }
  0x2a   : > { %v413_v4 = vld [vmem:[%s2433_s29 + $0x8] sm:$0xff]  ;;  %v415_v5 = vld [vmem:[%s2433_s29 + $0x18] sm:$0xff]  ;;  %v412_v6 = vld [vmem:[%s2433_s29] sm:$0xff]  ;;  %580 = vperm.xlu1 %2192, %v2056_v10   ;;  %s4240_s20 = smov 33   ;;  %s4210_s0 = smov 15  }
  0x2b   : > { %v2119_v7 = vpack.c.bf16 %v415_v5, %v413_v4  ;;  %v414_v8 = vld [vmem:[%s2433_s29 + $0x10] sm:$0xff]  ;;  %v2057_v12 = vld [vmem:[%s4412_s5 + $0x8] sm:$0xf]  ;;  %v426_v13 = vld [vmem:[%s4414_s3] sm:$0xf]  ;;  %s4214_s3 = smov 2  }
  0x2c   : > { %v2121_v11 = vpack.c.bf16 %v414_v8, %v412_v6  ;;  %v2060_v14 = vld [vmem:[%s4412_s5 + $0x14] sm:$0xf]  ;;  %v2059_v15 = vld [vmem:[%s4412_s5 + $0x10] sm:$0xf]  ;;  %v2062_v16 = vld [vmem:[%s4412_s5 + $0x1c] sm:$0xf] }
  0x2d   : > { %548 = vperm.xlu0 %2191, %v545_v3   ;;  %2120 = vmatprep.subr.bf16.mxu0 %v2119_v7  ;;  %v2061_v17 = vld [vmem:[%s4412_s5 + $0x18] sm:$0xf]  ;;  %v2064_v18 = vld [vmem:[%s4412_s5 + $0x24] sm:$0xf]  ;;  %v2063_v19 = vld [vmem:[%s4412_s5 + $0x20] sm:$0xf] }
  0x2e   : > { %2122 = vmatpush1.bf16.msra.mxu0 %v2121_v11  ;;  %611 = vperm.xlu1 %2192, %v2057_v12   ;;  %v2066_v20 = vld [vmem:[%s4412_s5 + $0x2c] sm:$0xf]  ;;  %v2065_v21 = vld [vmem:[%s4412_s5 + $0x28] sm:$0xf]  ;;  %v2068_v22 = vld [vmem:[%s4412_s5 + $0x34] sm:$0xf] }
  0x2f   : > { %v2067_v23 = vld [vmem:[%s4412_s5 + $0x30] sm:$0xf]  ;;  %v2070_v24 = vld [vmem:[%s4412_s5 + $0x3c] sm:$0xf]  ;;  %v2069_v25 = vld [vmem:[%s4412_s5 + $0x38] sm:$0xf] }
  0x30   : > { %v2072_v26 = vld [vmem:[%s4412_s5 + $0x44] sm:$0xf]  ;;  %v2071_v27 = vld [vmem:[%s4412_s5 + $0x40] sm:$0xf]  ;;  %v2074_v28 = vld [vmem:[%s4412_s5 + $0x4c] sm:$0xf] }
  0x31   : > { %643 = vperm.xlu0 %2191, %v2058_v9   ;;  %2053 = vmatmul.mubr.msk.f32.vlgmr.msra.gmra.mrb[0].mxu0 %vm433_vm0, %v426_v13  ;;  %v2073_v29 = vld [vmem:[%s4412_s5 + $0x48] sm:$0xf]  ;;  %v2076_v30 = vld [vmem:[%s4412_s5 + $0x54] sm:$0xf]  ;;  %v2075_v31 = vld [vmem:[%s4412_s5 + $0x50] sm:$0xf] }
  0x32   : > { %675 = vperm.xlu1 %2192, %v2059_v15   ;;  %v2078_v32 = vld [vmem:[%s4412_s5 + $0x5c] sm:$0xf]  ;;  %v2077_v33 = vld [vmem:[%s4412_s5 + $0x58] sm:$0xf]  ;;  %v2079_v34 = vld [vmem:[%s4412_s5 + $0x60] sm:$0xf] }
  0x33   : > { %s4216_s16 = smov 16   ;;  %s4426_s4 = smov 113   ;;  %v1496_v9 = vld [vmem:[%s4203_s10] sm:$0xff]  ;;  %v2088_v10 = vld [vmem:[%s4203_s10 + $0x8] sm:$0xff]  ;;  %v2089_v13 = vld [vmem:[%s4203_s10 + $0x10] sm:$0xff] }
  0x34   : > { %s4428_s5 = smov 114   ;;  %s4429_s30 = smov 111  }
  0x35   : > { %707 = vperm.xlu0 %2191, %v2060_v14   ;;  %s4432_s23 = smov 112   ;;  %s4434_s27 = smov 110   ;;  %v2090_v14 = vld [vmem:[%s4203_s10 + $0x18] sm:$0xff] }
  0x36   : > { %739 = vperm.xlu1 %2192, %v2061_v17   ;;  %s4435_s14 = smov 96   ;;  %s4438_s21 = smov 97   ;;  %v2091_v17 = vld [vmem:[%s4203_s10 + $0x20] sm:$0xff] }
  0x37   : > { %s4439_s24 = smov 95   ;;  %s4440_s6 = sld [smem:[#allocation65_spill]] }
  0x38   : > { %s4262_s25 = smov 94   ;;  %s4443_s9 = sld [smem:[#allocation66_spill]] }
  0x39   : > { %770 = vperm.xlu0 %2191, %v2062_v16   ;;  %s404_s12 = sand.u32 1, %s2267_s22   ;;  %s4699_s11 = smov 33  }
  0x3a   : > { %802 = vperm.xlu1 %2192, %v2063_v19   ;;  %v2093_v19 = vld [vmem:[%s4203_s10 + $0x30] sm:$0xff]  ;;  %s2050_s13 = sshll.u32 %s404_s12, 5 }
  0x3d   : > { %834 = vperm.xlu0 %2191, %v2064_v18   ;;  %v1294_v5 = vld [vmem:[%s4440_s6] sm:$0xf]  ;;  %v2092_v18 = vld [vmem:[%s4203_s10 + $0x28] sm:$0xff]  ;;  %s4702_s6 = smov 32  }
  0x3e   : > { %865 = vperm.xlu1 %2192, %v2065_v21   ;;  %v1480_v8 = vld [vmem:[%s4443_s9] sm:$0xff]  ;;  %s3679_s9 = scalar_lea.vmem [#allocation2], %s2050_s13  ;;  %s4704_s13 = smov 96  }
  0x41   : > { %896 = vperm.xlu0 %2191, %v2066_v20   ;;  %v2094_v20 = vld [vmem:[%s4203_s10 + $0x38] sm:$0xff] }
  0x42   : > { %907 = vperm.xlu1 %2192, %v2067_v23   ;;  %v2095_v23 = vld [vmem:[%s4203_s10 + $0x40] sm:$0xff] }
  0x45   : > { %938 = vperm.xlu0 %2191, %v2068_v22  }
  0x46   : > { %969 = vperm.xlu1 %2192, %v2069_v25  }
  0x49   : > { %1001 = vperm.xlu0 %2191, %v2070_v24   ;;  %v2096_v24 = vld [vmem:[%s4203_s10 + $0x48] sm:$0xff] }
  0x4a   : > { %1033 = vperm.xlu1 %2192, %v2071_v27   ;;  %v2097_v27 = vld [vmem:[%s4203_s10 + $0x50] sm:$0xff] }
  0x4d   : > { %1064 = vperm.xlu0 %2191, %v2072_v26  }
  0x4e   : > { %1096 = vperm.xlu1 %2192, %v2073_v29  }
  0x51   : > { %1128 = vperm.xlu0 %2191, %v2074_v28   ;;  %v2098_v28 = vld [vmem:[%s4203_s10 + $0x58] sm:$0xff] }
  0x52   : > { %1160 = vperm.xlu1 %2192, %v2075_v31   ;;  %v2099_v31 = vld [vmem:[%s4203_s10 + $0x60] sm:$0xff] }
  0x55   : > { %1192 = vperm.xlu0 %2191, %v2076_v30  }
  0x56   : > { %1223 = vperm.xlu1 %2192, %v2077_v33  }
  0x59   : > { %1255 = vperm.xlu0 %2191, %v2078_v32   ;;  %v2100_v32 = vld [vmem:[%s4203_s10 + $0x68] sm:$0xff] }
  0x5a   : > { %1287 = vperm.xlu1 %2192, %v2079_v34  }
  0xa8   : > { %v431_v35 = vpop.permute.xlu0 %430 }
  0xa9   : > { %v2556_v49 = vpop.permute.xlu1 %580 }
  0xac   : > { %v2564_v51 = vpop.permute.xlu0 %548 }
  0xad   : > { %v2570_v52 = vpop.permute.xlu1 %611 }
  0xb0   : > { %v2576_v53 = vpop.permute.xlu0 %643 }
  0xb1   : > { %v2578_v54 = vpop.permute.xlu1 %675 }
  0xb4   : > { %v2584_v55 = vpop.permute.xlu0 %707 }
  0xb5   : > { %v2590_v56 = vpop.permute.xlu1 %739 }
  0xb8   : > { %v2596_v57 = vpop.permute.xlu0 %770 }
  0xb9   : > { %v2598_v58 = vpop.permute.xlu1 %802 }
  0xbc   : > { %v2604_v59 = vpop.permute.xlu0 %834 }
  0xbd   : > { %v2610_v60 = vpop.permute.xlu1 %865 }
  0xc0   : > { %v2616_v61 = vpop.permute.xlu0 %896 }
  0xc1   : > { %4427 = vst [vmem:[#allocation15_spill] sm:$0xff] %v2616_v61  ;;  %v2618_v62 = vpop.permute.xlu1 %907  ;;  %v4505_v61 = vmov 0 }
  0xc4   : > { %v2624_v63 = vpop.permute.xlu0 %938 }
  0xc5   : > { %4430 = vst [vmem:[#allocation16_spill] sm:$0xff] %v2624_v63  ;;  %v2626_v2 = vpop.permute.xlu1 %969  ;;  %v4507_v63 = vmov 0 }
  0xc6   : > { %4431 = vst [vmem:[#allocation17_spill] sm:$0xff] %v2626_v2 }
  0xc8   : > { %v2636_v3 = vpop.permute.xlu0 %1001 }
  0xc9   : > { %4436 = vst [vmem:[#allocation18_spill] sm:$0xff] %v2636_v3  ;;  %v2638_v4 = vpop.permute.xlu1 %1033 }
  0xca   : > { %4437 = vst [vmem:[#allocation19_spill] sm:$0xff] %v2638_v4 }
  0xcc   : > { %v2647_v6 = vpop.permute.xlu0 %1064 }
  0xcd   : > { %4441 = vst [vmem:[#allocation20_spill] sm:$0xff] %v2647_v6  ;;  %v2649_v7 = vpop.permute.xlu1 %1096 }
  0xce   : > { %4442 = vst [vmem:[#allocation21_spill] sm:$0xff] %v2649_v7 }
  0xd0   : > { %v2664_v11 = vpop.permute.xlu0 %1128 }
  0xd1   : > { %4444 = vst [vmem:[#allocation22_spill] sm:$0xff] %v2664_v11  ;;  %v2666_v12 = vpop.permute.xlu1 %1160  ;;  %v4485_v11 = vmov 0 }
  0xd2   : > { %4445 = vst [vmem:[#allocation23_spill] sm:$0xff] %v2666_v12  ;;  %v4483_v12 = vmov 0 }
  0xd4   : > { %v2674_v15 = vpop.permute.xlu0 %1192 }
  0xd5   : > { %4446 = vst [vmem:[#allocation24_spill] sm:$0xff] %v2674_v15  ;;  %v2676_v16 = vpop.permute.xlu1 %1223 }
  0xd6   : > { %4447 = vst [vmem:[#allocation25_spill] sm:$0xff] %v2676_v16 }
  0xd8   : > { %v2690_v21 = vpop.permute.xlu0 %1255 }
  0xd9   : > { %4448 = vst [vmem:[#allocation26_spill] sm:$0xff] %v2690_v21  ;;  %v2692_v22 = vpop.permute.xlu1 %1287 }
  0xda   : > { %4449 = vst [vmem:[#allocation27_spill] sm:$0xff] %v2692_v22  ;;  %v4465_v22 = vmov 0  }
 0x104   : > { %v503_v36 = vpop.f32.mrb[0].mxu0 }
 0x105   : > { %v504_v37 = vadd.f32 %v503_v36, %v431_v35  ;;  %v505_v38 = vpop.f32.mrb[1].mxu0  ;;  %v2102_v36 = vld [vmem:[%s4203_s10 + $0x78] sm:$0xff] }
 0x106   : > { %v506_v44 = vadd.f32 %v505_v38, %v431_v35  ;;  %v2101_v35 = vld [vmem:[%s4203_s10 + $0x70] sm:$0xff] }
 0x107   : > { %v2054_v39 = vmul.f32 -1.442695, %v504_v37 }
 0x108   : > { %v2055_v45 = vmul.f32 -1.442695, %v506_v44 }
 0x109   : > { %2193 = vpow2.f32 %v2054_v39  ;;  %v2103_v39 = vld [vmem:[%s4203_s10 + $0x80] sm:$0xff] }
 0x113   : > { %v2194_v40 = vpop.eup %2193 }
 0x114   : > { %v514_v41 = vadd.f32 1.0, %v2194_v40  ;;  %v2104_v40 = vld [vmem:[%s4203_s10 + $0x88] sm:$0xff] }
 0x116   : > { %2195 = vrcp.f32 %v514_v41 }
 0x117   : > { %2197 = vpow2.f32 %v2055_v45  ;;  %v2106_v45 = vld [vmem:[%s4203_s10 + $0x98] sm:$0xff] }
 0x120   : > { %v2196_v42 = vpop.eup %2195 }
 0x121   : > { %v2514_v43 = vmul.f32 %v2196_v42, %v504_v37  ;;  %v2198_v46 = vpop.eup %2197 }
 0x122   : > { %v515_v47 = vadd.f32 1.0, %v2198_v46 }
 0x123   : > { %4415 = vst [vmem:[#allocation13_spill] sm:$0xff] %v2514_v43  ;;  %587 = vrot.lane.b32.xlu0 %v2514_v43, %s4238_s17  ;;  %522 = vrot.lane.b32.xlu1 %v2514_v43, %s4232_s18 }
 0x124   : > { %2199 = vrcp.f32 %v515_v47 }
 0x127   : > { %650 = vrot.lane.b32.xlu0 %v2514_v43, %s4208_s19  ;;  %555 = vrot.lane.b32.xlu1 %v2514_v43, %s4240_s20  ;;  %s4220_s19 = smov 14  }
 0x12b   : > { %714 = vrot.lane.b32.xlu0 %v2514_v43, %s4206_s26  ;;  %618 = vrot.lane.b32.xlu1 %v2514_v43, %s4242_s28  ;;  %s4218_s26 = smov 126  }
 0x12e   : > { %v2200_v48 = vpop.eup %2199 }
 0x12f   : > { %777 = vrot.lane.b32.xlu0 %v2514_v43, %s4210_s0  ;;  %682 = vrot.lane.b32.xlu1 %v2514_v43, %s4212_s15  ;;  %s4222_s0 = smov 113   ;;  %s4224_s15 = smov 1   ;;  %v2562_v50 = vmul.f32 %v2200_v48, %v506_v44  ;;  %v2105_v44 = vld [vmem:[%s4203_s10 + $0x90] sm:$0xff]  ;;  %v2757_v48 = vld [vmem:[%s4194_s1] sm:$0x3] }
 0x130   : > { %vm418_vm1 = vcmp.ge.s32.totalorder %v2757_v48, 2  ;;  %vm419_vm8 = vcmp.ge.s32.totalorder %v2757_v48, 1  ;;  %vm4300_vm0 = vcmp.lt.s32.totalorder %v2757_v48, 15 }
 0x131   : > { %4416 = vst [vmem:[#allocation14_spill] sm:$0xff] %v2562_v50  ;;  %v2871_v21 = vmul.f32 %v2618_v62, %v2562_v50 }
 0x133   : > { %841 = vrot.lane.b32.xlu0 %v2514_v43, %s4214_s3  ;;  %746 = vrot.lane.b32.xlu1 %v2514_v43, %s4216_s16  ;;  %s4226_s3 = smov 111   ;;  %s4251_s16 = smov 127   ;;  %4468 = vst [vmem:[#allocation35_spill] sm:$0xff] %v2871_v21  ;;  %v4496_v21 = vmov 0 }
 0x137   : > { %945 = vrot.lane.b32.xlu0 %v2514_v43, %s4218_s26  ;;  %809 = vrot.lane.b32.xlu1 %v2514_v43, %s4220_s19  ;;  %s4228_s26 = smov 98   ;;  %s4248_s19 = smov 114  }
 0x13b   : > { %1008 = vrot.lane.b32.xlu0 %v2514_v43, %s4222_s0  ;;  %872 = vrot.lane.b32.xlu1 %v2514_v43, %s4224_s15  ;;  %s4230_s0 = smov 96   ;;  %s4246_s15 = smov 112  }
 0x13f   : > { %1071 = vrot.lane.b32.xlu0 %v2514_v43, %s4226_s3  ;;  %914 = vrot.lane.b32.xlu1 %v2514_v43, %s4251_s16  ;;  %s4234_s3 = smov 95  }
 0x143   : > { %1135 = vrot.lane.b32.xlu0 %v2514_v43, %s4228_s26  ;;  %976 = vrot.lane.b32.xlu1 %v2514_v43, %s4248_s19  ;;  %s4244_s26 = smov 110   ;;  %s4425_s19 = smov 126  }
 0x147   : > { %1199 = vrot.lane.b32.xlu0 %v2514_v43, %s4230_s0  ;;  %1040 = vrot.lane.b32.xlu1 %v2514_v43, %s4246_s15  ;;  %s4236_s0 = smov 97   ;;  %s4424_s15 = smov 1  }
 0x14b   : > { %1230 = vrot.lane.b32.xlu0 %v2514_v43, %s4234_s3  ;;  %1103 = vrot.lane.b32.xlu1 %v2514_v43, %s4244_s26  ;;  %s4418_s3 = smov 18   ;;  %s4423_s26 = smov 2  }
 0x14f   : > { %524 = vrot.lane.b32.xlu0 %v2562_v50, %s4232_s18  ;;  %1167 = vrot.lane.b32.xlu1 %v2514_v43, %s4236_s0  ;;  %s4417_s18 = smov 30   ;;  %s4419_s0 = smov 17  }
 0x153   : > { %557 = vrot.lane.b32.xlu0 %v2562_v50, %s4240_s20  ;;  %589 = vrot.lane.b32.xlu1 %v2562_v50, %s4238_s17  ;;  %s4420_s17 = smov 16   ;;  %s4421_s20 = smov 15  }
 0x157   : > { %620 = vrot.lane.b32.xlu0 %v2562_v50, %s4242_s28  ;;  %652 = vrot.lane.b32.xlu1 %v2562_v50, %s4417_s18  ;;  %s4422_s28 = smov 14  }
 0x15b   : > { %684 = vrot.lane.b32.xlu0 %v2562_v50, %s4418_s3  ;;  %716 = vrot.lane.b32.xlu1 %v2562_v50, %s4419_s0 }
 0x15f   : > { %748 = vrot.lane.b32.xlu0 %v2562_v50, %s4420_s17  ;;  %779 = vrot.lane.b32.xlu1 %v2562_v50, %s4421_s20 }
 0x163   : > { %811 = vrot.lane.b32.xlu0 %v2562_v50, %s4422_s28  ;;  %843 = vrot.lane.b32.xlu1 %v2562_v50, %s4423_s26 }
 0x167   : > { %874 = vrot.lane.b32.xlu0 %v2562_v50, %s4424_s15  ;;  %947 = vrot.lane.b32.xlu1 %v2562_v50, %s4425_s19 }
 0x16b   : > { %916 = vrot.lane.b32.xlu0 %v2562_v50, %s4251_s16  ;;  %1010 = vrot.lane.b32.xlu1 %v2562_v50, %s4426_s4  ;;  %s4433_s16 = smov 98  }
 0x16f   : > { %978 = vrot.lane.b32.xlu0 %v2562_v50, %s4428_s5  ;;  %1073 = vrot.lane.b32.xlu1 %v2562_v50, %s4429_s30 }
 0x173   : > { %1042 = vrot.lane.b32.xlu0 %v2562_v50, %s4432_s23  ;;  %1137 = vrot.lane.b32.xlu1 %v2562_v50, %s4433_s16 }
 0x177   : > { %1105 = vrot.lane.b32.xlu0 %v2562_v50, %s4434_s27  ;;  %1201 = vrot.lane.b32.xlu1 %v2562_v50, %s4435_s14  ;;  %s4700_s14 = smov 34  }
 0x17b   : > { %1169 = vrot.lane.b32.xlu0 %v2562_v50, %s4438_s21  ;;  %1232 = vrot.lane.b32.xlu1 %v2562_v50, %s4439_s24  ;;  %s4703_s24 = smov 127  }
 0x17f   : > { %1297 = vperm.xlu0 %2191, %v1294_v5   ;;  %1262 = vrot.lane.b32.xlu1 %v2514_v43, %s4262_s25  ;;  %v2762_v5 = vld [vmem:[%s4195_s2] sm:$0x3] }
 0x180   : > { %vm4284_vm2 = vcmp.ge.s32.totalorder %v2762_v5, 2  ;;  %vm4287_vm3 = vcmp.ge.s32.totalorder %v2762_v5, 1  ;;  %vm4291_vm6 = vcmp.lt.s32.totalorder %v2762_v5, 15  ;;  %vm4297_vm7 = vcmp.lt.s32.totalorder %v2762_v5, 14 }
 0x181   : > { %vm531_vm4 = vmand %vm418_vm1, %vm4284_vm2  ;;  %v2966_v6 = vsel %vm4284_vm2, 1, %v4465_v22 }
 0x182   : > { %vm562_vm5 = vmand %vm418_vm1, %vm4287_vm3 }
 0x183   : > { %1264 = vrot.lane.b32.xlu0 %v2562_v50, %s4262_s25  ;;  %1483 = vperm.xlu1 %2192, %v1480_v8   ;;  %v526_v8 = vlaneseq  ;;  %vm2811_vm9 = vmand %vm418_vm1, %vm4291_vm6  ;;  %v4476_v50 = vmov 0  ;;  %s4701_s25 = smov 31  }
 0x184   : > { %vm2828_vm10 = vmand %vm418_vm1, %vm4297_vm7 }
 0x185   : > { %vm2838_vm11 = vmand %vm419_vm8, %vm4284_vm2 }
 0x186   : > { %vm2851_vm12 = vmand %vm419_vm8, %vm4287_vm3 }
 0x187   : > { %1499 = vperm.xlu0 %2191, %v1496_v9   ;;  %1518 = vperm.xlu1 %2192, %v2088_v10   ;;  %v2107_v9 = vld [vmem:[%s4203_s10 + $0xa0] sm:$0xff]  ;;  %v2108_v10 = vld [vmem:[%s4203_s10 + $0xa8] sm:$0xff]  ;;  %vm2865_vm13 = vmand %vm419_vm8, %vm4291_vm6  ;;  %v2906_v15 = vsel %vm2851_vm12, 1, %v4465_v22 }
 0x188   : > { %vm2885_vm15 = vmand %vm419_vm8, %vm4297_vm7 }
 0x18b   : > { %1537 = vperm.xlu0 %2191, %v2089_v13   ;;  %1556 = vperm.xlu1 %2192, %v2090_v14  }
 0x18f   : > { %1575 = vperm.xlu0 %2191, %v2091_v17   ;;  %1594 = vperm.xlu1 %2192, %v2092_v18   ;;  %v534_v17 = vshrl.u32 %v526_v8, 7  ;;  %v2109_v18 = vld [vmem:[%s4203_s10 + $0xb0] sm:$0xff] }
 0x193   : > { %1613 = vperm.xlu0 %2191, %v2093_v19   ;;  %1632 = vperm.xlu1 %2192, %v2094_v20   ;;  %v2110_v19 = vld [vmem:[%s4203_s10 + $0xb8] sm:$0xff] }
 0x195   : > { %v2700_v25 = vpop.permute.xlu0 %587  ;;  %v2702_v26 = vpop.permute.xlu1 %522 }
 0x197   : > { %1651 = vperm.xlu0 %2191, %v2095_v23   ;;  %1670 = vperm.xlu1 %2192, %v2096_v24   ;;  %v2796_v24 = vsub.s32 0, %v534_v17 }
 0x199   : > { %v2710_v29 = vpop.permute.xlu0 %650  ;;  %v2712_v30 = vpop.permute.xlu1 %555  ;;  %v726_v7 = vrot.slane %v2906_v15, %v2796_v24 }
 0x19b   : > { %1689 = vperm.xlu0 %2191, %v2097_v27   ;;  %1708 = vperm.xlu1 %2192, %v2098_v28   ;;  %v2798_v27 = vsub.s32 1, %v534_v17  ;;  %v532_v28 = vsel %vm531_vm4, 1, %v4265_v1  ;;  %v2844_v17 = vmul.f32 %v2618_v62, %v2514_v43  ;;  %v4473_v62 = vmov 0 }
 0x19d   : > { %v2720_v33 = vpop.permute.xlu0 %714  ;;  %v2722_v34 = vpop.permute.xlu1 %618  ;;  %4462 = vst [vmem:[#allocation34_spill] sm:$0xff] %v2844_v17  ;;  %v4498_v17 = vmov 0 }
 0x19f   : > { %1719 = vperm.xlu0 %2191, %v2099_v31   ;;  %1738 = vperm.xlu1 %2192, %v2100_v32   ;;  %v2111_v31 = vld [vmem:[%s4203_s10 + $0xc0] sm:$0xff]  ;;  %v563_v32 = vsel %vm562_vm5, 1, %v4265_v1 }
 0x1a1   : > { %v2730_v37 = vpop.permute.xlu0 %777  ;;  %v2732_v38 = vpop.permute.xlu1 %682 }
 0x1a3   : > { %1757 = vperm.xlu0 %2191, %v2101_v35   ;;  %1776 = vperm.xlu1 %2192, %v2102_v36   ;;  %v658_v35 = vsel %vm2828_vm10, 1, %v4465_v22 }
 0x1a5   : > { %v2740_v41 = vpop.permute.xlu0 %841  ;;  %v2742_v42 = vpop.permute.xlu1 %746 }
 0x1a7   : > { %1795 = vperm.xlu0 %2191, %v2103_v39   ;;  %1814 = vperm.xlu1 %2192, %v2104_v40   ;;  %v2819_v40 = vand.u32 127, %v526_v8  ;;  %v4479_v8 = vmov 0 }
 0x1a9   : > { %v2750_v46 = vpop.permute.xlu0 %945  ;;  %v2752_v47 = vpop.permute.xlu1 %809  ;;  %vm4295_vm14 = vcmp.lt.s32.totalorder %v2819_v40, 34 }
 0x1aa   : > { %4450 = vst [vmem:[#allocation28_spill] sm:$0xff] %v2750_v46 }
 0x1ab   : > { %1833 = vperm.xlu0 %2191, %v2105_v44   ;;  %1852 = vperm.xlu1 %2192, %v2106_v45   ;;  %v594_v44 = vsel %vm418_vm1, 1, %v4265_v1  ;;  %v2901_v45 = vsel %vm2838_vm11, 1, %v4465_v22 }
 0x1ac   : > { %v598_v0 = vrot.slane %v594_v44, %v2796_v24  ;;  %v602_v1 = vrot.slane %v594_v44, %v2798_v27  ;;  %v694_v43 = vrot.slane %v2901_v45, %v2796_v24  ;;  %v698_v44 = vrot.slane %v2901_v45, %v2798_v27 }
 0x1ad   : > { %v2770_v13 = vpop.permute.xlu0 %1008  ;;  %v2772_v14 = vpop.permute.xlu1 %872 }
 0x1ae   : > { %4451 = vst [vmem:[#allocation29_spill] sm:$0xff] %v2770_v13  ;;  %vm2925_vm12 = vcmp.eq.s32.totalorder %v598_v0, 1  ;;  %v2943_v0 = vsel %vm2885_vm15, 1, %v4465_v22  ;;  %vm2991_vm15 = vmand %vm4300_vm0, %vm4291_vm6 }
 0x1af   : > { %1871 = vperm.xlu0 %2191, %v2107_v9   ;;  %1890 = vperm.xlu1 %2192, %v2108_v10   ;;  %v536_v9 = vrot.slane %v532_v28, %v2796_v24  ;;  %v540_v10 = vrot.slane %v532_v28, %v2798_v27  ;;  %v571_v28 = vrot.slane %v563_v32, %v2798_v27  ;;  %v4484_v12 = vsel %vm2925_vm12, 4294967295, %v4483_v12 }
 0x1b1   : > { %v2787_v20 = vpop.permute.xlu0 %1071  ;;  %v2789_v23 = vpop.permute.xlu1 %914  ;;  %vm2890_vm1 = vcmp.eq.s32.totalorder %v536_v9, 1  ;;  %vm2894_vm4 = vcmp.eq.s32.totalorder %v540_v10, 1  ;;  %vm2921_vm11 = vcmp.eq.s32.totalorder %v571_v28, 1 }
 0x1b2   : > { %4452 = vst [vmem:[#allocation30_spill] sm:$0xff] %v2787_v20  ;;  %4453 = vst [vmem:[#allocation31_spill] sm:$0xff] %v2789_v23  ;;  %v4474_v62 = vsel %vm2890_vm1, 4294967295, %v4473_v62  ;;  %v4477_v50 = vsel %vm2894_vm4, 4294967295, %v4476_v50  ;;  %v4513_v23 = vmov 0 }
 0x1b3   : > { %1909 = vperm.xlu0 %2191, %v2109_v18   ;;  %1928 = vperm.xlu1 %2192, %v2110_v19   ;;  %v567_v18 = vrot.slane %v563_v32, %v2796_v24  ;;  %4475 = vst [vmem:[#allocation38_spill] sm:$0xff] %v4474_v62  ;;  %4478 = vst [vmem:[#allocation39_spill] sm:$0xff] %v4477_v50  ;;  %v4481_v19 = vmov 0 }
 0x1b4   : > { %v4482_v19 = vsel %vm2921_vm11, 4294967295, %v4481_v19 }
 0x1b5   : > { %v2815_v36 = vpop.permute.xlu0 %1135  ;;  %v2817_v39 = vpop.permute.xlu1 %976  ;;  %vm2917_vm10 = vcmp.eq.s32.totalorder %v567_v18, 1  ;;  %v2938_v18 = vsel %vm2865_vm13, 1, %v4465_v22  ;;  %vm2972_vm13 = vmand %vm4300_vm0, %vm4284_vm2 }
 0x1b6   : > { %4456 = vst [vmem:[#allocation32_spill] sm:$0xff] %v2815_v36  ;;  %4457 = vst [vmem:[#allocation33_spill] sm:$0xff] %v2817_v39  ;;  %v4480_v8 = vsel %vm2917_vm10, 4294967295, %v4479_v8  ;;  %v666_v36 = vrot.slane %v658_v35, %v2798_v27  ;;  %v3005_v39 = vsel %vm4297_vm7, 1, %v4465_v22  ;;  %v3039_v3 = vsel %vm2972_vm13, 1, %v4465_v22 }
 0x1b7   : > { %1947 = vperm.xlu0 %2191, %v2111_v31   ;;  %v626_v31 = vsel %vm2811_vm9, 1, %v4465_v22  ;;  %vm2929_vm9 = vcmp.eq.s32.totalorder %v602_v1, 1  ;;  %v3044_v1 = vsel %vm2991_vm15, 1, %v4465_v22  ;;  %vm3090_vm7 = vcmp.eq.s32.totalorder %v698_v44, 1 }
 0x1b8   : > { %v630_v9 = vrot.slane %v626_v31, %v2796_v24  ;;  %v634_v10 = vrot.slane %v626_v31, %v2798_v27  ;;  %v4486_v11 = vsel %vm2929_vm9, 4294967295, %v4485_v11  ;;  %v662_v31 = vrot.slane %v658_v35, %v2796_v24 }
 0x1b9   : > { %v2873_v32 = vpop.permute.xlu0 %1199  ;;  %v2875_v16 = vpop.permute.xlu1 %1040  ;;  %4487 = vst [vmem:[#allocation40_spill] sm:$0xff] %v4486_v11  ;;  %v4508_v63 = vsel %vm3090_vm7, 4294967295, %v4507_v63  ;;  %vm4509_vm13 = vcmp.lt.s32.totalorder %v2819_v40, 33 }
 0x1ba   : > { %4469 = vst [vmem:[#allocation36_spill] sm:$0xff] %v2873_v32  ;;  %4470 = vst [vmem:[#allocation37_spill] sm:$0xff] %v2875_v16  ;;  %v2915_v32 = vsel %vm419_vm8, 1, %v4465_v22  ;;  %v2985_v16 = vsel %vm4287_vm3, 1, %v4465_v22  ;;  %vm3011_vm5 = vcmp.eq.s32.totalorder %v634_v10, 1 }
 0x1bb   : > { %vm2949_vm8 = vmand %vm4300_vm0, %vm4287_vm3  ;;  %v757_v45 = vrot.slane %v2915_v32, %v2796_v24  ;;  %v761_v20 = vrot.slane %v2915_v32, %v2798_v27  ;;  %vm3007_vm3 = vcmp.eq.s32.totalorder %v630_v9, 1  ;;  %v4499_v17 = vsel %vm3011_vm5, 4294967295, %v4498_v17 }
 0x1bc   : > { %v4497_v21 = vsel %vm3007_vm3, 4294967295, %v4496_v21  ;;  %v3028_v9 = vsel %vm2949_vm8, 1, %v4465_v22  ;;  %vm3052_vm8 = vcmp.eq.s32.totalorder %v662_v31, 1  ;;  %v4501_v32 = vmov 0  ;;  %vm4510_vm2 = vmmov %vm4509_vm13 }
 0x1bd   : > { %v2953_v28 = vpop.permute.xlu0 %1230  ;;  %v2955_v35 = vpop.permute.xlu1 %1103  ;;  %v4502_v32 = vsel %vm3052_vm8, 4294967295, %v4501_v32 }
 0x1be   : > { %4490 = vst [vmem:[#allocation41_spill] sm:$0xff] %v2953_v28  ;;  %4491 = vst [vmem:[#allocation42_spill] sm:$0xff] %v2955_v35  ;;  %v730_v35 = vrot.slane %v2906_v15, %v2798_v27  ;;  %v3023_v15 = vsel %vm4291_vm6, 1, %v4465_v22  ;;  %vm3056_vm6 = vcmp.eq.s32.totalorder %v666_v36, 1  ;;  %v4503_v28 = vmov 0 }
 0x1bf   : > { %v4504_v28 = vsel %vm3056_vm6, 4294967295, %v4503_v28 }
 0x1c0   : > { %vm3116_vm15 = vcmp.eq.s32.totalorder %v730_v35, 1 }
 0x1c1   : > { %v525_v10 = vpop.permute.xlu0 %524  ;;  %v3030_v2 = vpop.permute.xlu1 %1167 }
 0x1c2   : > { %4500 = vst [vmem:[#allocation43_spill] sm:$0xff] %v3030_v2  ;;  %v529_v2 = vsel %vm4295_vm14, %v2702_v26, %v525_v10  ;;  %v530_v13 = vsel %vm4295_vm14, %v525_v10, %v2702_v26  ;;  %vm3086_vm14 = vcmp.eq.s32.totalorder %v694_v43, 1  ;;  %v3097_v26 = vsel %vm4300_vm0, 1, %v4465_v22 }
 0x1c3   : > { %v543_v31 = vsel %vm2890_vm1, %v530_v13, 0.0  ;;  %v544_v36 = vsel %vm2894_vm4, %v529_v2, 0.0  ;;  %v4506_v61 = vsel %vm3086_vm14, 4294967295, %v4505_v61  ;;  %vm4511_vm4 = vcmp.lt.s32.totalorder %v2819_v40, 32 }
 0x1c4   : > { %vm4512_vm1 = vmmov %vm4511_vm4  ;;  %vm3112_vm0 = vcmp.eq.s32.totalorder %v726_v7, 1  ;;  %v4515_v10 = vmov 0  ;;  %v551_v7 = vmul.f32 %v2564_v51, %v543_v31 }
 0x1c5   : > { %v558_v4 = vpop.permute.xlu0 %557  ;;  %v590_v46 = vpop.permute.xlu1 %589  ;;  %v4514_v23 = vsel %vm3112_vm0, 4294967295, %v4513_v23  ;;  %v4516_v10 = vsel %vm3116_vm15, 4294967295, %v4515_v10 }
 0x1c6   : > { %v560_v2 = vsel %vm4509_vm13, %v2712_v30, %v558_v4  ;;  %v561_v13 = vsel %vm4510_vm2, %v558_v4, %v2712_v30  ;;  %v592_v43 = vsel %vm4511_vm4, %v2700_v25, %v590_v46  ;;  %v593_v44 = vsel %vm4512_vm1, %v590_v46, %v2700_v25 }
 0x1c7   : > { %v574_v50 = vsel %vm2917_vm10, %v561_v13, 0.0  ;;  %v575_v30 = vsel %vm2921_vm11, %v560_v2, 0.0  ;;  %v605_v4 = vsel %vm2925_vm12, %v593_v44, 0.0  ;;  %v606_v25 = vsel %vm2929_vm9, %v592_v43, 0.0 }
 0x1c8   : > { %v552_v46 = vmul.f32 %v2564_v51, %v544_v36  ;;  %v583_v35 = vmul.f32 %v2556_v49, %v574_v50  ;;  %v584_v62 = vmul.f32 %v2556_v49, %v575_v30  ;;  %vm3133_vm1 = vcmp.eq.s32.totalorder %v757_v45, 1 }
 0x1c9   : > { %v4517_v13 = vmov 0  ;;  %vm3137_vm4 = vcmp.eq.s32.totalorder %v761_v20, 1  ;;  %v4519_v2 = vmov 0  ;;  %v614_v43 = vmul.f32 %v2570_v52, %v605_v4  ;;  %v621_v11 = vpop.permute.xlu0 %620  ;;  %v653_v31 = vpop.permute.xlu1 %652 }
 0x1ca   : > { %v4518_v13 = vsel %vm3133_vm1, 4294967295, %v4517_v13  ;;  %v4520_v2 = vsel %vm3137_vm4, 4294967295, %v4519_v2  ;;  %v615_v44 = vmul.f32 %v2570_v52, %v606_v25  ;;  %v1051_v49 = vrot.slane %v3097_v26, %v2796_v24 }
 0x1cb   : > { %v585_v51 = vadd.f32 %v583_v35, %v551_v7  ;;  %v586_v45 = vadd.f32 %v584_v62, %v552_v46  ;;  %vm4521_vm2 = vcmp.lt.s32.totalorder %v2819_v40, 31  ;;  %v4523_v36 = vrot.slane %v2938_v18, %v2796_v24 }
 0x1cc   : > { %v623_v20 = vsel %vm4521_vm2, %v2722_v34, %v621_v11  ;;  %vm4522_vm9 = vmmov %vm4521_vm2  ;;  %v4524_v30 = vmov 0  ;;  %v4526_v4 = vrot.slane %v2938_v18, %v2798_v27  ;;  %v4527_v62 = vmov 0 }
 0x1cd   : > { %v624_v52 = vsel %vm4522_vm9, %v621_v11, %v2722_v34  ;;  %vm3157_vm13 = vcmp.eq.s32.totalorder %v4523_v36, 1  ;;  %vm4529_vm2 = vcmp.ge.s32.totalorder %v2762_v5, 2  ;;  %vm4530_vm11 = vcmp.lt.s32.totalorder %v2757_v48, 14 }
 0x1ce   : > { %v4525_v30 = vsel %vm3157_vm13, 4294967295, %v4524_v30  ;;  %vm3164_vm12 = vcmp.eq.s32.totalorder %v4526_v4, 1  ;;  %vm3172_vm10 = vmand %vm4530_vm11, %vm4529_vm2  ;;  %v637_v34 = vsel %vm3007_vm3, %v624_v52, 0.0  ;;  %v638_v25 = vsel %vm3011_vm5, %v623_v20, 0.0 }
 0x1cf   : > { %v4528_v62 = vsel %vm3164_vm12, 4294967295, %v4527_v62  ;;  %vm4533_vm9 = vcmp.lt.s32.totalorder %v2819_v40, 30  ;;  %v616_v46 = vadd.f32 %v614_v43, %v585_v51  ;;  %v617_v35 = vadd.f32 %v615_v44, %v586_v45  ;;  %v685_v44 = vpop.permute.xlu0 %684 }
 0x1d0   : > { %v655_v18 = vsel %vm4533_vm9, %v2710_v29, %v653_v31  ;;  %vm4534_vm12 = vmmov %vm4533_vm9  ;;  %v646_v36 = vmul.f32 %v2576_v53, %v637_v34  ;;  %v647_v4 = vmul.f32 %v2576_v53, %v638_v25  ;;  %v4535_v52 = vrot.slane %v2943_v0, %v2796_v24 }
 0x1d1   : > { %v656_v7 = vsel %vm4534_vm12, %v653_v31, %v2710_v29  ;;  %v4536_v20 = vmov 0  ;;  %v4538_v50 = vrot.slane %v2943_v0, %v2798_v27  ;;  %v4539_v29 = vmov 0  ;;  %v717_v31 = vpop.permute.xlu1 %716 }
 0x1d2   : > { %vm3192_vm11 = vcmp.eq.s32.totalorder %v4535_v52, 1  ;;  %v669_v43 = vsel %vm3052_vm8, %v656_v7, 0.0  ;;  %v670_v53 = vsel %vm3056_vm6, %v655_v18, 0.0  ;;  %v1055_v51 = vrot.slane %v3097_v26, %v2798_v27 }
 0x1d3   : > { %v4537_v20 = vsel %vm3192_vm11, 4294967295, %v4536_v20  ;;  %vm3199_vm2 = vcmp.eq.s32.totalorder %v4538_v50, 1  ;;  %v3213_v0 = vsel %vm3172_vm10, 1, %v4465_v22  ;;  %v648_v50 = vadd.f32 %v646_v36, %v616_v46 }
 0x1d4   : > { %v4540_v29 = vsel %vm3199_vm2, 4294967295, %v4539_v29  ;;  %v649_v45 = vadd.f32 %v647_v4, %v617_v35  ;;  %v678_v34 = vmul.f32 %v2578_v54, %v669_v43  ;;  %v679_v25 = vmul.f32 %v2578_v54, %v670_v53 }
 0x1d5   : > { %v4541_v18 = vrot.slane %v2966_v6, %v2796_v24  ;;  %v4542_v7 = vmov 0  ;;  %v4544_v52 = vrot.slane %v2966_v6, %v2798_v27  ;;  %vm4547_vm10 = vcmp.lt.s32.totalorder %v2819_v40, 18 }
 0x1d6   : > { %v687_v46 = vsel %vm4547_vm10, %v2732_v38, %v685_v44  ;;  %vm4548_vm13 = vmmov %vm4547_vm10  ;;  %vm4549_vm6 = vcmp.lt.s32.totalorder %v2819_v40, 17  ;;  %v680_v36 = vadd.f32 %v678_v34, %v648_v50  ;;  %v681_v4 = vadd.f32 %v679_v25, %v649_v45 }
 0x1d7   : > { %vm3220_vm9 = vcmp.eq.s32.totalorder %v4541_v18, 1  ;;  %vm3227_vm12 = vcmp.eq.s32.totalorder %v4544_v52, 1  ;;  %v688_v54 = vsel %vm4548_vm13, %v685_v44, %v2732_v38  ;;  %v719_v35 = vsel %vm4549_vm6, %v2720_v33, %v717_v31  ;;  %vm4550_vm8 = vmmov %vm4549_vm6  ;;  %v749_v18 = vpop.permute.xlu0 %748  ;;  %v780_v52 = vpop.permute.xlu1 %779 }
 0x1d8   : > { %v4543_v7 = vsel %vm3220_vm9, 4294967295, %v4542_v7  ;;  %v720_v6 = vsel %vm4550_vm8, %v717_v31, %v2720_v33  ;;  %v701_v43 = vsel %vm3086_vm14, %v688_v54, 0.0  ;;  %v702_v53 = vsel %vm3090_vm7, %v687_v46, 0.0 }
 0x1d9   : > { %v4551_v38 = vrot.slane %v2985_v16, %v2796_v24  ;;  %v4554_v33 = vrot.slane %v2985_v16, %v2798_v27  ;;  %v710_v50 = vmul.f32 %v2584_v55, %v701_v43  ;;  %v711_v45 = vmul.f32 %v2584_v55, %v702_v53 }
 0x1da   : > { %v733_v34 = vsel %vm3112_vm0, %v720_v6, 0.0  ;;  %v734_v25 = vsel %vm3116_vm15, %v719_v35, 0.0  ;;  %vm4557_vm10 = vcmp.lt.s32.totalorder %v2819_v40, 16  ;;  %vm4567_vm15 = vcmp.lt.s32.totalorder %v2819_v40, 15 }
 0x1db   : > { %vm3251_vm13 = vcmp.eq.s32.totalorder %v4551_v38, 1  ;;  %vm3258_vm6 = vcmp.eq.s32.totalorder %v4554_v33, 1  ;;  %v742_v16 = vmul.f32 %v2590_v56, %v733_v34  ;;  %v743_v46 = vmul.f32 %v2590_v56, %v734_v25  ;;  %vm4558_vm5 = vmmov %vm4557_vm10 }
 0x1dc   : > { %v751_v54 = vsel %vm4557_vm10, %v2742_v42, %v749_v18  ;;  %v752_v55 = vsel %vm4558_vm5, %v749_v18, %v2742_v42  ;;  %v712_v6 = vadd.f32 %v710_v50, %v680_v36  ;;  %v713_v43 = vadd.f32 %v711_v45, %v681_v4  ;;  %vm4568_vm0 = vmmov %vm4567_vm15 }
 0x1dd   : > { %v764_v35 = vsel %vm3133_vm1, %v752_v55, 0.0  ;;  %v765_v53 = vsel %vm3137_vm4, %v751_v54, 0.0  ;;  %v4559_v38 = vrot.slane %v3005_v39, %v2796_v24  ;;  %v4560_v56 = vmov 0 }
 0x1de   : > { %v4563_v33 = vrot.slane %v3005_v39, %v2798_v27  ;;  %v4564_v42 = vmov 0  ;;  %v773_v36 = vmul.f32 %v2596_v57, %v764_v35  ;;  %v774_v4 = vmul.f32 %v2596_v57, %v765_v53  ;;  %v844_v35 = vpop.permute.xlu1 %843 }
 0x1df   : > { %vm3284_vm8 = vcmp.eq.s32.totalorder %v4559_v38, 1  ;;  %v782_v50 = vsel %vm4567_vm15, %v2730_v37, %v780_v52  ;;  %v783_v45 = vsel %vm4568_vm0, %v780_v52, %v2730_v37  ;;  %v4569_v39 = vrot.slane %v3023_v15, %v2796_v24  ;;  %v812_v52 = vpop.permute.xlu0 %811 }
 0x1e0   : > { %v4561_v56 = vsel %vm3284_vm8, 4294967295, %v4560_v56  ;;  %vm3291_vm10 = vcmp.eq.s32.totalorder %v4563_v33, 1  ;;  %v4572_v25 = vrot.slane %v3023_v15, %v2798_v27  ;;  %v744_v18 = vadd.f32 %v742_v16, %v712_v6 }
 0x1e1   : > { %4562 = vst [vmem:[#allocation44_spill] sm:$0xff] %v4561_v56  ;;  %v4565_v42 = vsel %vm3291_vm10, 4294967295, %v4564_v42  ;;  %vm3307_vm4 = vcmp.eq.s32.totalorder %v4569_v39, 1  ;;  %v745_v54 = vadd.f32 %v743_v46, %v713_v43  ;;  %vm4575_vm15 = vnez %v4525_v30 }
 0x1e2   : > { %4566 = vst [vmem:[#allocation45_spill] sm:$0xff] %v4565_v42  ;;  %vm3314_vm5 = vcmp.eq.s32.totalorder %v4572_v25, 1  ;;  %v796_v55 = vsel %vm4575_vm15, %v783_v45, 0.0  ;;  %vm4576_vm0 = vnez %v4528_v62  ;;  %vm4577_vm7 = vcmp.lt.s32.totalorder %v2819_v40, 14 }
 0x1e3   : > { %v797_v37 = vsel %vm4576_vm0, %v782_v50, 0.0  ;;  %v805_v53 = vmul.f32 %v2598_v58, %v796_v55  ;;  %v814_v38 = vsel %vm4577_vm7, %v2752_v47, %v812_v52  ;;  %vm4578_vm14 = vmmov %vm4577_vm7  ;;  %v775_v46 = vadd.f32 %v773_v36, %v744_v18 }
 0x1e4   : > { %v806_v15 = vmul.f32 %v2598_v58, %v797_v37  ;;  %v815_v16 = vsel %vm4578_vm14, %v812_v52, %v2752_v47  ;;  %v776_v6 = vadd.f32 %v774_v4, %v745_v54  ;;  %v829_v33 = vsel %vm3199_vm2, %v814_v38, 0.0  ;;  %v948_v38 = vpop.permute.xlu1 %947 }
 0x1e5   : > { %v828_v43 = vsel %vm3192_vm11, %v815_v16, 0.0  ;;  %v4579_v50 = vrot.slane %v3028_v9, %v2796_v24  ;;  %v4580_v58 = vmov 0  ;;  %v4583_v45 = vrot.slane %v3028_v9, %v2798_v27 }
 0x1e6   : > { %v4584_v47 = vmov 0  ;;  %v837_v36 = vmul.f32 %v2604_v59, %v828_v43  ;;  %v838_v4 = vmul.f32 %v2604_v59, %v829_v33  ;;  %vm4587_vm0 = vcmp.lt.s32.totalorder %v2819_v40, 2  ;;  %v4601_v33 = vld [vmem:[#allocation15_spill] sm:$0xff] }
 0x1e7   : > { %vm3338_vm1 = vcmp.eq.s32.totalorder %v4579_v50, 1  ;;  %vm3345_vm7 = vcmp.eq.s32.totalorder %v4583_v45, 1  ;;  %v846_v39 = vsel %vm4587_vm0, %v2740_v41, %v844_v35  ;;  %vm4588_vm15 = vmmov %vm4587_vm0  ;;  %v4589_v9 = vrot.slane %v3039_v3, %v2796_v24 }
 0x1e8   : > { %v4581_v58 = vsel %vm3338_vm1, 4294967295, %v4580_v58  ;;  %v4585_v47 = vsel %vm3345_vm7, 4294967295, %v4584_v47  ;;  %v847_v25 = vsel %vm4588_vm15, %v844_v35, %v2740_v41  ;;  %v4590_v18 = vmov 0  ;;  %v875_v35 = vpop.permute.xlu0 %874 }
 0x1e9   : > { %4582 = vst [vmem:[#allocation46_spill] sm:$0xff] %v4581_v58  ;;  %4586 = vst [vmem:[#allocation47_spill] sm:$0xff] %v4585_v47  ;;  %vm3361_vm2 = vcmp.eq.s32.totalorder %v4589_v9, 1  ;;  %v4593_v54 = vrot.slane %v3039_v3, %v2798_v27  ;;  %v4594_v59 = vmov 0  ;;  %v807_v55 = vadd.f32 %v805_v53, %v775_v46 }
 0x1ea   : > { %v4591_v18 = vsel %vm3361_vm2, 4294967295, %v4590_v18  ;;  %v808_v37 = vadd.f32 %v806_v15, %v776_v6  ;;  %v859_v52 = vsel %vm3220_vm9, %v847_v25, 0.0  ;;  %v860_v41 = vsel %vm3227_vm12, %v846_v39, 0.0  ;;  %v4602_v39 = vld [vmem:[#allocation28_spill] sm:$0xff] }
 0x1eb   : > { %4592 = vst [vmem:[#allocation48_spill] sm:$0xff] %v4591_v18  ;;  %vm3368_vm14 = vcmp.eq.s32.totalorder %v4593_v54, 1  ;;  %v868_v16 = vmul.f32 %v2610_v60, %v859_v52  ;;  %v869_v43 = vmul.f32 %v2610_v60, %v860_v41  ;;  %vm4597_vm15 = vcmp.lt.s32.totalorder %v2819_v40, 1  ;;  %v1011_v54 = vpop.permute.xlu1 %1010  ;;  %v4605_v41 = vld [vmem:[#allocation31_spill] sm:$0xff] }
 0x1ec   : > { %v4595_v59 = vsel %vm3368_vm14, 4294967295, %v4594_v59  ;;  %v877_v3 = vsel %vm4597_vm15, %v2772_v14, %v875_v35  ;;  %vm4598_vm0 = vmmov %vm4597_vm15  ;;  %vm4599_vm11 = vcmp.lt.s32.totalorder %v2762_v5, 14  ;;  %vm4600_vm9 = vcmp.lt.s32.totalorder %v2757_v48, 15  ;;  %v917_v9 = vpop.permute.xlu0 %916 }
 0x1ed   : > { %4596 = vst [vmem:[#allocation49_spill] sm:$0xff] %v4595_v59  ;;  %v878_v53 = vsel %vm4598_vm0, %v875_v35, %v2772_v14  ;;  %vm1110_vm3 = vmand %vm4600_vm9, %vm4599_vm11  ;;  %v839_v15 = vadd.f32 %v837_v36, %v807_v55  ;;  %v840_v46 = vadd.f32 %v838_v4, %v808_v37  ;;  %v891_v60 = vsel %vm3258_vm6, %v877_v3, 0.0 }
 0x1ee   : > { %v890_v6 = vsel %vm3251_vm13, %v878_v53, 0.0  ;;  %v900_v45 = vmul.f32 %v4601_v33, %v891_v60  ;;  %vm4603_vm15 = vcmp.lt.s32.totalorder %v2819_v40, 126  ;;  %vm4324_vm9 = vcmp.lt.s32.totalorder %v2819_v40, 112  ;;  %v4609_v60 = vld [vmem:[#allocation29_spill] sm:$0xff] }
 0x1ef   : > { %v899_v50 = vmul.f32 %v4601_v33, %v890_v6  ;;  %v950_v14 = vsel %vm4603_vm15, %v4602_v39, %v948_v38  ;;  %vm4604_vm0 = vmmov %vm4603_vm15  ;;  %v870_v36 = vadd.f32 %v868_v16, %v839_v15  ;;  %v871_v4 = vadd.f32 %v869_v43, %v840_v46  ;;  %v4608_v15 = vld [vmem:[#allocation16_spill] sm:$0xff] }
 0x1f0   : > { %v951_v25 = vsel %vm4604_vm0, %v948_v38, %v4602_v39  ;;  %v1111_v55 = vsel %vm1110_vm3, 1, %v4465_v22  ;;  %v963_v37 = vsel %vm3284_vm8, %v950_v14, 0.0  ;;  %vm4606_vm15 = vcmp.lt.s32.totalorder %v2819_v40, 127 }
 0x1f1   : > { %v964_v52 = vsel %vm3291_vm10, %v951_v25, 0.0  ;;  %v919_v35 = vsel %vm4606_vm15, %v4605_v41, %v917_v9  ;;  %vm4607_vm0 = vmmov %vm4606_vm15  ;;  %v901_v16 = vadd.f32 %v899_v50, %v870_v36  ;;  %v902_v43 = vadd.f32 %v900_v45, %v871_v4  ;;  %v4612_v50 = vld [vmem:[#allocation17_spill] sm:$0xff]  ;;  %v4613_v25 = vld [vmem:[#allocation34_spill] sm:$0xff] }
 0x1f2   : > { %v920_v38 = vsel %vm4607_vm0, %v917_v9, %v4605_v41  ;;  %v932_v3 = vsel %vm3307_vm4, %v919_v35, 0.0  ;;  %vm4610_vm3 = vcmp.lt.s32.totalorder %v2819_v40, 113  ;;  %v972_v45 = vmul.f32 %v4612_v50, %v963_v37  ;;  %v4614_v4 = vld [vmem:[#allocation35_spill] sm:$0xff]  ;;  %v979_v41 = vpop.permute.xlu0 %978  ;;  %v4619_v37 = vld [vmem:[#allocation33_spill] sm:$0xff] }
 0x1f3   : > { %v933_v53 = vsel %vm3314_vm5, %v920_v38, 0.0  ;;  %v941_v46 = vmul.f32 %v4608_v15, %v932_v3  ;;  %v1013_v33 = vsel %vm4610_vm3, %v4609_v60, %v1011_v54  ;;  %vm4611_vm15 = vmmov %vm4610_vm3  ;;  %v973_v14 = vmul.f32 %v4612_v50, %v964_v52 }
 0x1f4   : > { %v942_v6 = vmul.f32 %v4608_v15, %v933_v53  ;;  %v1014_v39 = vsel %vm4611_vm15, %v1011_v54, %v4609_v60  ;;  %v912_v36 = vadd.f32 %v4613_v25, %v901_v16  ;;  %v913_v9 = vadd.f32 %v4614_v4, %v902_v43  ;;  %v1074_v4 = vpop.permute.xlu1 %1073 }
 0x1f5   : > { %v4615_v35 = vrot.slane %v3044_v1, %v2796_v24  ;;  %v4616_v38 = vmov 0  ;;  %v1027_v3 = vsel %vm3338_vm1, %v1013_v33, 0.0  ;;  %v1028_v54 = vsel %vm3345_vm7, %v1014_v39, 0.0  ;;  %v4622_v33 = vld [vmem:[#allocation18_spill] sm:$0xff] }
 0x1f6   : > { %vm4620_vm3 = vcmp.lt.s32.totalorder %v2819_v40, 114  ;;  %v943_v43 = vadd.f32 %v941_v46, %v912_v36  ;;  %v944_v53 = vadd.f32 %v942_v6, %v913_v9  ;;  %v4623_v25 = vmov 0  ;;  %v1043_v9 = vpop.permute.xlu0 %1042 }
 0x1f7   : > { %vm3432_vm0 = vcmp.eq.s32.totalorder %v4615_v35, 1  ;;  %v981_v52 = vsel %vm4620_vm3, %v4619_v37, %v979_v41  ;;  %vm4621_vm15 = vmmov %vm4620_vm3  ;;  %vm3455_vm3 = vcmp.eq.s32.totalorder %v1051_v49, 1  ;;  %v4626_v46 = vmov 0 }
 0x1f8   : > { %v4617_v38 = vsel %vm3432_vm0, 4294967295, %v4616_v38  ;;  %v982_v16 = vsel %vm4621_vm15, %v979_v41, %v4619_v37  ;;  %v995_v15 = vsel %vm3361_vm2, %v981_v52, 0.0  ;;  %v4624_v25 = vsel %vm3455_vm3, 4294967295, %v4623_v25  ;;  %v4629_v37 = vld [vmem:[#allocation19_spill] sm:$0xff] }
 0x1f9   : > { %4618 = vst [vmem:[#allocation15_spill] sm:$0xff] %v4617_v38  ;;  %v996_v60 = vsel %vm3368_vm14, %v982_v16, 0.0  ;;  %v1004_v50 = vmul.f32 %v4622_v33, %v995_v15  ;;  %4625 = vst [vmem:[#allocation28_spill] sm:$0xff] %v4624_v25  ;;  %vm3462_vm15 = vcmp.eq.s32.totalorder %v1055_v51, 1  ;;  %v974_v6 = vadd.f32 %v972_v45, %v943_v43  ;;  %v4630_v16 = vld [vmem:[#allocation37_spill] sm:$0xff] }
 0x1fa   : > { %v1005_v39 = vmul.f32 %v4622_v33, %v996_v60  ;;  %v4627_v46 = vsel %vm3462_vm15, 4294967295, %v4626_v46  ;;  %v975_v36 = vadd.f32 %v973_v14, %v944_v53  ;;  %v1115_v41 = vrot.slane %v1111_v55, %v2796_v24  ;;  %v4635_v53 = vld [vmem:[#allocation30_spill] sm:$0xff] }
 0x1fb   : > { %4628 = vst [vmem:[#allocation31_spill] sm:$0xff] %v4627_v46  ;;  %v1119_v35 = vrot.slane %v1111_v55, %v2798_v27  ;;  %v1036_v49 = vmul.f32 %v4629_v37, %v1027_v3  ;;  %v1037_v52 = vmul.f32 %v4629_v37, %v1028_v54  ;;  %v1045_v26 = vsel %vm4324_vm9, %v4630_v16, %v1043_v9 }
 0x1fc   : > { %v1046_v51 = vsel %vm4324_vm9, %v1043_v9, %v4630_v16  ;;  %v1006_v45 = vadd.f32 %v1004_v50, %v974_v6  ;;  %v1007_v14 = vadd.f32 %v1005_v39, %v975_v36  ;;  %v1058_v43 = vsel %vm3455_vm3, %v1045_v26, 0.0  ;;  %v4638_v39 = vld [vmem:[#allocation20_spill] sm:$0xff]  ;;  %v1106_v36 = vpop.permute.xlu0 %1105 }
 0x1fd   : > { %v1059_v55 = vsel %vm3462_vm15, %v1046_v51, 0.0  ;;  %v4631_v3 = vrot.slane %v3044_v1, %v2798_v27  ;;  %v4632_v54 = vmov 0  ;;  %vm4636_vm7 = vcmp.lt.s32.totalorder %v2819_v40, 111 }
 0x1fe   : > { %v1076_v15 = vsel %vm4636_vm7, %v4635_v53, %v1074_v4  ;;  %vm4637_vm9 = vmmov %vm4636_vm7  ;;  %vm4329_vm3 = vcmp.lt.s32.totalorder %v2819_v40, 110  ;;  %v1038_v33 = vadd.f32 %v1036_v49, %v1006_v45  ;;  %v1039_v50 = vadd.f32 %v1037_v52, %v1007_v14  ;;  %v4647_v49 = vld [vmem:[#allocation42_spill] sm:$0xff] }
 0x1ff   : > { %vm3483_vm11 = vcmp.eq.s32.totalorder %v4631_v3, 1  ;;  %v1077_v60 = vsel %vm4637_vm9, %v1074_v4, %v4635_v53  ;;  %v1067_v6 = vmul.f32 %v4638_v39, %v1058_v43  ;;  %v1068_v1 = vmul.f32 %v4638_v39, %v1059_v55  ;;  %v1138_v43 = vpop.permute.xlu1 %1137 }
 0x200   : > { %v4633_v54 = vsel %vm3483_vm11, 4294967295, %v4632_v54  ;;  %vm4639_vm15 = vcmp.ge.s32.totalorder %v2762_v5, 1  ;;  %vm4640_vm1 = vcmp.lt.s32.totalorder %v2757_v48, 14  ;;  %v1147_v9 = vrot.slane %v3213_v0, %v2796_v24 }
 0x201   : > { %4634 = vst [vmem:[#allocation16_spill] sm:$0xff] %v4633_v54  ;;  %vm1174_vm14 = vmand %vm4640_vm1, %vm4639_vm15  ;;  %vm3502_vm7 = vcmp.eq.s32.totalorder %v1115_v41, 1  ;;  %v4641_v37 = vmov 0  ;;  %vm3506_vm9 = vcmp.eq.s32.totalorder %v1119_v35, 1  ;;  %v4644_v4 = vmov 0 }
 0x202   : > { %v4642_v37 = vsel %vm3502_vm7, 4294967295, %v4641_v37  ;;  %v4645_v4 = vsel %vm3506_vm9, 4294967295, %v4644_v4  ;;  %v1108_v52 = vsel %vm4329_vm3, %v4647_v49, %v1106_v36  ;;  %v1109_v16 = vsel %vm4329_vm3, %v1106_v36, %v4647_v49  ;;  %v1170_v49 = vpop.permute.xlu0 %1169 }
 0x203   : > { %4643 = vst [vmem:[#allocation29_spill] sm:$0xff] %v4642_v37  ;;  %4646 = vst [vmem:[#allocation17_spill] sm:$0xff] %v4645_v4  ;;  %v1090_v26 = vsel %vm3432_vm0, %v1076_v15, 0.0  ;;  %v1091_v41 = vsel %vm3483_vm11, %v1077_v60, 0.0  ;;  %v1151_v35 = vrot.slane %v3213_v0, %v2798_v27  ;;  %v1175_v51 = vsel %vm1174_vm14, 1, %v4465_v22  ;;  %v4652_v15 = vld [vmem:[#allocation21_spill] sm:$0xff] }
 0x204   : > { %v1069_v45 = vadd.f32 %v1067_v6, %v1038_v33  ;;  %v1070_v14 = vadd.f32 %v1068_v1, %v1039_v50  ;;  %vm4334_vm1 = vcmp.lt.s32.totalorder %v2819_v40, 98  ;;  %vm3524_vm15 = vcmp.eq.s32.totalorder %v1147_v9, 1  ;;  %v4656_v1 = vld [vmem:[#allocation32_spill] sm:$0xff] }
 0x205   : > { %v4648_v55 = vmov 0  ;;  %v1122_v3 = vsel %vm3502_vm7, %v1108_v52, 0.0  ;;  %v1123_v53 = vsel %vm3506_vm9, %v1109_v16, 0.0  ;;  %vm4651_vm3 = vcmp.lt.s32.totalorder %v2757_v48, 14 }
 0x206   : > { %v4649_v55 = vsel %vm3524_vm15, 4294967295, %v4648_v55  ;;  %v1206_v0 = vsel %vm4651_vm3, 1, %v4465_v22  ;;  %v1099_v60 = vmul.f32 %v4652_v15, %v1090_v26  ;;  %v1100_v33 = vmul.f32 %v4652_v15, %v1091_v41  ;;  %v4657_v26 = vld [vmem:[#allocation22_spill] sm:$0xff] }
 0x207   : > { %4650 = vst [vmem:[#allocation34_spill] sm:$0xff] %v4649_v55  ;;  %v1179_v50 = vrot.slane %v1175_v51, %v2796_v24  ;;  %v1183_v39 = vrot.slane %v1175_v51, %v2798_v27  ;;  %vm3539_vm14 = vcmp.eq.s32.totalorder %v1151_v35, 1  ;;  %v4653_v6 = vmov 0 }
 0x208   : > { %v4654_v6 = vsel %vm3539_vm14, 4294967295, %v4653_v6  ;;  %v1140_v36 = vsel %vm4334_vm1, %v4656_v1, %v1138_v43  ;;  %v1141_v9 = vsel %vm4334_vm1, %v1138_v43, %v4656_v1  ;;  %vm4336_vm3 = vcmp.lt.s32.totalorder %v2819_v40, 97 }
 0x209   : > { %4655 = vst [vmem:[#allocation35_spill] sm:$0xff] %v4654_v6  ;;  %v1101_v52 = vadd.f32 %v1099_v60, %v1069_v45  ;;  %v1102_v16 = vadd.f32 %v1100_v33, %v1070_v14  ;;  %v1131_v41 = vmul.f32 %v4657_v26, %v1122_v3  ;;  %v1132_v35 = vmul.f32 %v4657_v26, %v1123_v53  ;;  %v4666_v45 = vld [vmem:[#allocation43_spill] sm:$0xff] }
 0x20a   : > { %vm4658_vm9 = vcmp.lt.s32.totalorder %v2762_v5, 15  ;;  %vm4659_vm7 = vcmp.lt.s32.totalorder %v2757_v48, 14  ;;  %v1210_v51 = vrot.slane %v1206_v0, %v2796_v24  ;;  %vm3557_vm0 = vcmp.eq.s32.totalorder %v1179_v50, 1  ;;  %v1202_v50 = vpop.permute.xlu1 %1201 }
 0x20b   : > { %vm1237_vm11 = vmand %vm4659_vm7, %vm4658_vm9  ;;  %v4660_v15 = vmov 0  ;;  %vm3561_vm1 = vcmp.eq.s32.totalorder %v1183_v39, 1  ;;  %v4663_v43 = vmov 0  ;;  %v1172_v14 = vsel %vm4336_vm3, %v4666_v45, %v1170_v49 }
 0x20c   : > { %v4661_v15 = vsel %vm3557_vm0, 4294967295, %v4660_v15  ;;  %v4664_v43 = vsel %vm3561_vm1, 4294967295, %v4663_v43  ;;  %v1173_v3 = vsel %vm4336_vm3, %v1170_v49, %v4666_v45  ;;  %v1154_v53 = vsel %vm3524_vm15, %v1140_v36, 0.0 }
 0x20d   : > { %4662 = vst [vmem:[#allocation33_spill] sm:$0xff] %v4661_v15  ;;  %4665 = vst [vmem:[#allocation18_spill] sm:$0xff] %v4664_v43  ;;  %v1155_v60 = vsel %vm3539_vm14, %v1141_v9, 0.0  ;;  %v1214_v33 = vrot.slane %v1206_v0, %v2798_v27  ;;  %v1238_v39 = vsel %vm1237_vm11, 1, %v4465_v22  ;;  %v1133_v1 = vadd.f32 %v1131_v41, %v1101_v52  ;;  %v4672_v9 = vld [vmem:[#allocation23_spill] sm:$0xff] }
 0x20e   : > { %v1134_v26 = vadd.f32 %v1132_v35, %v1102_v16  ;;  %vm4341_vm7 = vcmp.lt.s32.totalorder %v2819_v40, 96  ;;  %vm4667_vm9 = vcmp.lt.s32.totalorder %v2762_v5, 14  ;;  %vm4668_vm2 = vcmp.lt.s32.totalorder %v2757_v48, 14  ;;  %v4676_v35 = vld [vmem:[#allocation36_spill] sm:$0xff] }
 0x20f   : > { %vm1269_vm3 = vmand %vm4668_vm2, %vm4667_vm9  ;;  %vm3582_vm10 = vcmp.eq.s32.totalorder %v1210_v51, 1  ;;  %v4669_v49 = vmov 0  ;;  %v1186_v36 = vsel %vm3557_vm0, %v1172_v14, 0.0  ;;  %v1187_v0 = vsel %vm3561_vm1, %v1173_v3, 0.0 }
 0x210   : > { %v4670_v49 = vsel %vm3582_vm10, 4294967295, %v4669_v49  ;;  %v1163_v52 = vmul.f32 %v4672_v9, %v1154_v53  ;;  %v1164_v16 = vmul.f32 %v4672_v9, %v1155_v60  ;;  %v1242_v41 = vrot.slane %v1238_v39, %v2796_v24  ;;  %v4677_v60 = vld [vmem:[#allocation24_spill] sm:$0xff] }
 0x211   : > { %4671 = vst [vmem:[#allocation19_spill] sm:$0xff] %v4670_v49  ;;  %v1246_v5 = vrot.slane %v1238_v39, %v2798_v27  ;;  %vm3594_vm11 = vcmp.eq.s32.totalorder %v1214_v33, 1  ;;  %v4673_v48 = vmov 0  ;;  %v1204_v51 = vsel %vm4341_vm7, %v4676_v35, %v1202_v50  ;;  %v1233_v33 = vpop.permute.xlu1 %1232 }
 0x212   : > { %v4674_v48 = vsel %vm3594_vm11, 4294967295, %v4673_v48  ;;  %v1205_v45 = vsel %vm4341_vm7, %v1202_v50, %v4676_v35  ;;  %v1270_v14 = vsel %vm1269_vm3, 1, %v4465_v22  ;;  %v1165_v3 = vadd.f32 %v1163_v52, %v1133_v1  ;;  %v4684_v52 = vld [vmem:[#allocation41_spill] sm:$0xff] }
 0x213   : > { %4675 = vst [vmem:[#allocation37_spill] sm:$0xff] %v4674_v48  ;;  %v1166_v53 = vadd.f32 %v1164_v16, %v1134_v26  ;;  %v1195_v9 = vmul.f32 %v4677_v60, %v1186_v36  ;;  %v1196_v39 = vmul.f32 %v4677_v60, %v1187_v0  ;;  %vm4342_vm2 = vcmp.lt.s32.totalorder %v2819_v40, 95  ;;  %v4685_v35 = vld [vmem:[#allocation25_spill] sm:$0xff] }
 0x214   : > { %vm3608_vm9 = vcmp.eq.s32.totalorder %v1242_v41, 1  ;;  %v4678_v43 = vmov 0  ;;  %vm3612_vm1 = vcmp.eq.s32.totalorder %v1246_v5, 1  ;;  %v4681_v15 = vmov 0  ;;  %v1298_v5 = vpop.permute.xlu0 %1297 }
 0x215   : > { %v4679_v43 = vsel %vm3608_vm9, 4294967295, %v4678_v43  ;;  %v4682_v15 = vsel %vm3612_vm1, 4294967295, %v4681_v15  ;;  %v1217_v22 = vsel %vm3582_vm10, %v1204_v51, 0.0  ;;  %v1218_v50 = vsel %vm3594_vm11, %v1205_v45, 0.0 }
 0x216   : > { %4680 = vst [vmem:[#allocation30_spill] sm:$0xff] %v4679_v43  ;;  %4683 = vst [vmem:[#allocation20_spill] sm:$0xff] %v4682_v15  ;;  %v1274_v1 = vrot.slane %v1270_v14, %v2796_v24  ;;  %v1278_v26 = vrot.slane %v1270_v14, %v2798_v27  ;;  %v1197_v36 = vadd.f32 %v1195_v9, %v1165_v3  ;;  %vm4346_vm3 = vcmp.lt.s32.totalorder %v2819_v40, 94  ;;  %v1263_v9 = vpop.permute.xlu1 %1262 }
 0x217   : > { %v1198_v0 = vadd.f32 %v1196_v39, %v1166_v53  ;;  %v1235_v16 = vsel %vm4342_vm2, %v4684_v52, %v1233_v33  ;;  %v1236_v41 = vsel %vm4342_vm2, %v1233_v33, %v4684_v52  ;;  %v1226_v51 = vmul.f32 %v4685_v35, %v1217_v22  ;;  %v4692_v33 = vld [vmem:[#allocation26_spill] sm:$0xff] }
 0x218   : > { %v1227_v60 = vmul.f32 %v4685_v35, %v1218_v50  ;;  %v1249_v24 = vsel %vm3608_vm9, %v1235_v16, 0.0  ;;  %v1250_v27 = vsel %vm3612_vm1, %v1236_v41, 0.0  ;;  %vm3635_vm7 = vcmp.eq.s32.totalorder %v1274_v1, 1  ;;  %v1265_v39 = vpop.permute.xlu0 %1264  ;;  %v4693_v41 = vld [vmem:[#allocation27_spill] sm:$0xff] }
 0x219   : > { %v1228_v14 = vadd.f32 %v1226_v51, %v1197_v36  ;;  %v4686_v3 = vmov 0  ;;  %vm3639_vm2 = vcmp.eq.s32.totalorder %v1278_v26, 1  ;;  %v4689_v53 = vmov 0 }
 0x21a   : > { %v1229_v45 = vadd.f32 %v1227_v60, %v1198_v0  ;;  %v4687_v3 = vsel %vm3635_vm7, 4294967295, %v4686_v3  ;;  %v4690_v53 = vsel %vm3639_vm2, 4294967295, %v4689_v53  ;;  %v1258_v22 = vmul.f32 %v4692_v33, %v1249_v24 }
 0x21b   : > { %4688 = vst [vmem:[#allocation42_spill] sm:$0xff] %v4687_v3  ;;  %4691 = vst [vmem:[#allocation21_spill] sm:$0xff] %v4690_v53  ;;  %v1259_v50 = vmul.f32 %v4692_v33, %v1250_v27  ;;  %v1267_v52 = vsel %vm4346_vm3, %v1263_v9, %v1265_v39  ;;  %v1268_v36 = vsel %vm4346_vm3, %v1265_v39, %v1263_v9  ;;  %vm1322_vm3 = vcmask 1043456  }
 0x21c   : > { %v1281_v1 = vsel %vm3635_vm7, %v1267_v52, 0.0  ;;  %v1282_v26 = vsel %vm3639_vm2, %v1268_v36, 0.0  ;;  %v1260_v0 = vadd.f32 %v1258_v22, %v1228_v14  ;;  %vm1318_vm2 = vcmask 31744   ;;  %v1316_v36 = vld [vmem:[%s4200_s7] sm:$0xff] }
 0x21d   : > { %v1261_v16 = vadd.f32 %v1259_v50, %v1229_v45  ;;  %v1290_v35 = vmul.f32 %v4693_v41, %v1281_v1  ;;  %v1291_v51 = vmul.f32 %v4693_v41, %v1282_v26  ;;  %v1484_v1 = vpop.permute.xlu1 %1483  ;;  %vm4731_vm7 = vcmp.lt.s32.totalorder %v2819_v40, 34 }
 0x21e   : > { %vm4732_vm1 = vmmov %vm4731_vm7  ;;  %vm4733_vm9 = vnez %v4480_v8  ;;  %vm4734_vm11 = vnez %v4482_v19 }
 0x21f   : > { %v1292_v60 = vadd.f32 %v1290_v35, %v1260_v0  ;;  %v1293_v24 = vadd.f32 %v1291_v51, %v1261_v16  ;;  %v2209_v35 = vld [vmem:[%s2433_s29] sm:$0xff] }
 0x221   : > { %v1301_v27 = vadd.f32 %v1298_v5, %v1293_v24  ;;  %v1300_v33 = vadd.f32 %v1298_v5, %v1292_v60  ;;  %v1317_v5 = vld [vmem:[%s4201_s8] sm:$0xff]  ;;  %v2210_v60 = vld [vmem:[%s2433_s29 + $0x8] sm:$0xff] }
 0x223   : > { %v2081_v15 = vmul.f32 -1.442695, %v1301_v27  ;;  %v2080_v43 = vmul.f32 -1.442695, %v1300_v33 }
 0x225   : > { %2201 = vpow2.f32 %v2081_v15  ;;  %v4694_v15 = vld [vmem:[#allocation14_spill] sm:$0xff] }
 0x226   : > { %2203 = vpow2.f32 %v2080_v43  ;;  %v4695_v43 = vld [vmem:[#allocation13_spill] sm:$0xff] }
 0x22f   : > { %v2202_v9 = vpop.eup %2201 }
 0x230   : > { %v2204_v39 = vpop.eup %2203  ;;  %v1309_v52 = vadd.f32 1.0, %v2202_v9 }
 0x231   : > { %v1308_v3 = vadd.f32 1.0, %v2204_v39 }
 0x232   : > { %2205 = vrcp.f32 %v1309_v52 }
 0x233   : > { %2207 = vrcp.f32 %v1308_v3  ;;  %v4696_v3 = vmov 0.0  }
 0x23c   : > { %v2206_v45 = vpop.eup %2205 }
 0x23d   : > { %v2208_v14 = vpop.eup %2207  ;;  %v1315_v22 = vmul.f32 %v2206_v45, %v1301_v27  ;;  %v3719_v27 = vpop.permute.xlu0 %1499 }
 0x23e   : > { %v1314_v50 = vmul.f32 %v2208_v14, %v1300_v33  ;;  %v3725_v33 = vpop.permute.xlu1 %1518 }
 0x23f   : > { %2082 = vmatprep.subr.msk.mxu1 %vm1322_vm3, %v1315_v22 }
 0x240   : > { %2083 = vmatpush1.msk.msra.mxu1 %vm1322_vm3, %v1314_v50 }
 0x241   : > { %2084 = vmatmul.mubr.msk.f32.vlgmr.msra.gmra.mrb[0].mxu1 %vm1318_vm2, %v1317_v5  ;;  %2085 = vmatprep.subr.msk.mxu1 %vm1322_vm3, %v4694_v15  ;;  %v3727_v9 = vpop.permute.xlu0 %1537 }
 0x242   : > { %2086 = vmatpush1.msk.msra.mxu1 %vm1322_vm3, %v4695_v43  ;;  %1473 = vmatprep.mubr.f32.mxu1 %v4696_v3  ;;  %v3737_v39 = vpop.permute.xlu1 %1556 }
 0x245   : > { %v3739_v52 = vpop.permute.xlu0 %1575 }
 0x246   : > { %v3745_v45 = vpop.permute.xlu1 %1594 }
 0x249   : > { %2087 = vmatmul.mubr.msk.f32.vlgmr.msra.gmra.mrb[0].mxu1 %vm1318_vm2, %v1316_v36  ;;  %v3747_v14 = vpop.permute.xlu0 %1613  ;;  %vm4729_vm2 = vcmp.lt.s32.totalorder %v2819_v40, 33 }
 0x24a   : > { %v3757_v22 = vpop.permute.xlu1 %1632  ;;  %vm4730_vm3 = vmmov %vm4729_vm2 }
 0x24d   : > { %v3759_v50 = vpop.permute.xlu0 %1651 }
 0x24e   : > { %v3765_v5 = vpop.permute.xlu1 %1670 }
 0x251   : > { %v3767_v15 = vpop.permute.xlu0 %1689 }
 0x252   : > { %v3777_v43 = vpop.permute.xlu1 %1708 }
 0x255   : > { %v3779_v3 = vpop.permute.xlu0 %1719 }
 0x256   : > { %4706 = vst [vmem:[#allocation43_spill] sm:$0xff] %v3779_v3  ;;  %v3785_v36 = vpop.permute.xlu1 %1738  ;;  %v4737_v3 = vld [vmem:[#allocation39_spill] sm:$0xff] }
 0x257   : > { %4707 = vst [vmem:[#allocation23_spill] sm:$0xff] %v3785_v36 }
 0x31c   : > { %v1475_v26 = vpop.f32.mrb[0].mxu1 }
 0x31d   : > { %v3667_v0 = vadd.f32 %v1484_v1, %v1475_v26  ;;  %v1477_v16 = vpop.f32.mrb[1].mxu1  ;;  %v3797_v26 = vpop.permute.xlu1 %1776 }
 0x31e   : > { %v3669_v41 = vadd.f32 %v1484_v1, %v1477_v16  ;;  %v3787_v1 = vpop.permute.xlu0 %1757  ;;  %4709 = vst [vmem:[#allocation24_spill] sm:$0xff] %v3797_v26 }
 0x31f   : > { %4697 = vst [vmem:[#allocation32_spill] sm:$0xff] %v3667_v0  ;;  %1506 = vrot.lane.b32.xlu1 %v3667_v0, %s4699_s11  ;;  %1488 = vrot.lane.b32.xlu0 %v3667_v0, %s4700_s14  ;;  %v1962_v51 = vadd.f32 %v2209_v35, %v3667_v0  ;;  %4708 = vst [vmem:[#allocation36_spill] sm:$0xff] %v3787_v1 }
 0x320   : > { %4698 = vst [vmem:[#allocation22_spill] sm:$0xff] %v3669_v41  ;;  %v1963_v24 = vadd.f32 %v2210_v60, %v3669_v41 }
 0x321   : > { %1964 = vst [vmem:[%s3679_s9] sm:$0xff] %v1962_v51  ;;  %v3808_v51 = vpop.permute.xlu1 %1814 }
 0x322   : > { %1965 = vst [vmem:[%s3679_s9 + $0x8] sm:$0xff] %v1963_v24  ;;  %v3799_v16 = vpop.permute.xlu0 %1795  ;;  %4712 = vst [vmem:[#allocation25_spill] sm:$0xff] %v3808_v51 }
 0x323   : > { %1544 = vrot.lane.b32.xlu1 %v3667_v0, %s4701_s25  ;;  %1525 = vrot.lane.b32.xlu0 %v3667_v0, %s4702_s6  ;;  %4710 = vst [vmem:[#allocation41_spill] sm:$0xff] %v3799_v16 }
 0x325   : > { %v3816_v24 = vpop.permute.xlu1 %1852 }
 0x326   : > { %v3810_v60 = vpop.permute.xlu0 %1833  ;;  %4715 = vst [vmem:[#allocation27_spill] sm:$0xff] %v3816_v24 }
 0x327   : > { %1582 = vrot.lane.b32.xlu1 %v3667_v0, %s4418_s3  ;;  %1563 = vrot.lane.b32.xlu0 %v3667_v0, %s4417_s18  ;;  %4713 = vst [vmem:[#allocation26_spill] sm:$0xff] %v3810_v60 }
 0x329   : > { %v3820_v48 = vpop.permute.xlu1 %1890 }
 0x32a   : > { %v3818_v53 = vpop.permute.xlu0 %1871  ;;  %4717 = vst [vmem:[#allocation13_spill] sm:$0xff] %v3820_v48 }
 0x32b   : > { %1620 = vrot.lane.b32.xlu1 %v3667_v0, %s4420_s17  ;;  %1601 = vrot.lane.b32.xlu0 %v3667_v0, %s4419_s0  ;;  %4716 = vst [vmem:[#allocation14_spill] sm:$0xff] %v3818_v53 }
 0x32d   : > { %v3824_v6 = vpop.permute.xlu1 %1928 }
 0x32e   : > { %v3822_v49 = vpop.permute.xlu0 %1909  ;;  %4719 = vst [vmem:[#allocation51_spill] sm:$0xff] %v3824_v6 }
 0x32f   : > { %1658 = vrot.lane.b32.xlu1 %v3667_v0, %s4422_s28  ;;  %1639 = vrot.lane.b32.xlu0 %v3667_v0, %s4421_s20  ;;  %4718 = vst [vmem:[#allocation50_spill] sm:$0xff] %v3822_v49 }
 0x332   : > { %v3826_v55 = vpop.permute.xlu0 %1947 }
 0x333   : > { %1696 = vrot.lane.b32.xlu1 %v3667_v0, %s4424_s15  ;;  %1677 = vrot.lane.b32.xlu0 %v3667_v0, %s4423_s26  ;;  %4720 = vst [vmem:[#allocation52_spill] sm:$0xff] %v3826_v55 }
 0x337   : > { %1726 = vrot.lane.b32.xlu1 %v3667_v0, %s4703_s24  ;;  %1764 = vrot.lane.b32.xlu0 %v3667_v0, %s4428_s5 }
 0x33b   : > { %1745 = vrot.lane.b32.xlu1 %v3667_v0, %s4425_s19  ;;  %1802 = vrot.lane.b32.xlu0 %v3667_v0, %s4432_s23 }
 0x33f   : > { %1783 = vrot.lane.b32.xlu1 %v3667_v0, %s4426_s4  ;;  %1840 = vrot.lane.b32.xlu0 %v3667_v0, %s4434_s27 }
 0x343   : > { %1821 = vrot.lane.b32.xlu1 %v3667_v0, %s4429_s30  ;;  %1878 = vrot.lane.b32.xlu0 %v3667_v0, %s4438_s21 }
 0x347   : > { %1859 = vrot.lane.b32.xlu1 %v3667_v0, %s4433_s16  ;;  %1508 = vrot.lane.b32.xlu0 %v3669_v41, %s4699_s11  ;;  %s2303_s11 = smov [#allocation2]  }
 0x34b   : > { %1897 = vrot.lane.b32.xlu1 %v3667_v0, %s4704_s13  ;;  %1546 = vrot.lane.b32.xlu0 %v3669_v41, %s4701_s25 }
 0x34f   : > { %1584 = vrot.lane.b32.xlu0 %v3669_v41, %s4418_s3  ;;  %1490 = vrot.lane.b32.xlu1 %v3669_v41, %s4700_s14  ;;  %s4151_s3 = scalar_lea.sflag [#allocation3], %s404_s12  ;;  %s2217_s14 = sshll.u32 %s2303_s11, 4  ;;  %s2218_s14 = int_to_ptr.vmem [resolvable:$false] %s2217_s14 }
 0x353   : > { %1622 = vrot.lane.b32.xlu0 %v3669_v41, %s4420_s17  ;;  %1527 = vrot.lane.b32.xlu1 %v3669_v41, %s4702_s6 }
 0x357   : > { %1660 = vrot.lane.b32.xlu0 %v3669_v41, %s4422_s28  ;;  %1565 = vrot.lane.b32.xlu1 %v3669_v41, %s4417_s18  ;;  %s4705_s18 = smov 95  }
 0x35b   : > { %1698 = vrot.lane.b32.xlu0 %v3669_v41, %s4424_s15  ;;  %1603 = vrot.lane.b32.xlu1 %v3669_v41, %s4419_s0  ;;  %s4866_s0 = sld [smem:[#allocation68_spill]] }
 0x35f   : > { %1728 = vrot.lane.b32.xlu0 %v3669_v41, %s4703_s24  ;;  %1641 = vrot.lane.b32.xlu1 %v3669_v41, %s4421_s20  ;;  %s1984_s20 = sshll.u32 %s3679_s9, 4  ;;  %s4145_s20 = int_to_ptr.vmem [resolvable:$true] %s1984_s20 }
 0x360   : > { %p2220_p0 = scmp.lt.s32.totalorder %s4145_s20, %s2218_s14 }
 0x363   : > { %1747 = vrot.lane.b32.xlu0 %v3669_v41, %s4425_s19  ;;  %1679 = vrot.lane.b32.xlu1 %v3669_v41, %s4423_s26 }
 0x367   : > { %1785 = vrot.lane.b32.xlu0 %v3669_v41, %s4426_s4  ;;  %1916 = vrot.lane.b32.xlu1 %v3667_v0, %s4705_s18 }
 0x36b   : > { %1823 = vrot.lane.b32.xlu0 %v3669_v41, %s4429_s30  ;;  %1766 = vrot.lane.b32.xlu1 %v3669_v41, %s4428_s5  ;;  %s4711_s30 = sld [smem:[#allocation67_spill]] }
 0x36f   : > { %1861 = vrot.lane.b32.xlu0 %v3669_v41, %s4433_s16  ;;  %1804 = vrot.lane.b32.xlu1 %v3669_v41, %s4432_s23  ;;  %s4714_s23 = smov 94   ;;  %s2213_s16 = scalar_lea.vmem %s4145_s20, 512 }
 0x370   : > { %p2214_p11 = scmp.ne.s32.totalorder %s4145_s20, %s2213_s16 }
 0x371   : > { %v1954_v35 = vld [vmem:[%s4711_s30] sm:$0xff] }
 0x372   : > { %p2215_p12 = pnand %p2214_p11, %p2408_p5 }
 0x373   : > { %1899 = vrot.lane.b32.xlu0 %v3669_v41, %s4704_s13  ;;  %1842 = vrot.lane.b32.xlu1 %v3669_v41, %s4434_s27 }
 0x374   : > { %p2216_p13 = pneg %p2215_p12 }
 0x377   : > { %1918 = vrot.lane.b32.xlu0 %v3669_v41, %s4705_s18  ;;  %1880 = vrot.lane.b32.xlu1 %v3669_v41, %s4438_s21  ;;  %s4856_s21 = sld [smem:[#allocation8_spill]] }
 0x37b   : > { %1935 = vrot.lane.b32.xlu0 %v3667_v0, %s4714_s23  ;;  %1957 = vperm.xlu1 %2192, %v1954_v35  }
 0x37d   : > { %s2118_s19 = sshll.u32 %s4856_s21, 9 }
 0x37e   : > { %s4141_s15 = scalar_lea.hbm %s4866_s0, %s2118_s19 }
 0x37f   : > { %1937 = vrot.lane.b32.xlu1 %v3669_v41, %s4714_s23 }
 0x391   : > { %v1507_v4 = vpop.permute.xlu1 %1506  ;;  %v1489_v37 = vpop.permute.xlu0 %1488 }
 0x395   : > { %v1545_v60 = vpop.permute.xlu1 %1544  ;;  %v1526_v54 = vpop.permute.xlu0 %1525 }
 0x399   : > { %v1583_v35 = vpop.permute.xlu1 %1582  ;;  %v1564_v38 = vpop.permute.xlu0 %1563 }
 0x39d   : > { %v1621_v51 = vpop.permute.xlu1 %1620  ;;  %v3828_v46 = vpop.permute.xlu0 %1601 }
 0x3a1   : > { %v3830_v24 = vpop.permute.xlu1 %1658  ;;  %v3832_v53 = vpop.permute.xlu0 %1639 }
 0x3a5   : > { %v3834_v48 = vpop.permute.xlu1 %1696  ;;  %v3836_v49 = vpop.permute.xlu0 %1677 }
 0x3a9   : > { %v3838_v6 = vpop.permute.xlu1 %1726  ;;  %v3840_v55 = vpop.permute.xlu0 %1764 }
 0x3aa   : > { %4721 = vst [vmem:[#allocation53_spill] sm:$0xff] %v3840_v55 }
 0x3ad   : > { %v3842_v25 = vpop.permute.xlu1 %1745  ;;  %v3844_v16 = vpop.permute.xlu0 %1802 }
 0x3ae   : > { %4722 = vst [vmem:[#allocation54_spill] sm:$0xff] %v3844_v16 }
 0x3b1   : > { %v3846_v26 = vpop.permute.xlu1 %1783  ;;  %v3848_v47 = vpop.permute.xlu0 %1840 }
 0x3b2   : > { %4723 = vst [vmem:[#allocation55_spill] sm:$0xff] %v3846_v26  ;;  %4724 = vst [vmem:[#allocation56_spill] sm:$0xff] %v3848_v47 }
 0x3b5   : > { %v3850_v58 = vpop.permute.xlu1 %1821  ;;  %v3852_v59 = vpop.permute.xlu0 %1878 }
 0x3b6   : > { %4725 = vst [vmem:[#allocation57_spill] sm:$0xff] %v3850_v58  ;;  %4726 = vst [vmem:[#allocation58_spill] sm:$0xff] %v3852_v59  ;;  %v4735_v58 = vld [vmem:[#allocation38_spill] sm:$0xff] }
 0x3b7   : > { %vm4736_vm10 = vnez %v4735_v58 }
 0x3b9   : > { %v3854_v18 = vpop.permute.xlu1 %1859  ;;  %v1509_v1 = vpop.permute.xlu0 %1508  ;;  %v4787_v34 = vld [vmem:[#allocation55_spill] sm:$0xff] }
 0x3ba   : > { %4727 = vst [vmem:[#allocation59_spill] sm:$0xff] %v3854_v18  ;;  %v1510_v55 = vsel %vm4729_vm2, %v1507_v4, %v1509_v1  ;;  %v1511_v16 = vsel %vm4730_vm3, %v1509_v1, %v1507_v4  ;;  %vm4738_vm2 = vnez %v4737_v3  ;;  %vm4739_vm3 = vcmp.lt.s32.totalorder %v2819_v40, 31 }
 0x3bb   : > { %v1512_v18 = vsel %vm4733_vm9, %v1511_v16, 0.0 }
 0x3bc   : > { %v1521_v19 = vmul.f32 %v3725_v33, %v1512_v18 }
 0x3bd   : > { %v3856_v36 = vpop.permute.xlu1 %1897  ;;  %v1547_v42 = vpop.permute.xlu0 %1546 }
 0x3be   : > { %4728 = vst [vmem:[#allocation60_spill] sm:$0xff] %v3856_v36  ;;  %v1513_v36 = vsel %vm4734_vm11, %v1510_v55, 0.0  ;;  %v1548_v1 = vsel %vm4739_vm3, %v1545_v60, %v1547_v42  ;;  %vm4743_vm11 = vcmp.lt.s32.totalorder %v2819_v40, 32 }
 0x3bf   : > { %v1522_v58 = vmul.f32 %v3725_v33, %v1513_v36  ;;  %vm4744_vm9 = vmmov %vm4743_vm11 }
 0x3c1   : > { %v1585_v56 = vpop.permute.xlu0 %1584  ;;  %v1491_v26 = vpop.permute.xlu1 %1490 }
 0x3c2   : > { %v1492_v47 = vsel %vm4731_vm7, %v1489_v37, %v1491_v26  ;;  %v1493_v59 = vsel %vm4732_vm1, %v1491_v26, %v1489_v37  ;;  %vm4740_vm7 = vmmov %vm4739_vm3  ;;  %vm4742_vm1 = vnez %v4499_v17 }
 0x3c3   : > { %v1494_v41 = vsel %vm4736_vm10, %v1493_v59, 0.0  ;;  %v1495_v4 = vsel %vm4738_vm2, %v1492_v47, 0.0  ;;  %v1549_v0 = vsel %vm4740_vm7, %v1547_v42, %v1545_v60  ;;  %vm4741_vm10 = vnez %v4497_v21  ;;  %v4748_v21 = vld [vmem:[#allocation40_spill] sm:$0xff] }
 0x3c4   : > { %v1502_v37 = vmul.f32 %v3719_v27, %v1494_v41  ;;  %v1503_v8 = vmul.f32 %v3719_v27, %v1495_v4  ;;  %v1550_v59 = vsel %vm4741_vm10, %v1549_v0, 0.0  ;;  %v1551_v47 = vsel %vm4742_vm1, %v1548_v1, 0.0 }
 0x3c5   : > { %v1623_v26 = vpop.permute.xlu0 %1622  ;;  %v1528_v16 = vpop.permute.xlu1 %1527  ;;  %vm4745_vm2 = vcmp.lt.s32.totalorder %v2819_v40, 18  ;;  %vm4747_vm7 = vnez %v4484_v12  ;;  %vm4749_vm10 = vnez %v4748_v21  ;;  %v1559_v4 = vmul.f32 %v3737_v39, %v1550_v59 }
 0x3c6   : > { %v1529_v55 = vsel %vm4743_vm11, %v1526_v54, %v1528_v16  ;;  %v1530_v42 = vsel %vm4744_vm9, %v1528_v16, %v1526_v54  ;;  %v1586_v41 = vsel %vm4745_vm2, %v1583_v35, %v1585_v56  ;;  %vm4746_vm3 = vmmov %vm4745_vm2  ;;  %v1523_v17 = vadd.f32 %v1521_v19, %v1502_v37 }
 0x3c7   : > { %v1587_v18 = vsel %vm4746_vm3, %v1585_v56, %v1583_v35  ;;  %v1531_v27 = vsel %vm4747_vm7, %v1530_v42, 0.0  ;;  %v1532_v0 = vsel %vm4749_vm10, %v1529_v55, 0.0  ;;  %v1524_v33 = vadd.f32 %v1522_v58, %v1503_v8 }
 0x3c8   : > { %v1540_v3 = vmul.f32 %v3727_v9, %v1531_v27  ;;  %v1541_v36 = vmul.f32 %v3727_v9, %v1532_v0  ;;  %v1560_v1 = vmul.f32 %v3737_v39, %v1551_v47  ;;  %vm4750_vm1 = vcmp.lt.s32.totalorder %v2819_v40, 30 }
 0x3c9   : > { %v1661_v60 = vpop.permute.xlu0 %1660  ;;  %v1566_v54 = vpop.permute.xlu1 %1565  ;;  %vm4751_vm11 = vmmov %vm4750_vm1  ;;  %vm4752_vm9 = vnez %v4506_v61  ;;  %vm4753_vm2 = vnez %v4508_v63  ;;  %vm4754_vm3 = vcmp.lt.s32.totalorder %v2819_v40, 16  ;;  %vm4756_vm10 = vnez %v4502_v32 }
 0x3ca   : > { %v1567_v56 = vsel %vm4750_vm1, %v1564_v38, %v1566_v54  ;;  %v1568_v12 = vsel %vm4751_vm11, %v1566_v54, %v1564_v38  ;;  %v1588_v35 = vsel %vm4752_vm9, %v1587_v18, 0.0  ;;  %v1589_v37 = vsel %vm4753_vm2, %v1586_v41, 0.0  ;;  %vm4755_vm7 = vmmov %vm4754_vm3 }
 0x3cb   : > { %v1542_v8 = vadd.f32 %v1540_v3, %v1523_v17  ;;  %v1543_v9 = vadd.f32 %v1541_v36, %v1524_v33  ;;  %v1624_v16 = vsel %vm4754_vm3, %v1621_v51, %v1623_v26  ;;  %v1625_v39 = vsel %vm4755_vm7, %v1623_v26, %v1621_v51 }
 0x3cc   : > { %v1569_v19 = vsel %vm4756_vm10, %v1568_v12, 0.0  ;;  %vm4757_vm1 = vnez %v4504_v28  ;;  %v1597_v42 = vmul.f32 %v3745_v45, %v1588_v35  ;;  %v1598_v41 = vmul.f32 %v3745_v45, %v1589_v37 }
 0x3cd   : > { %v1570_v38 = vsel %vm4757_vm1, %v1567_v56, 0.0  ;;  %v1561_v58 = vadd.f32 %v1559_v4, %v1542_v8  ;;  %v1562_v61 = vadd.f32 %v1560_v1, %v1543_v9  ;;  %v1578_v59 = vmul.f32 %v3739_v52, %v1569_v19  ;;  %v1699_v47 = vpop.permute.xlu0 %1698  ;;  %v1604_v55 = vpop.permute.xlu1 %1603 }
 0x3ce   : > { %v1579_v63 = vmul.f32 %v3739_v52, %v1570_v38  ;;  %vm4758_vm11 = vcmp.lt.s32.totalorder %v2819_v40, 17  ;;  %vm4760_vm2 = vnez %v4518_v13  ;;  %vm4761_vm3 = vnez %v4520_v2 }
 0x3cf   : > { %v1605_v32 = vsel %vm4758_vm11, %v3828_v46, %v1604_v55  ;;  %vm4759_vm9 = vmmov %vm4758_vm11  ;;  %v1626_v51 = vsel %vm4760_vm2, %v1625_v39, 0.0  ;;  %v1627_v52 = vsel %vm4761_vm3, %v1624_v16, 0.0  ;;  %v1580_v26 = vadd.f32 %v1578_v59, %v1561_v58 }
 0x3d0   : > { %v1606_v28 = vsel %vm4759_vm9, %v1604_v55, %v3828_v46  ;;  %v1581_v18 = vadd.f32 %v1579_v63, %v1562_v61  ;;  %vm4762_vm7 = vcmp.lt.s32.totalorder %v2819_v40, 14  ;;  %vm4764_vm1 = vnez %v4514_v23 }
 0x3d1   : > { %v1662_v45 = vsel %vm4762_vm7, %v3830_v24, %v1661_v60  ;;  %vm4763_vm10 = vmmov %vm4762_vm7  ;;  %v1607_v21 = vsel %vm4764_vm1, %v1606_v28, 0.0  ;;  %vm4765_vm11 = vnez %v4516_v10  ;;  %v1599_v46 = vadd.f32 %v1597_v42, %v1580_v26  ;;  %v1729_v33 = vpop.permute.xlu0 %1728  ;;  %v1642_v3 = vpop.permute.xlu1 %1641  ;;  %v4781_v28 = vld [vmem:[#allocation32_spill] sm:$0xff]  ;;  %v4783_v26 = vld [vmem:[#allocation22_spill] sm:$0xff] }
 0x3d2   : > { %v1663_v27 = vsel %vm4763_vm10, %v1661_v60, %v3830_v24  ;;  %v1608_v13 = vsel %vm4765_vm11, %v1605_v32, 0.0  ;;  %v1600_v0 = vadd.f32 %v1598_v41, %v1581_v18  ;;  %v1616_v2 = vmul.f32 %v3747_v14, %v1607_v21 }
 0x3d3   : > { %v1617_v17 = vmul.f32 %v3747_v14, %v1608_v13  ;;  %v1635_v36 = vmul.f32 %v3757_v22, %v1626_v51  ;;  %v1636_v54 = vmul.f32 %v3757_v22, %v1627_v52  ;;  %vm4766_vm9 = vcmp.lt.s32.totalorder %v2819_v40, 15  ;;  %v4782_v51 = vld [vmem:[#allocation43_spill] sm:$0xff] }
 0x3d4   : > { %v1643_v23 = vsel %vm4766_vm9, %v3832_v53, %v1642_v3  ;;  %vm4767_vm2 = vmmov %vm4766_vm9  ;;  %vm4768_vm3 = vnez %v4537_v20  ;;  %vm4769_vm7 = vnez %v4540_v29  ;;  %v1618_v60 = vadd.f32 %v1616_v2, %v1599_v46  ;;  %v4790_v2 = vld [vmem:[#allocation53_spill] sm:$0xff] }
 0x3d5   : > { %v1644_v10 = vsel %vm4767_vm2, %v1642_v3, %v3832_v53  ;;  %v1664_v24 = vsel %vm4768_vm3, %v1663_v27, 0.0  ;;  %v1665_v14 = vsel %vm4769_vm7, %v1662_v45, 0.0  ;;  %v1619_v4 = vadd.f32 %v1617_v17, %v1600_v0  ;;  %v1748_v37 = vpop.permute.xlu0 %1747  ;;  %v1680_v8 = vpop.permute.xlu1 %1679  ;;  %v4785_v27 = vld [vmem:[#allocation45_spill] sm:$0xff]  ;;  %v4793_v3 = vld [vmem:[#allocation23_spill] sm:$0xff] }
 0x3d6   : > { %vm4770_vm10 = vcmp.lt.s32.totalorder %v2819_v40, 1  ;;  %vm4772_vm11 = vnez %v4525_v30  ;;  %vm4773_vm9 = vnez %v4528_v62  ;;  %v1637_v53 = vadd.f32 %v1635_v36, %v1618_v60 }
 0x3d7   : > { %v1700_v22 = vsel %vm4770_vm10, %v3834_v48, %v1699_v47  ;;  %vm4771_vm1 = vmmov %vm4770_vm10  ;;  %v1645_v56 = vsel %vm4772_vm11, %v1644_v10, 0.0  ;;  %v1646_v20 = vsel %vm4773_vm9, %v1643_v23, 0.0  ;;  %v1638_v12 = vadd.f32 %v1636_v54, %v1619_v4  ;;  %v4795_v4 = vld [vmem:[#allocation48_spill] sm:$0xff] }
 0x3d8   : > { %v1701_v1 = vsel %vm4771_vm1, %v1699_v47, %v3834_v48  ;;  %v1654_v29 = vmul.f32 %v3759_v50, %v1645_v56  ;;  %v1655_v35 = vmul.f32 %v3759_v50, %v1646_v20  ;;  %v1673_v9 = vmul.f32 %v3765_v5, %v1664_v24  ;;  %v4794_v24 = vld [vmem:[#allocation36_spill] sm:$0xff]  ;;  %v4799_v20 = vld [vmem:[#allocation46_spill] sm:$0xff] }
 0x3d9   : > { %v1674_v16 = vmul.f32 %v3765_v5, %v1665_v14  ;;  %vm4774_vm2 = vcmp.lt.s32.totalorder %v2819_v40, 2  ;;  %v1702_v48 = vsel %vm3251_vm13, %v1701_v1, 0.0  ;;  %v1703_v50 = vsel %vm3258_vm6, %v1700_v22, 0.0  ;;  %v3992_v63 = vpop.permute.xlu1 %1916  ;;  %v1786_v41 = vpop.permute.xlu0 %1785  ;;  %v4797_v1 = vld [vmem:[#allocation49_spill] sm:$0xff] }
 0x3da   : > { %v1681_v30 = vsel %vm4774_vm2, %v3836_v49, %v1680_v8  ;;  %vm4775_vm3 = vmmov %vm4774_vm2  ;;  %v1656_v39 = vadd.f32 %v1654_v29, %v1637_v53  ;;  %v1657_v19 = vadd.f32 %v1655_v35, %v1638_v12  ;;  %vm4776_vm7 = vcmp.lt.s32.totalorder %v2819_v40, 127  ;;  %v4801_v12 = vld [vmem:[#allocation47_spill] sm:$0xff] }
 0x3db   : > { %v1682_v62 = vsel %vm4775_vm3, %v1680_v8, %v3836_v49  ;;  %v1730_v5 = vsel %vm4776_vm7, %v3838_v6, %v1729_v33  ;;  %vm4777_vm10 = vmmov %vm4776_vm7  ;;  %vm4778_vm1 = vnez %v4543_v7  ;;  %v1684_v44 = vsel %vm3227_vm12, %v1681_v30, 0.0 }
 0x3dc   : > { %v1731_v38 = vsel %vm4777_vm10, %v1729_v33, %v3838_v6  ;;  %v1683_v58 = vsel %vm4778_vm1, %v1682_v62, 0.0  ;;  %v1675_v49 = vadd.f32 %v1673_v9, %v1656_v39  ;;  %v1676_v61 = vadd.f32 %v1674_v16, %v1657_v19  ;;  %v4803_v16 = vld [vmem:[#allocation54_spill] sm:$0xff]  ;;  %v4806_v39 = vld [vmem:[#allocation24_spill] sm:$0xff] }
 0x3dd   : > { %v1692_v31 = vmul.f32 %v3767_v15, %v1683_v58  ;;  %v1693_v59 = vmul.f32 %v3767_v15, %v1684_v44  ;;  %vm4779_vm13 = vcmp.lt.s32.totalorder %v2819_v40, 126  ;;  %v1711_v6 = vmul.f32 %v3777_v43, %v1702_v48  ;;  %v1767_v46 = vpop.permute.xlu1 %1766  ;;  %v1824_v9 = vpop.permute.xlu0 %1823 }
 0x3de   : > { %v1749_v47 = vsel %vm4779_vm13, %v3842_v25, %v1748_v37  ;;  %vm4780_vm6 = vmmov %vm4779_vm13  ;;  %v1712_v11 = vmul.f32 %v3777_v43, %v1703_v50  ;;  %v1732_v15 = vsel %vm3307_vm4, %v1730_v5, 0.0  ;;  %v1733_v32 = vsel %vm3314_vm5, %v1731_v38, 0.0  ;;  %v4807_v38 = vld [vmem:[#allocation41_spill] sm:$0xff] }
 0x3df   : > { %v1750_v7 = vsel %vm4780_vm6, %v1748_v37, %v3842_v25  ;;  %v1694_v55 = vadd.f32 %v1692_v31, %v1675_v49  ;;  %v1695_v42 = vadd.f32 %v1693_v59, %v1676_v61  ;;  %v1722_v52 = vmul.f32 %v4782_v51, %v4781_v28  ;;  %v4808_v49 = vld [vmem:[#allocation28_spill] sm:$0xff]  ;;  %v4810_v31 = vld [vmem:[#allocation31_spill] sm:$0xff] }
 0x3e0   : > { %v1723_v18 = vmul.f32 %v4782_v51, %v4783_v26  ;;  %v1751_v45 = vsel %vm3284_vm8, %v1749_v47, 0.0  ;;  %vm4786_vm12 = vnez %v4785_v27  ;;  %vm4788_vm4 = vcmp.lt.s32.totalorder %v2819_v40, 113  ;;  %v4812_v47 = vld [vmem:[#allocation57_spill] sm:$0xff] }
 0x3e1   : > { %v1752_v43 = vsel %vm4786_vm12, %v1750_v7, 0.0  ;;  %v1713_v21 = vadd.f32 %v1711_v6, %v1694_v55  ;;  %v1714_v13 = vadd.f32 %v1712_v11, %v1695_v42  ;;  %v1787_v57 = vsel %vm4788_vm4, %v4787_v34, %v1786_v41  ;;  %vm4789_vm5 = vmmov %vm4788_vm4  ;;  %v1805_v8 = vpop.permute.xlu1 %1804 }
 0x3e2   : > { %v1788_v0 = vsel %vm4789_vm5, %v1786_v41, %v4787_v34  ;;  %vm4791_vm11 = vcmp.lt.s32.totalorder %v2819_v40, 114  ;;  %v1741_v36 = vmul.f32 %v4793_v3, %v1732_v15  ;;  %v1742_v54 = vmul.f32 %v4793_v3, %v1733_v32  ;;  %v4815_v32 = vld [vmem:[#allocation25_spill] sm:$0xff]  ;;  %v4823_v34 = vld [vmem:[#allocation26_spill] sm:$0xff] }
 0x3e3   : > { %v1768_v17 = vsel %vm4791_vm11, %v4790_v2, %v1767_v46  ;;  %vm4792_vm8 = vmmov %vm4791_vm11  ;;  %v1724_v23 = vadd.f32 %v1722_v52, %v1713_v21  ;;  %v1725_v10 = vadd.f32 %v1723_v18, %v1714_v13  ;;  %v1760_v14 = vmul.f32 %v4794_v24, %v1751_v45  ;;  %v4816_v52 = vld [vmem:[#allocation15_spill] sm:$0xff]  ;;  %v4818_v18 = vld [vmem:[#allocation16_spill] sm:$0xff] }
 0x3e4   : > { %v1769_v33 = vsel %vm4792_vm8, %v1767_v46, %v4790_v2  ;;  %v1761_v60 = vmul.f32 %v4794_v24, %v1752_v43  ;;  %vm4796_vm9 = vnez %v4795_v4  ;;  %vm4798_vm2 = vnez %v4797_v1  ;;  %v4820_v43 = vld [vmem:[#allocation56_spill] sm:$0xff]  ;;  %v1862_v46 = vpop.permute.xlu0 %1861  ;;  %v4824_v2 = vld [vmem:[#allocation29_spill] sm:$0xff]  ;;  %v2211_v1 = vld [vmem:[%s2433_s29 + $0x10] sm:$0xff] }
 0x3e5   : > { %v1770_v22 = vsel %vm4796_vm9, %v1768_v17, 0.0  ;;  %v1771_v56 = vsel %vm4798_vm2, %v1769_v33, 0.0  ;;  %vm4800_vm3 = vnez %v4799_v20  ;;  %vm4802_vm7 = vnez %v4801_v12  ;;  %v1843_v42 = vpop.permute.xlu1 %1842  ;;  %v4826_v33 = vld [vmem:[#allocation17_spill] sm:$0xff]  ;;  %v2212_v20 = vld [vmem:[%s2433_s29 + $0x18] sm:$0xff]  ;;  %s2219_s29 = scalar_lea.vmem %s2218_s14, 1024 }
 0x3e6   : > { %v1789_v53 = vsel %vm4800_vm3, %v1787_v57, 0.0  ;;  %v1790_v29 = vsel %vm4802_vm7, %v1788_v0, 0.0  ;;  %v1743_v35 = vadd.f32 %v1741_v36, %v1724_v23  ;;  %v1744_v37 = vadd.f32 %v1742_v54, %v1725_v10  ;;  %v4828_v36 = vld [vmem:[#allocation59_spill] sm:$0xff]  ;;  %p2221_p1 = scmp.lt.s32.totalorder %s2219_s29, %s2213_s16 }
 0x3e7   : > { %vm4804_vm10 = vcmp.lt.s32.totalorder %v2819_v40, 112  ;;  %v1779_v19 = vmul.f32 %v4806_v39, %v1770_v22  ;;  %v1780_v5 = vmul.f32 %v4806_v39, %v1771_v56  ;;  %v1798_v58 = vmul.f32 %v4807_v38, %v1789_v53  ;;  %v4839_v39 = vld [vmem:[#allocation18_spill] sm:$0xff] }
 0x3e8   : > { %v1806_v30 = vsel %vm4804_vm10, %v4803_v16, %v1805_v8  ;;  %vm4805_vm1 = vmmov %vm4804_vm10  ;;  %v1762_v48 = vadd.f32 %v1760_v14, %v1743_v35  ;;  %v1763_v50 = vadd.f32 %v1761_v60, %v1744_v37  ;;  %v1799_v44 = vmul.f32 %v4807_v38, %v1790_v29  ;;  %v4831_v60 = vld [vmem:[#allocation27_spill] sm:$0xff]  ;;  %v1900_v12 = vpop.permute.xlu0 %1899  ;;  %v4834_v37 = vld [vmem:[#allocation58_spill] sm:$0xff]  ;;  %p2222_p2 = por %p2221_p1, %p2220_p0 }
 0x3e9   : > { %v1807_v62 = vsel %vm4805_vm1, %v1805_v8, %v4803_v16  ;;  %vm4809_vm13 = vnez %v4808_v49  ;;  %vm4811_vm6 = vnez %v4810_v31  ;;  %vm4813_vm12 = vcmp.lt.s32.totalorder %v2819_v40, 111  ;;  %v1881_v14 = vpop.permute.xlu1 %1880  ;;  %v4837_v16 = vld [vmem:[#allocation14_spill] sm:$0xff]  ;;  %v4844_v31 = vld [vmem:[#allocation13_spill] sm:$0xff] }
 0x3ea   : > { %v1808_v61 = vsel %vm4809_vm13, %v1806_v30, 0.0  ;;  %v1809_v59 = vsel %vm4811_vm6, %v1807_v62, 0.0  ;;  %v1825_v7 = vsel %vm4813_vm12, %v4812_v47, %v1824_v9  ;;  %vm4814_vm4 = vmmov %vm4813_vm12  ;;  %v1781_v11 = vadd.f32 %v1779_v19, %v1762_v48  ;;  %p2223_p3 = pnand %p2222_p2, %p2216_p13 }
 0x3eb   : > { %v1826_v6 = vsel %vm4814_vm4, %v1824_v9, %v4812_v47  ;;  %v1782_v55 = vadd.f32 %v1780_v5, %v1763_v50  ;;  %v1817_v28 = vmul.f32 %v4815_v32, %v1808_v61  ;;  %v1818_v51 = vmul.f32 %v4815_v32, %v1809_v59  ;;  %v4841_v5 = vld [vmem:[#allocation60_spill] sm:$0xff] }
 0x3ec   : > { %v1800_v41 = vadd.f32 %v1798_v58, %v1781_v11  ;;  %vm4817_vm5 = vnez %v4816_v52  ;;  %vm4819_vm11 = vnez %v4818_v18  ;;  %vm4821_vm8 = vcmp.lt.s32.totalorder %v2819_v40, 110  ;;  %v1919_v61 = vpop.permute.xlu0 %1918  ;;  %v4847_v11 = vld [vmem:[#allocation37_spill] sm:$0xff]  ;;  %v4852_v18 = vld [vmem:[#allocation30_spill] sm:$0xff] }
 0x3ed   : > { %v1801_v15 = vadd.f32 %v1799_v44, %v1782_v55  ;;  %v1827_v26 = vsel %vm4817_vm5, %v1825_v7, 0.0  ;;  %v1828_v25 = vsel %vm4819_vm11, %v1826_v6, 0.0  ;;  %v1844_v21 = vsel %vm4821_vm8, %v4820_v43, %v1843_v42  ;;  %vm4822_vm9 = vmmov %vm4821_vm8  ;;  %v4845_v7 = vld [vmem:[#allocation19_spill] sm:$0xff] }
 0x3ee   : > { %v1819_v45 = vadd.f32 %v1817_v28, %v1800_v41  ;;  %v1845_v13 = vsel %vm4822_vm9, %v1843_v42, %v4820_v43  ;;  %v1836_v57 = vmul.f32 %v4823_v34, %v1827_v26  ;;  %v1837_v0 = vmul.f32 %v4823_v34, %v1828_v25 }
 0x3ef   : > { %v1820_v27 = vadd.f32 %v1818_v51, %v1801_v15  ;;  %vm4825_vm2 = vnez %v4824_v2  ;;  %vm4827_vm3 = vnez %v4826_v33  ;;  %vm4829_vm7 = vcmp.lt.s32.totalorder %v2819_v40, 98  ;;  %v4851_v51 = vld [vmem:[#allocation50_spill] sm:$0xff] }
 0x3f0   : > { %v1846_v17 = vsel %vm4825_vm2, %v1844_v21, 0.0  ;;  %v1847_v3 = vsel %vm4827_vm3, %v1845_v13, 0.0  ;;  %v1863_v54 = vsel %vm4829_vm7, %v4828_v36, %v1862_v46  ;;  %vm4830_vm10 = vmmov %vm4829_vm7  ;;  %v1838_v10 = vadd.f32 %v1836_v57, %v1819_v45  ;;  %v4854_v45 = vld [vmem:[#allocation20_spill] sm:$0xff]  ;;  %v1936_v13 = vpop.permute.xlu0 %1935 }
 0x3f1   : > { %v1864_v23 = vsel %vm4830_vm10, %v1862_v46, %v4828_v36  ;;  %v1839_v24 = vadd.f32 %v1837_v0, %v1820_v27  ;;  %v1855_v4 = vmul.f32 %v4831_v60, %v1846_v17  ;;  %v1856_v22 = vmul.f32 %v4831_v60, %v1847_v3  ;;  %v4860_v17 = vld [vmem:[#allocation42_spill] sm:$0xff]  ;;  %v4862_v3 = vld [vmem:[#allocation21_spill] sm:$0xff] }
 0x3f2   : > { %v1865_v56 = vsel %vm3524_vm15, %v1863_v54, 0.0  ;;  %v1866_v53 = vsel %vm3539_vm14, %v1864_v23, 0.0  ;;  %vm4835_vm1 = vcmp.lt.s32.totalorder %v2819_v40, 97  ;;  %vm4840_vm15 = vnez %v4839_v39 }
 0x3f3   : > { %v1857_v29 = vadd.f32 %v1855_v4, %v1838_v10  ;;  %v1858_v35 = vadd.f32 %v1856_v22, %v1839_v24  ;;  %v1882_v8 = vsel %vm4835_vm1, %v4834_v37, %v1881_v14  ;;  %vm4836_vm13 = vmmov %vm4835_vm1  ;;  %v1874_v30 = vmul.f32 %v4837_v16, %v1865_v56  ;;  %v4864_v10 = vld [vmem:[#allocation52_spill] sm:$0xff] }
 0x3f4   : > { %v1883_v9 = vsel %vm4836_vm13, %v1881_v14, %v4834_v37  ;;  %v1875_v62 = vmul.f32 %v4837_v16, %v1866_v53  ;;  %v1884_v50 = vsel %vm3557_vm0, %v1882_v8, 0.0  ;;  %vm4842_vm14 = vcmp.lt.s32.totalorder %v2819_v40, 96 }
 0x3f5   : > { %v1885_v19 = vsel %vm4840_vm15, %v1883_v9, 0.0  ;;  %v1901_v38 = vsel %vm4842_vm14, %v4841_v5, %v1900_v12  ;;  %vm4843_vm6 = vmmov %vm4842_vm14  ;;  %v1876_v44 = vadd.f32 %v1874_v30, %v1857_v29  ;;  %v1893_v59 = vmul.f32 %v4844_v31, %v1884_v50 }
 0x3f6   : > { %v1902_v58 = vsel %vm4843_vm6, %v1900_v12, %v4841_v5  ;;  %v1877_v49 = vadd.f32 %v1875_v62, %v1858_v35  ;;  %v1894_v47 = vmul.f32 %v4844_v31, %v1885_v19  ;;  %vm4846_vm0 = vnez %v4845_v7 }
 0x3f7   : > { %v1903_v6 = vsel %vm4846_vm0, %v1901_v38, 0.0  ;;  %vm4848_vm12 = vnez %v4847_v11  ;;  %vm4849_vm4 = vcmp.lt.s32.totalorder %v2819_v40, 95  ;;  %v1895_v15 = vadd.f32 %v1893_v59, %v1876_v44 }
 0x3f8   : > { %v1904_v55 = vsel %vm4848_vm12, %v1902_v58, 0.0  ;;  %v1920_v42 = vsel %vm4849_vm4, %v3992_v63, %v1919_v61  ;;  %vm4850_vm5 = vmmov %vm4849_vm4  ;;  %v1896_v32 = vadd.f32 %v1894_v47, %v1877_v49  ;;  %v1912_v52 = vmul.f32 %v4851_v51, %v1903_v6 }
 0x3f9   : > { %v1921_v41 = vsel %vm4850_vm5, %v1919_v61, %v3992_v63  ;;  %v1913_v26 = vmul.f32 %v4851_v51, %v1904_v55  ;;  %vm4853_vm11 = vnez %v4852_v18  ;;  %vm4855_vm8 = vnez %v4854_v45  ;;  %v4857_v63 = vld [vmem:[#allocation51_spill] sm:$0xff] }
 0x3fa   : > { %v1958_v28 = vpop.permute.xlu1 %1957  ;;  %v1922_v25 = vsel %vm4853_vm11, %v1920_v42, 0.0  ;;  %v1923_v27 = vsel %vm4855_vm8, %v1921_v41, 0.0  ;;  %v1914_v43 = vadd.f32 %v1912_v52, %v1895_v15  ;;  %vm4858_vm9 = vcmp.lt.s32.totalorder %v2819_v40, 94 }
 0x3fb   : > { %v1915_v21 = vadd.f32 %v1913_v26, %v1896_v32  ;;  %v1931_v34 = vmul.f32 %v4857_v63, %v1922_v25  ;;  %v1932_v57 = vmul.f32 %v4857_v63, %v1923_v27  ;;  %vm4859_vm2 = vmmov %vm4858_vm9  ;;  %vm4861_vm3 = vnez %v4860_v17 }
 0x3fc   : > { %vm4863_vm7 = vnez %v4862_v3 }
 0x3fd   : > { %v1933_v54 = vadd.f32 %v1931_v34, %v1914_v43  ;;  %v1934_v23 = vadd.f32 %v1932_v57, %v1915_v21 }
 0x3fe   : > { %v1938_v46 = vpop.permute.xlu1 %1937 }
 0x3ff   : > { %v1939_v0 = vsel %vm4858_vm9, %v1936_v13, %v1938_v46  ;;  %v1940_v2 = vsel %vm4859_vm2, %v1938_v46, %v1936_v13 }
 0x400   : > { %v1941_v33 = vsel %vm4861_vm3, %v1939_v0, 0.0  ;;  %v1942_v36 = vsel %vm4863_vm7, %v1940_v2, 0.0 }
 0x401   : > { %v1950_v24 = vmul.f32 %v4864_v10, %v1941_v33  ;;  %v1951_v14 = vmul.f32 %v4864_v10, %v1942_v36 }
 0x403   : > { %v1952_v60 = vadd.f32 %v1950_v24, %v1933_v54  ;;  %v1953_v4 = vadd.f32 %v1951_v14, %v1934_v23 }
 0x405   : > { %v1960_v40 = vadd.f32 %v1958_v28, %v1952_v60  ;;  %v1961_v22 = vadd.f32 %v1958_v28, %v1953_v4 }
 0x407   : > { %v1966_v56 = vadd.f32 %v2211_v1, %v1960_v40  ;;  %v1967_v53 = vadd.f32 %v2212_v20, %v1961_v22 }
 0x409   : > { %1968 = vst [vmem:[%s3679_s9 + $0x10] sm:$0xff] %v1966_v56  ;;  %1969 = vst [vmem:[%s3679_s9 + $0x18] sm:$0xff] %v1967_v53 }
 0x40a   : > { %2226 = shalt.err (!%p2223_p3)
}
 0x40b   : > { %s2227_s12 = scalar_lea.hbm %s4141_s15, 512  ;;  %s2231_s6 = scalar_lea.hbm %s4866_s0, 1024 }
 0x40c   : > { %p2228_p4 = scmp.ne.s32.totalorder %s4141_s15, %s2227_s12  ;;  %p2232_p9 = scmp.lt.u32.totalorder %s4141_s15, %s4866_s0 }
 0x40d   : > { %p2233_p10 = scmp.lt.u32.totalorder %s2231_s6, %s2227_s12  ;;  %p2235_p12 = scmp.lt.u32.totalorder %s2227_s12, %s4141_s15 }
 0x40e   : > { %p2229_p7 = pnand %p2228_p4, %p2408_p5 }
 0x40f   : > { %p2234_p11 = por %p2233_p10, %p2232_p9 }
 0x410   : > { %p2230_p8 = pneg %p2229_p7 }
 0x411   : > { %p2236_p13 = por %p2235_p12, %p2234_p11 }
 0x413   : > { %p2237_p0 = pnand %p2236_p13, %p2230_p8 }
 0x415   : > { %2240 = shalt.err (!%p2237_p0)
}
 0x416   : > { %s2304_s18 = smov 256  }
 0x417   : > { %2125 = dma.vmem_to_hbm [thread:$0]  (%p2408_p5), %s4145_s20, 512, %s4141_s15, %s4151_s3, %s2304_s18, %s2304_s18, %s4420_s17  }
 0x418 PF: > { %s4867_s4 = sld [smem:[#allocation7_spill]]  ;;  %s4868_s5 = sld [smem:[#allocation5_spill]] }
 0x41e   : > { %p2131_p1 = scmp.ge.s32.totalorder %s4867_s4, 2  ;;  %s1999_s23 = sand.u32 1, %s4868_s5  }
 0x41f   : > { %s2000_s21 = scalar_lea.sflag [#allocation3], %s1999_s23 }
 0x420   : > { %p2128_p2 = pnand %p2131_p1, %p2412_p6 }
 0x422   : > { %2258 = dma.done.wait (!%p2128_p2), %s2000_s21, 512  }
 0x423   : > { %2260 = vsyncadd (!%p2128_p2), %s2000_s21, 4294966784  ;;  %s4870_s24 = sld [smem:[#allocation9_spill]]  ;;  %s4871_s19 = sld [smem:[#allocation6_spill]] }
 0x424   : > { %s4872_s23 = sld [smem:[#allocation10_spill]]  ;;  %s4873_s21 = smov %s2267_s22 }
 0x429   : > { %p22_p3 = scmp.ge.s32.totalorder %s4870_s24, 4   ;;  %s4874_s22 = smov %s4871_s19 }
 0x42b   :  { %24 = sbr.rel (!%p22_p3) target bundleno = 12 (0xc), region = 151 }
 0x432   :  { %2005 = vsyncpa [#allocation3], 1 }
 0x433   :  { %2007 = vsyncpa [#allocation3 + $0x1], 1 }

</bundles_post_ra>
